<compile_context>
chip_gen: v5e
topology: v5e:2x2
jax: 0.10.0
libtpu: 0.0.40
codegen_flags: <defaults>
</compile_context>

<pallas_src>
import functools

import jax
import jax.numpy as jnp
from jax.experimental import pallas as pl
from jax.experimental.pallas import tpu as pltpu

EPS = 1e-5


def bn_relu_conv1x1_kernel(x_ref, gamma_ref, beta_ref, w_ref, o_ref):
    # x_ref:     (C, P)   channels on sublanes, pixels on lanes (natural NCHW slab)
    # gamma_ref: (C, 1)   BN scale (column vector)
    # beta_ref:  (C, 1)   BN shift (column vector)
    # w_ref:     (OC, C)  1x1 conv weight, natural layout, bf16
    # o_ref:     (OC, P)  output -> reshapes straight back to NCHW
    x = x_ref[...].astype(jnp.float32)
    inv_p = 1.0 / x.shape[1]

    # --- BatchNorm2d (training mode -> batch stats); two-pass variance avoids the
    #     E[x^2] - mean^2 cancellation issue for large-mean channels. ---
    mean = jnp.sum(x, axis=1, keepdims=True) * inv_p          # (C, 1)
    xc = x - mean
    var = jnp.sum(xc * xc, axis=1, keepdims=True) * inv_p     # (C, 1) biased var
    scale = gamma_ref[...] * jax.lax.rsqrt(var + EPS)          # (C, 1)

    # --- scale/shift + ReLU in one fused elementwise pass (column broadcast) ---
    y = jnp.maximum(xc * scale + beta_ref[...], 0.0)

    # --- Conv2d 1x1 (no bias) == (OC, C) @ (C, P) on the MXU, bf16 in / f32 acc ---
    o_ref[...] = jnp.dot(
        w_ref[...], y.astype(jnp.bfloat16), preferred_element_type=jnp.float32
    ).astype(o_ref.dtype)


def prepare_conv_weight(w_oihw):
    """One-time weight prep (hoisted out of the per-call path): (OC,C,1,1) -> (OC,C) bf16."""
    oc, c = w_oihw.shape[0], w_oihw.shape[1]
    return w_oihw.reshape(oc, c).astype(jnp.bfloat16)


@functools.partial(jax.jit)
def bn_relu_conv1x1(x_nchw, gamma, beta, w2d_bf16):
    N, C, H, W = x_nchw.shape
    OC = w2d_bf16.shape[0]
    P = N * H * W

    # NCHW with N == 1 collapses to the natural (C, P) slab with a *pure reshape*
    # (no data movement).  N > 1 falls back to a moveaxis (module spec fixes N=1).
    if N == 1:
        x2d = x_nchw.reshape(C, P)
    else:
        x2d = jnp.moveaxis(x_nchw, 1, 0).reshape(C, P)

    g2 = gamma.reshape(C, 1).astype(jnp.float32)
    b2 = beta.reshape(C, 1).astype(jnp.float32)

    cost = pl.CostEstimate(
        flops=2 * P * C * OC,                 # ~9.2 MFLOP matmul
        transcendentals=C,                    # one rsqrt per channel
        bytes_accessed=(C * P * 4) + (OC * C * 2) + (OC * P * 4) + (2 * C * 4),
    )

    out2d = pl.pallas_call(
        bn_relu_conv1x1_kernel,
        out_shape=jax.ShapeDtypeStruct((OC, P), x_nchw.dtype),
        in_specs=[
            pl.BlockSpec(memory_space=pltpu.MemorySpace.VMEM),  # x2d
            pl.BlockSpec(memory_space=pltpu.MemorySpace.VMEM),  # gamma
            pl.BlockSpec(memory_space=pltpu.MemorySpace.VMEM),  # beta
            pl.BlockSpec(memory_space=pltpu.MemorySpace.VMEM),  # weight
        ],
        out_specs=pl.BlockSpec(memory_space=pltpu.MemorySpace.VMEM),
        cost_estimate=cost,
    )(x2d, g2, b2, w2d_bf16)

    # (OC, P) -> NCHW.  For N == 1 this is a pure reshape.
    if N == 1:
        return out2d.reshape(1, OC, H, W)
    return jnp.moveaxis(out2d.reshape(OC, N, H, W), 1, 0)


def reference(x, gamma, beta, w_oihw):
    mean = x.mean(axis=(0, 2, 3), keepdims=True)
    var = ((x - mean) ** 2).mean(axis=(0, 2, 3), keepdims=True)
    y = (x - mean) * jax.lax.rsqrt(var + EPS)
    y = y * gamma.reshape(1, -1, 1, 1) + beta.reshape(1, -1, 1, 1)
    y = jnp.maximum(y, 0.0)
    w2d = w_oihw.reshape(w_oihw.shape[0], w_oihw.shape[1])
    return jnp.einsum("nchw,oc->nohw", y, w2d)


if __name__ == "__main__":
    key = jax.random.PRNGKey(0)
    kx, kg, kb, kw = jax.random.split(key, 4)

    N, C, H, W = 1, 736, 7, 7        # shapes fixed by the module definition
    OC = 128

    x = jax.random.normal(kx, (N, C, H, W), dtype=jnp.float32)
    gamma = 1.0 + 0.1 * jax.random.normal(kg, (C,), dtype=jnp.float32)
    beta = 0.1 * jax.random.normal(kb, (C,), dtype=jnp.float32)
    w = 0.05 * jax.random.normal(kw, (OC, C, 1, 1), dtype=jnp.float32)

    # Weight prep done once (not per call).
    w2d = jax.block_until_ready(prepare_conv_weight(w))

    out = jax.block_until_ready(bn_relu_conv1x1(x, gamma, beta, w2d))
    ref = jax.block_until_ready(reference(x, gamma, beta, w))

    assert out.shape == (N, OC, H, W), out.shape
    # bf16 matmul operands over K=736 -> tolerance ~2e-2 vs full-f32 reference.
    assert jnp.allclose(out, ref, rtol=2e-2, atol=2e-2), float(
        jnp.max(jnp.abs(out - ref))
    )
    print("KERNEL_OK")
</pallas_src>

<mosaic_0001>
module attributes {stable_mosaic.version = 11 : i64} {
  func.func @bn_relu_conv1x1_kernel(%arg0: memref<736x49xf32, #tpu.memory_space<vmem>>, %arg1: memref<736x1xf32, #tpu.memory_space<vmem>>, %arg2: memref<736x1xf32, #tpu.memory_space<vmem>>, %arg3: memref<128x736xbf16, #tpu.memory_space<vmem>>, %arg4: memref<128x49xf32, #tpu.memory_space<vmem>>) attributes {dimension_semantics = [], scalar_prefetch = 0 : i64, scratch_operands = 0 : i64, tpu.core_type = #tpu.core_type<tc>} {
    %c0 = arith.constant 0 : index
    %c0_0 = arith.constant 0 : index
    %0 = vector.load %arg0[%c0, %c0_0] : memref<736x49xf32, #tpu.memory_space<vmem>>, vector<736x49xf32>
    %cst = arith.constant dense<0.000000e+00> : vector<736xf32>
    %1 = vector.multi_reduction <add>, %0, %cst [1] : vector<736x49xf32> to vector<736xf32>
    %2 = vector.shape_cast %1 : vector<736xf32> to vector<736x1xf32>
    %cst_1 = arith.constant 0.0204081628 : f32
    %3 = vector.broadcast %cst_1 : f32 to vector<736x1xf32>
    %4 = arith.mulf %2, %3 : vector<736x1xf32>
    %5 = vector.broadcast %4 : vector<736x1xf32> to vector<736x49xf32>
    %6 = arith.subf %0, %5 : vector<736x49xf32>
    %7 = arith.mulf %6, %6 : vector<736x49xf32>
    %cst_2 = arith.constant dense<0.000000e+00> : vector<736xf32>
    %8 = vector.multi_reduction <add>, %7, %cst_2 [1] : vector<736x49xf32> to vector<736xf32>
    %9 = vector.shape_cast %8 : vector<736xf32> to vector<736x1xf32>
    %cst_3 = arith.constant 0.0204081628 : f32
    %10 = vector.broadcast %cst_3 : f32 to vector<736x1xf32>
    %11 = arith.mulf %9, %10 : vector<736x1xf32>
    %c0_4 = arith.constant 0 : index
    %c0_5 = arith.constant 0 : index
    %12 = vector.load %arg1[%c0_4, %c0_5] : memref<736x1xf32, #tpu.memory_space<vmem>>, vector<736x1xf32>
    %cst_6 = arith.constant 9.99999974E-6 : f32
    %13 = vector.broadcast %cst_6 : f32 to vector<736x1xf32>
    %14 = arith.addf %11, %13 : vector<736x1xf32>
    %15 = math.rsqrt %14 : vector<736x1xf32>
    %16 = arith.mulf %12, %15 : vector<736x1xf32>
    %17 = vector.broadcast %16 : vector<736x1xf32> to vector<736x49xf32>
    %18 = arith.mulf %6, %17 : vector<736x49xf32>
    %c0_7 = arith.constant 0 : index
    %c0_8 = arith.constant 0 : index
    %19 = vector.load %arg2[%c0_7, %c0_8] : memref<736x1xf32, #tpu.memory_space<vmem>>, vector<736x1xf32>
    %20 = vector.broadcast %19 : vector<736x1xf32> to vector<736x49xf32>
    %21 = arith.addf %18, %20 : vector<736x49xf32>
    %cst_9 = arith.constant 0.000000e+00 : f32
    %22 = vector.broadcast %cst_9 : f32 to vector<736x49xf32>
    %23 = arith.maximumf %21, %22 : vector<736x49xf32>
    %c0_10 = arith.constant 0 : index
    %c0_11 = arith.constant 0 : index
    %24 = vector.load %arg3[%c0_10, %c0_11] : memref<128x736xbf16, #tpu.memory_space<vmem>>, vector<128x736xbf16>
    %25 = arith.truncf %23 : vector<736x49xf32> to vector<736x49xbf16>
    %cst_12 = arith.constant dense<0.000000e+00> : vector<128x49xf32>
    %26 = tpu.matmul %24, %25, %cst_12 {dimension_numbers = #tpu.dot_dimension_numbers<[1], [0], [0], [1], [0, 0, 1, 1], [], []>} : vector<128x736xbf16>, vector<736x49xbf16>, vector<128x49xf32> -> vector<128x49xf32>
    %c0_13 = arith.constant 0 : index
    %c0_14 = arith.constant 0 : index
    %27 = vector.load %arg4[%c0_13, %c0_14] : memref<128x49xf32, #tpu.memory_space<vmem>>, vector<128x49xf32>
    tpu.vector_store %arg4[%c0_13, %c0_14], %26 {strides = array<i32>} : memref<128x49xf32, #tpu.memory_space<vmem>>, vector<128x49xf32>,
    return
  }
}

</mosaic_0001>

<bundles_post_ra>
// kernel: bn_relu_conv1x1.1
= control target key start
LH: loop header
LB: loop body
LE: loop exit
PB: predicated region body
PF: predicated region fallthrough
CT: control target
= control target key end

     0   :  { %vm110_vm0 = vcmask 400384   ;;  %s9868_s0 = inlined_call_operand.vmem [shape: f32[736,49], index: 0, kind: input, shape index: {}]   ;;  %s9869_s1 = inlined_call_operand.vmem [shape: f32[736,1], index: 1, kind: input, shape index: {}]   ;;  %s9870_s2 = inlined_call_operand.vmem [shape: f32[736,1], index: 2, kind: input, shape index: {}]   ;;  %s9871_s3 = inlined_call_operand.vmem [shape: bf16[128,736], index: 3, kind: input, shape index: {}]   ;;  %s9872_s4 = inlined_call_operand.vmem [shape: f32[128,49], index: 4, kind: output, shape index: {}]  }
   0x1   :  { %v4679_v0 = vld [vmem:[%s9868_s0 + $0x20] sm:$0xff]  ;;  %v4684_v1 = vld [vmem:[%s9868_s0 + $0x10] sm:$0xff]  ;;  %v4700_v6 = vld [vmem:[%s9868_s0 + $0x28] sm:$0xff] }
   0x2   :  { %v4689_v2 = vld [vmem:[%s9868_s0] sm:$0xff]  ;;  %v123_v3 = vsel %vm110_vm0, %v4679_v0, 0.0  ;;  %v117_v4 = vsel %vm110_vm0, %v4684_v1, 0.0  ;;  %v4705_v7 = vld [vmem:[%s9868_s0 + $0x18] sm:$0xff]  ;;  %v4710_v8 = vld [vmem:[%s9868_s0 + $0x8] sm:$0xff]  ;;  %v126_v9 = vsel %vm110_vm0, %v4700_v6, 0.0 }
   0x3   :  { %v111_v5 = vsel %vm110_vm0, %v4689_v2, 0.0  ;;  %124 = vadd.xlane.f32.xlu2 %v123_v3  ;;  %118 = vadd.xlane.f32.xlu1 %v117_v4  ;;  %v120_v10 = vsel %vm110_vm0, %v4705_v7, 0.0  ;;  %v114_v11 = vsel %vm110_vm0, %v4710_v8, 0.0  ;;  %v4721_v12 = vld [vmem:[%s9868_s0 + $0x40] sm:$0xff]  ;;  %v4726_v13 = vld [vmem:[%s9868_s0 + $0x38] sm:$0xff]  ;;  %v4731_v14 = vld [vmem:[%s9868_s0 + $0x30] sm:$0xff] }
   0x4   :  { %112 = vadd.xlane.f32.xlu0 %v111_v5  ;;  %v135_v15 = vsel %vm110_vm0, %v4721_v12, 0.0  ;;  %v132_v16 = vsel %vm110_vm0, %v4726_v13, 0.0  ;;  %v129_v17 = vsel %vm110_vm0, %v4731_v14, 0.0  ;;  %v4742_v18 = vld [vmem:[%s9868_s0 + $0x58] sm:$0xff]  ;;  %v4747_v19 = vld [vmem:[%s9868_s0 + $0x50] sm:$0xff]  ;;  %v4752_v20 = vld [vmem:[%s9868_s0 + $0x48] sm:$0xff] }
   0x5   :  { %v144_v21 = vsel %vm110_vm0, %v4742_v18, 0.0  ;;  %v141_v22 = vsel %vm110_vm0, %v4747_v19, 0.0  ;;  %v138_v23 = vsel %vm110_vm0, %v4752_v20, 0.0  ;;  %v4763_v24 = vld [vmem:[%s9868_s0 + $0x70] sm:$0xff]  ;;  %v4768_v25 = vld [vmem:[%s9868_s0 + $0x68] sm:$0xff]  ;;  %v4773_v26 = vld [vmem:[%s9868_s0 + $0x60] sm:$0xff] }
   0x6   :  { %v153_v27 = vsel %vm110_vm0, %v4763_v24, 0.0  ;;  %v150_v28 = vsel %vm110_vm0, %v4768_v25, 0.0  ;;  %v147_v29 = vsel %vm110_vm0, %v4773_v26, 0.0  ;;  %v4784_v30 = vld [vmem:[%s9868_s0 + $0x88] sm:$0xff]  ;;  %v4789_v31 = vld [vmem:[%s9868_s0 + $0x80] sm:$0xff]  ;;  %v4794_v32 = vld [vmem:[%s9868_s0 + $0x78] sm:$0xff] }
   0x7   :  { %v162_v33 = vsel %vm110_vm0, %v4784_v30, 0.0  ;;  %v159_v34 = vsel %vm110_vm0, %v4789_v31, 0.0  ;;  %v156_v35 = vsel %vm110_vm0, %v4794_v32, 0.0  ;;  %v4805_v36 = vld [vmem:[%s9868_s0 + $0xa0] sm:$0xff]  ;;  %v4810_v37 = vld [vmem:[%s9868_s0 + $0x98] sm:$0xff]  ;;  %v4815_v38 = vld [vmem:[%s9868_s0 + $0x90] sm:$0xff] }
   0x8   :  { %v171_v39 = vsel %vm110_vm0, %v4805_v36, 0.0  ;;  %v168_v40 = vsel %vm110_vm0, %v4810_v37, 0.0  ;;  %v165_v41 = vsel %vm110_vm0, %v4815_v38, 0.0  ;;  %v4826_v42 = vld [vmem:[%s9868_s0 + $0xb8] sm:$0xff]  ;;  %v4831_v43 = vld [vmem:[%s9868_s0 + $0xb0] sm:$0xff]  ;;  %v4836_v44 = vld [vmem:[%s9868_s0 + $0xa8] sm:$0xff] }
   0x9   :  { %v180_v45 = vsel %vm110_vm0, %v4826_v42, 0.0  ;;  %v177_v46 = vsel %vm110_vm0, %v4831_v43, 0.0  ;;  %v174_v47 = vsel %vm110_vm0, %v4836_v44, 0.0  ;;  %v4847_v48 = vld [vmem:[%s9868_s0 + $0xd0] sm:$0xff]  ;;  %v4852_v49 = vld [vmem:[%s9868_s0 + $0xc8] sm:$0xff]  ;;  %v4857_v50 = vld [vmem:[%s9868_s0 + $0xc0] sm:$0xff] }
   0xa   :  { %10014 = vst [vmem:[#allocation2_spill] sm:$0xff] %v4847_v48  ;;  %v189_v51 = vsel %vm110_vm0, %v4847_v48, 0.0  ;;  %v186_v52 = vsel %vm110_vm0, %v4852_v49, 0.0  ;;  %v183_v53 = vsel %vm110_vm0, %v4857_v50, 0.0  ;;  %v4868_v54 = vld [vmem:[%s9868_s0 + $0xe8] sm:$0xff]  ;;  %v4873_v55 = vld [vmem:[%s9868_s0 + $0xe0] sm:$0xff] }
   0xb   :  { %127 = vadd.xlane.f32.xlu2 %v126_v9  ;;  %121 = vadd.xlane.f32.xlu1 %v120_v10  ;;  %10015 = vst [vmem:[#allocation3_spill] sm:$0xff] %v4852_v49  ;;  %v4878_v56 = vld [vmem:[%s9868_s0 + $0xd8] sm:$0xff]  ;;  %v198_v57 = vsel %vm110_vm0, %v4868_v54, 0.0  ;;  %v195_v58 = vsel %vm110_vm0, %v4873_v55, 0.0  ;;  %v4889_v60 = vld [vmem:[%s9868_s0 + $0x100] sm:$0xff]  ;;  %v4899_v62 = vld [vmem:[%s9868_s0 + $0xf0] sm:$0xff] }
   0xc   :  { %115 = vadd.xlane.f32.xlu0 %v114_v11  ;;  %10016 = vst [vmem:[#allocation4_spill] sm:$0xff] %v4868_v54  ;;  %v192_v59 = vsel %vm110_vm0, %v4878_v56, 0.0  ;;  %v4894_v61 = vld [vmem:[%s9868_s0 + $0xf8] sm:$0xff]  ;;  %v207_v63 = vsel %vm110_vm0, %v4889_v60, 0.0  ;;  %v201_v4 = vsel %vm110_vm0, %v4899_v62, 0.0  ;;  %v4915_v9 = vld [vmem:[%s9868_s0 + $0x110] sm:$0xff] }
   0xd   :  { %10017 = vst [vmem:[#allocation5_spill] sm:$0xff] %v4873_v55  ;;  %v204_v3 = vsel %vm110_vm0, %v4894_v61, 0.0  ;;  %v4910_v5 = vld [vmem:[%s9868_s0 + $0x118] sm:$0xff]  ;;  %v4920_v10 = vld [vmem:[%s9868_s0 + $0x108] sm:$0xff]  ;;  %v92_v55 = vld [vmem:[%s9868_s0 + $0x250] sm:$0xff] }
   0xe   :  { %10018 = vst [vmem:[#allocation6_spill] sm:$0xff] %v4878_v56  ;;  %v216_v11 = vsel %vm110_vm0, %v4910_v5, 0.0 }
   0xf   :  { %10019 = vst [vmem:[#allocation7_spill] sm:$0xff] %v4889_v60 }
  0x10   :  { %10020 = vst [vmem:[#allocation8_spill] sm:$0xff] %v4894_v61  ;;  %v5210_v61 = vld [vmem:[%s9868_s0 + $0x238] sm:$0xff] }
  0x11   :  { %10021 = vst [vmem:[#allocation9_spill] sm:$0xff] %v4899_v62  ;;  %v91_v62 = vld [vmem:[%s9868_s0 + $0x248] sm:$0xff] }
  0x12   :  { %10022 = vst [vmem:[#allocation10_spill] sm:$0xff] %v4910_v5 }
  0x13   :  { %136 = vadd.xlane.f32.xlu2 %v135_v15  ;;  %133 = vadd.xlane.f32.xlu1 %v132_v16  ;;  %10023 = vst [vmem:[#allocation11_spill] sm:$0xff] %v4915_v9  ;;  %v213_v15 = vsel %vm110_vm0, %v4915_v9, 0.0  ;;  %v210_v16 = vsel %vm110_vm0, %v4920_v10, 0.0  ;;  %v5183_v9 = vld [vmem:[%s9868_s0 + $0x220] sm:$0xff] }
  0x14   :  { %130 = vadd.xlane.f32.xlu0 %v129_v17  ;;  %10024 = vst [vmem:[#allocation12_spill] sm:$0xff] %v4920_v10  ;;  %v4931_v17 = vld [vmem:[%s9868_s0 + $0x130] sm:$0xff] }
  0x15   :  { %10025 = vst [vmem:[#allocation13_spill] sm:$0xff] %v4931_v17  ;;  %v88_v10 = vld [vmem:[%s9868_s0 + $0x230] sm:$0xff] }
  0x16   :  { %10055 = vst [vmem:[#allocation43_spill] sm:$0xff] %v5183_v9 }
  0x17   :  { %10058 = vst [vmem:[#allocation46_spill] sm:$0xff] %v5210_v61 }
  0x1b   :  { %145 = vadd.xlane.f32.xlu2 %v144_v21  ;;  %142 = vadd.xlane.f32.xlu1 %v141_v22  ;;  %v4936_v21 = vld [vmem:[%s9868_s0 + $0x128] sm:$0xff]  ;;  %v4941_v22 = vld [vmem:[%s9868_s0 + $0x120] sm:$0xff] }
  0x1c   :  { %139 = vadd.xlane.f32.xlu0 %v138_v23  ;;  %10026 = vst [vmem:[#allocation14_spill] sm:$0xff] %v4936_v21  ;;  %v225_v23 = vsel %vm110_vm0, %v4931_v17, 0.0 }
  0x1d   :  { %10027 = vst [vmem:[#allocation15_spill] sm:$0xff] %v4941_v22 }
  0x23   :  { %154 = vadd.xlane.f32.xlu2 %v153_v27  ;;  %151 = vadd.xlane.f32.xlu1 %v150_v28  ;;  %v222_v27 = vsel %vm110_vm0, %v4936_v21, 0.0  ;;  %v219_v28 = vsel %vm110_vm0, %v4941_v22, 0.0  ;;  %v5156_v21 = vld [vmem:[%s9868_s0 + $0x208] sm:$0xff]  ;;  %v5188_v22 = vld [vmem:[%s9868_s0 + $0x218] sm:$0xff] }
  0x24   :  { %148 = vadd.xlane.f32.xlu0 %v147_v29  ;;  %v4952_v29 = vld [vmem:[%s9868_s0 + $0x148] sm:$0xff]  ;;  %10052 = vst [vmem:[#allocation40_spill] sm:$0xff] %v5156_v21 }
  0x25   :  { %10028 = vst [vmem:[#allocation16_spill] sm:$0xff] %v4952_v29 }
  0x26   :  { %10056 = vst [vmem:[#allocation44_spill] sm:$0xff] %v5188_v22 }
  0x2b   :  { %163 = vadd.xlane.f32.xlu2 %v162_v33  ;;  %160 = vadd.xlane.f32.xlu1 %v159_v34  ;;  %v4957_v33 = vld [vmem:[%s9868_s0 + $0x140] sm:$0xff]  ;;  %v4962_v34 = vld [vmem:[%s9868_s0 + $0x138] sm:$0xff] }
  0x2c   :  { %157 = vadd.xlane.f32.xlu0 %v156_v35  ;;  %10029 = vst [vmem:[#allocation17_spill] sm:$0xff] %v4957_v33  ;;  %v234_v35 = vsel %vm110_vm0, %v4952_v29, 0.0 }
  0x2d   :  { %10030 = vst [vmem:[#allocation18_spill] sm:$0xff] %v4962_v34 }
  0x33   :  { %172 = vadd.xlane.f32.xlu2 %v171_v39  ;;  %169 = vadd.xlane.f32.xlu1 %v168_v40  ;;  %v231_v39 = vsel %vm110_vm0, %v4957_v33, 0.0  ;;  %v228_v40 = vsel %vm110_vm0, %v4962_v34, 0.0  ;;  %v5129_v33 = vld [vmem:[%s9868_s0 + $0x1f0] sm:$0xff]  ;;  %v5161_v34 = vld [vmem:[%s9868_s0 + $0x200] sm:$0xff] }
  0x34   :  { %166 = vadd.xlane.f32.xlu0 %v165_v41  ;;  %v4973_v41 = vld [vmem:[%s9868_s0 + $0x160] sm:$0xff]  ;;  %10049 = vst [vmem:[#allocation37_spill] sm:$0xff] %v5129_v33 }
  0x35   :  { %10031 = vst [vmem:[#allocation19_spill] sm:$0xff] %v4973_v41 }
  0x36   :  { %10053 = vst [vmem:[#allocation41_spill] sm:$0xff] %v5161_v34 }
  0x3b   :  { %181 = vadd.xlane.f32.xlu2 %v180_v45  ;;  %178 = vadd.xlane.f32.xlu1 %v177_v46  ;;  %v4978_v45 = vld [vmem:[%s9868_s0 + $0x158] sm:$0xff]  ;;  %v4983_v46 = vld [vmem:[%s9868_s0 + $0x150] sm:$0xff] }
  0x3c   :  { %175 = vadd.xlane.f32.xlu0 %v174_v47  ;;  %10032 = vst [vmem:[#allocation20_spill] sm:$0xff] %v4978_v45  ;;  %v243_v47 = vsel %vm110_vm0, %v4973_v41, 0.0 }
  0x3d   :  { %10033 = vst [vmem:[#allocation21_spill] sm:$0xff] %v4983_v46 }
  0x43   :  { %190 = vadd.xlane.f32.xlu2 %v189_v51  ;;  %187 = vadd.xlane.f32.xlu1 %v186_v52  ;;  %v240_v51 = vsel %vm110_vm0, %v4978_v45, 0.0  ;;  %v237_v52 = vsel %vm110_vm0, %v4983_v46, 0.0  ;;  %v5102_v45 = vld [vmem:[%s9868_s0 + $0x1d8] sm:$0xff]  ;;  %v5134_v46 = vld [vmem:[%s9868_s0 + $0x1e8] sm:$0xff] }
  0x44   :  { %184 = vadd.xlane.f32.xlu0 %v183_v53  ;;  %v4994_v53 = vld [vmem:[%s9868_s0 + $0x178] sm:$0xff]  ;;  %10046 = vst [vmem:[#allocation34_spill] sm:$0xff] %v5102_v45 }
  0x45   :  { %10034 = vst [vmem:[#allocation22_spill] sm:$0xff] %v4994_v53 }
  0x46   :  { %10050 = vst [vmem:[#allocation38_spill] sm:$0xff] %v5134_v46 }
  0x4b   :  { %199 = vadd.xlane.f32.xlu2 %v198_v57  ;;  %196 = vadd.xlane.f32.xlu1 %v195_v58  ;;  %v4999_v57 = vld [vmem:[%s9868_s0 + $0x170] sm:$0xff] }
  0x4c   :  { %193 = vadd.xlane.f32.xlu0 %v192_v59  ;;  %10035 = vst [vmem:[#allocation23_spill] sm:$0xff] %v4999_v57 }
  0x53   :  { %208 = vadd.xlane.f32.xlu2 %v207_v63  ;;  %205 = vadd.xlane.f32.xlu1 %v204_v3  ;;  %v5008_v63 = vld [vmem:[%s9868_s0 + $0x168] sm:$0xff] }
  0x54   :  { %202 = vadd.xlane.f32.xlu0 %v201_v4  ;;  %10036 = vst [vmem:[#allocation24_spill] sm:$0xff] %v5008_v63  ;;  %v252_v4 = vsel %vm110_vm0, %v4994_v53, 0.0 }
  0x5b   :  { %217 = vadd.xlane.f32.xlu2 %v216_v11  ;;  %214 = vadd.xlane.f32.xlu1 %v213_v15  ;;  %v249_v11 = vsel %vm110_vm0, %v4999_v57, 0.0  ;;  %v246_v15 = vsel %vm110_vm0, %v5008_v63, 0.0  ;;  %v5075_v57 = vld [vmem:[%s9868_s0 + $0x1c0] sm:$0xff]  ;;  %v5107_v63 = vld [vmem:[%s9868_s0 + $0x1d0] sm:$0xff] }
  0x5c   :  { %211 = vadd.xlane.f32.xlu0 %v210_v16  ;;  %v5021_v16 = vld [vmem:[%s9868_s0 + $0x190] sm:$0xff]  ;;  %10043 = vst [vmem:[#allocation31_spill] sm:$0xff] %v5075_v57 }
  0x5d   :  { %10037 = vst [vmem:[#allocation25_spill] sm:$0xff] %v5021_v16 }
  0x5e   :  { %10047 = vst [vmem:[#allocation35_spill] sm:$0xff] %v5107_v63 }
  0x63   :  { %226 = vadd.xlane.f32.xlu2 %v225_v23  ;;  %223 = vadd.xlane.f32.xlu1 %v222_v27  ;;  %v5026_v23 = vld [vmem:[%s9868_s0 + $0x188] sm:$0xff] }
  0x64   :  { %220 = vadd.xlane.f32.xlu0 %v219_v28  ;;  %10038 = vst [vmem:[#allocation26_spill] sm:$0xff] %v5026_v23 }
  0x6b   :  { %235 = vadd.xlane.f32.xlu2 %v234_v35  ;;  %232 = vadd.xlane.f32.xlu1 %v231_v39  ;;  %v5035_v35 = vld [vmem:[%s9868_s0 + $0x180] sm:$0xff] }
  0x6c   :  { %229 = vadd.xlane.f32.xlu0 %v228_v40  ;;  %10039 = vst [vmem:[#allocation27_spill] sm:$0xff] %v5035_v35  ;;  %v261_v40 = vsel %vm110_vm0, %v5021_v16, 0.0 }
  0x73   :  { %244 = vadd.xlane.f32.xlu2 %v243_v47  ;;  %241 = vadd.xlane.f32.xlu1 %v240_v51  ;;  %v258_v47 = vsel %vm110_vm0, %v5026_v23, 0.0  ;;  %v255_v51 = vsel %vm110_vm0, %v5035_v35, 0.0  ;;  %v5080_v35 = vld [vmem:[%s9868_s0 + $0x1b8] sm:$0xff] }
  0x74   :  { %238 = vadd.xlane.f32.xlu0 %v237_v52  ;;  %v5048_v52 = vld [vmem:[%s9868_s0 + $0x1a8] sm:$0xff]  ;;  %10044 = vst [vmem:[#allocation32_spill] sm:$0xff] %v5080_v35 }
  0x75   :  { %10040 = vst [vmem:[#allocation28_spill] sm:$0xff] %v5048_v52 }
  0x76   :  { %v5001_v58 = vpop.xlane.xlu2 %124  ;;  %v5003_v59 = vpop.xlane.xlu1 %118 }
  0x77   :  { %v5010_v3 = vpop.xlane.xlu0 %112 }
  0x7b   :  { %253 = vadd.xlane.f32.xlu2 %v252_v4  ;;  %250 = vadd.xlane.f32.xlu1 %v249_v11  ;;  %v5053_v4 = vld [vmem:[%s9868_s0 + $0x1a0] sm:$0xff] }
  0x7c   :  { %247 = vadd.xlane.f32.xlu0 %v246_v15  ;;  %10041 = vst [vmem:[#allocation29_spill] sm:$0xff] %v5053_v4  ;;  %v267_v23 = vsel %vm110_vm0, %v5053_v4, 0.0  ;;  %v276_v4 = vsel %vm110_vm0, %v5080_v35, 0.0  ;;  %v285_v35 = vsel %vm110_vm0, %v5107_v63, 0.0  ;;  %v294_v63 = vsel %vm110_vm0, %v5134_v46, 0.0 }
  0x7d   :  { %v303_v46 = vsel %vm110_vm0, %v5161_v34, 0.0  ;;  %v312_v34 = vsel %vm110_vm0, %v5188_v22, 0.0  ;;  %v5222_v22 = vld [vmem:[%s9868_s0 + $0x228] sm:$0xff] }
  0x7e   :  { %v5028_v27 = vpop.xlane.xlu2 %127  ;;  %v5030_v28 = vpop.xlane.xlu1 %121  ;;  %10059 = vst [vmem:[#allocation47_spill] sm:$0xff] %v5222_v22 }
  0x7f   :  { %v5037_v39 = vpop.xlane.xlu0 %115 }
  0x83   :  { %262 = vadd.xlane.f32.xlu2 %v261_v40  ;;  %259 = vadd.xlane.f32.xlu1 %v258_v47  ;;  %v5062_v40 = vld [vmem:[%s9868_s0 + $0x198] sm:$0xff] }
  0x84   :  { %256 = vadd.xlane.f32.xlu0 %v255_v51  ;;  %10042 = vst [vmem:[#allocation30_spill] sm:$0xff] %v5062_v40  ;;  %v270_v51 = vsel %vm110_vm0, %v5048_v52, 0.0  ;;  %v264_v16 = vsel %vm110_vm0, %v5062_v40, 0.0 }
  0x86   :  { %v5055_v11 = vpop.xlane.xlu2 %136  ;;  %v5057_v15 = vpop.xlane.xlu1 %133 }
  0x87   :  { %v5064_v47 = vpop.xlane.xlu0 %130 }
  0x8b   :  { %271 = vadd.xlane.f32.xlu2 %v270_v51  ;;  %268 = vadd.xlane.f32.xlu1 %v267_v23  ;;  %v5089_v51 = vld [vmem:[%s9868_s0 + $0x1b0] sm:$0xff]  ;;  %v279_v23 = vsel %vm110_vm0, %v5075_v57, 0.0 }
  0x8c   :  { %265 = vadd.xlane.f32.xlu0 %v264_v16  ;;  %10045 = vst [vmem:[#allocation33_spill] sm:$0xff] %v5089_v51  ;;  %v273_v40 = vsel %vm110_vm0, %v5089_v51, 0.0 }
  0x8e   :  { %v5082_v52 = vpop.xlane.xlu2 %145  ;;  %v5084_v53 = vpop.xlane.xlu1 %142 }
  0x8f   :  { %v5091_v16 = vpop.xlane.xlu0 %139 }
  0x93   :  { %280 = vadd.xlane.f32.xlu2 %v279_v23  ;;  %277 = vadd.xlane.f32.xlu1 %v276_v4  ;;  %v5116_v23 = vld [vmem:[%s9868_s0 + $0x1c8] sm:$0xff] }
  0x94   :  { %274 = vadd.xlane.f32.xlu0 %v273_v40  ;;  %10048 = vst [vmem:[#allocation36_spill] sm:$0xff] %v5116_v23  ;;  %v288_v40 = vsel %vm110_vm0, %v5102_v45, 0.0  ;;  %v282_v51 = vsel %vm110_vm0, %v5116_v23, 0.0 }
  0x96   :  { %v5109_v57 = vpop.xlane.xlu2 %154  ;;  %v5111_v41 = vpop.xlane.xlu1 %151 }
  0x97   :  { %v5118_v4 = vpop.xlane.xlu0 %148 }
  0x9b   :  { %289 = vadd.xlane.f32.xlu2 %v288_v40  ;;  %286 = vadd.xlane.f32.xlu1 %v285_v35  ;;  %v5143_v40 = vld [vmem:[%s9868_s0 + $0x1e0] sm:$0xff] }
  0x9c   :  { %283 = vadd.xlane.f32.xlu0 %v282_v51  ;;  %10051 = vst [vmem:[#allocation39_spill] sm:$0xff] %v5143_v40  ;;  %v297_v51 = vsel %vm110_vm0, %v5129_v33, 0.0  ;;  %v291_v23 = vsel %vm110_vm0, %v5143_v40, 0.0 }
  0x9e   :  { %v5136_v45 = vpop.xlane.xlu2 %163  ;;  %v5138_v29 = vpop.xlane.xlu1 %160 }
  0x9f   :  { %v5145_v35 = vpop.xlane.xlu0 %157 }
  0xa3   :  { %298 = vadd.xlane.f32.xlu2 %v297_v51  ;;  %295 = vadd.xlane.f32.xlu1 %v294_v63  ;;  %v5170_v51 = vld [vmem:[%s9868_s0 + $0x1f8] sm:$0xff] }
  0xa4   :  { %292 = vadd.xlane.f32.xlu0 %v291_v23  ;;  %10054 = vst [vmem:[#allocation42_spill] sm:$0xff] %v5170_v51  ;;  %v306_v23 = vsel %vm110_vm0, %v5156_v21, 0.0  ;;  %v300_v40 = vsel %vm110_vm0, %v5170_v51, 0.0 }
  0xa6   :  { %v5163_v33 = vpop.xlane.xlu2 %172  ;;  %v5165_v17 = vpop.xlane.xlu1 %169 }
  0xa7   :  { %v5172_v63 = vpop.xlane.xlu0 %166 }
  0xab   :  { %307 = vadd.xlane.f32.xlu2 %v306_v23  ;;  %304 = vadd.xlane.f32.xlu1 %v303_v46  ;;  %v5197_v23 = vld [vmem:[%s9868_s0 + $0x210] sm:$0xff] }
  0xac   :  { %301 = vadd.xlane.f32.xlu0 %v300_v40  ;;  %10057 = vst [vmem:[#allocation45_spill] sm:$0xff] %v5197_v23  ;;  %v315_v40 = vsel %vm110_vm0, %v5183_v9, 0.0  ;;  %v309_v51 = vsel %vm110_vm0, %v5197_v23, 0.0  ;;  %v318_v23 = vsel %vm110_vm0, %v5222_v22, 0.0  ;;  %v95_v22 = vld [vmem:[%s9868_s0 + $0x268] sm:$0xff] }
  0xae   :  { %v5190_v21 = vpop.xlane.xlu2 %181  ;;  %v5192_v5 = vpop.xlane.xlu1 %178 }
  0xaf   :  { %v5199_v46 = vpop.xlane.xlu0 %175 }
  0xb3   :  { %316 = vadd.xlane.f32.xlu2 %v315_v40  ;;  %313 = vadd.xlane.f32.xlu1 %v312_v34  ;;  %v321_v40 = vsel %vm110_vm0, %v88_v10, 0.0  ;;  %v5244_v10 = vld [vmem:[%s9868_s0 + $0x240] sm:$0xff] }
  0xb4   :  { %310 = vadd.xlane.f32.xlu0 %v309_v51  ;;  %v324_v51 = vsel %vm110_vm0, %v5210_v61, 0.0  ;;  %10062 = vst [vmem:[#allocation50_spill] sm:$0xff] %v5244_v10  ;;  %v327_v61 = vsel %vm110_vm0, %v5244_v10, 0.0  ;;  %v98_v10 = vld [vmem:[%s9868_s0 + $0x280] sm:$0xff] }
  0xb6   :  { %v5215_v60 = vpop.xlane.xlu2 %190  ;;  %v5217_v9 = vpop.xlane.xlu1 %187 }
  0xb7   :  { %v5224_v34 = vpop.xlane.xlu0 %184 }
  0xbb   :  { %325 = vadd.xlane.f32.xlu2 %v324_v51  ;;  %322 = vadd.xlane.f32.xlu1 %v321_v40  ;;  %v330_v40 = vsel %vm110_vm0, %v91_v62, 0.0 }
  0xbc   :  { %319 = vadd.xlane.f32.xlu0 %v318_v23  ;;  %v333_v23 = vsel %vm110_vm0, %v92_v55, 0.0  ;;  %v5265_v55 = vld [vmem:[%s9868_s0 + $0x258] sm:$0xff] }
  0xbd   :  { %10065 = vst [vmem:[#allocation53_spill] sm:$0xff] %v5265_v55 }
  0xbe   :  { %v5237_v54 = vpop.xlane.xlu2 %199  ;;  %v5239_v49 = vpop.xlane.xlu1 %196 }
  0xbf   :  { %10060 = vst [vmem:[#allocation48_spill] sm:$0xff] %v5237_v54  ;;  %v5246_v51 = vpop.xlane.xlu0 %193 }
  0xc0   :  { %10061 = vst [vmem:[#allocation49_spill] sm:$0xff] %v5239_v49  ;;  %v94_v49 = vld [vmem:[%s9868_s0 + $0x260] sm:$0xff] }
  0xc3   :  { %334 = vadd.xlane.f32.xlu2 %v333_v23  ;;  %331 = vadd.xlane.f32.xlu1 %v330_v40  ;;  %v339_v23 = vsel %vm110_vm0, %v94_v49, 0.0  ;;  %v336_v40 = vsel %vm110_vm0, %v5265_v55, 0.0  ;;  %v5286_v49 = vld [vmem:[%s9868_s0 + $0x270] sm:$0xff]  ;;  %v101_v55 = vld [vmem:[%s9868_s0 + $0x298] sm:$0xff] }
  0xc4   :  { %328 = vadd.xlane.f32.xlu0 %v327_v61  ;;  %v342_v61 = vsel %vm110_vm0, %v95_v22, 0.0  ;;  %10069 = vst [vmem:[#allocation57_spill] sm:$0xff] %v5286_v49 }
  0xc6   :  { %v5258_v54 = vpop.xlane.xlu2 %208  ;;  %v5260_v56 = vpop.xlane.xlu1 %205 }
  0xc7   :  { %10063 = vst [vmem:[#allocation51_spill] sm:$0xff] %v5258_v54  ;;  %v5267_v62 = vpop.xlane.xlu0 %202 }
  0xc8   :  { %10064 = vst [vmem:[#allocation52_spill] sm:$0xff] %v5260_v56  ;;  %v97_v56 = vld [vmem:[%s9868_s0 + $0x278] sm:$0xff] }
  0xc9   :  { %10066 = vst [vmem:[#allocation54_spill] sm:$0xff] %v5267_v62 }
  0xcb   :  { %343 = vadd.xlane.f32.xlu2 %v342_v61  ;;  %340 = vadd.xlane.f32.xlu1 %v339_v23  ;;  %v351_v61 = vsel %vm110_vm0, %v98_v10, 0.0  ;;  %v348_v23 = vsel %vm110_vm0, %v97_v56, 0.0  ;;  %v99_v56 = vld [vmem:[%s9868_s0 + $0x288] sm:$0xff] }
  0xcc   :  { %337 = vadd.xlane.f32.xlu0 %v336_v40  ;;  %v345_v40 = vsel %vm110_vm0, %v5286_v49, 0.0  ;;  %v104_v49 = vld [vmem:[%s9868_s0 + $0x2b0] sm:$0xff] }
  0xce   :  { %v5279_v54 = vpop.xlane.xlu2 %217  ;;  %v5281_v62 = vpop.xlane.xlu1 %214 }
  0xcf   :  { %10067 = vst [vmem:[#allocation55_spill] sm:$0xff] %v5279_v54  ;;  %v5288_v22 = vpop.xlane.xlu0 %211 }
  0xd0   :  { %10068 = vst [vmem:[#allocation56_spill] sm:$0xff] %v5281_v62  ;;  %v100_v62 = vld [vmem:[%s9868_s0 + $0x290] sm:$0xff] }
  0xd1   :  { %10070 = vst [vmem:[#allocation58_spill] sm:$0xff] %v5288_v22 }
  0xd3   :  { %352 = vadd.xlane.f32.xlu2 %v351_v61  ;;  %349 = vadd.xlane.f32.xlu1 %v348_v23  ;;  %v360_v61 = vsel %vm110_vm0, %v101_v55, 0.0  ;;  %v357_v23 = vsel %vm110_vm0, %v100_v62, 0.0  ;;  %v102_v55 = vld [vmem:[%s9868_s0 + $0x2a0] sm:$0xff] }
  0xd4   :  { %346 = vadd.xlane.f32.xlu0 %v345_v40  ;;  %v354_v40 = vsel %vm110_vm0, %v99_v56, 0.0  ;;  %v369_v56 = vsel %vm110_vm0, %v104_v49, 0.0 }
  0xd6   :  { %v5300_v54 = vpop.xlane.xlu2 %226  ;;  %v5302_v22 = vpop.xlane.xlu1 %223 }
  0xd7   :  { %10071 = vst [vmem:[#allocation59_spill] sm:$0xff] %v5300_v54  ;;  %v5307_v10 = vpop.xlane.xlu0 %220 }
  0xd8   :  { %10072 = vst [vmem:[#allocation60_spill] sm:$0xff] %v5302_v22  ;;  %v103_v22 = vld [vmem:[%s9868_s0 + $0x2a8] sm:$0xff] }
  0xd9   :  { %10073 = vst [vmem:[#allocation61_spill] sm:$0xff] %v5307_v10 }
  0xdb   :  { %361 = vadd.xlane.f32.xlu2 %v360_v61  ;;  %358 = vadd.xlane.f32.xlu1 %v357_v23  ;;  %v366_v61 = vsel %vm110_vm0, %v103_v22, 0.0  ;;  %v363_v23 = vsel %vm110_vm0, %v102_v55, 0.0  ;;  %v105_v22 = vld [vmem:[%s9868_s0 + $0x2b8] sm:$0xff] }
  0xdc   :  { %355 = vadd.xlane.f32.xlu0 %v354_v40  ;;  %v107_v40 = vld [vmem:[%s9868_s0 + $0x2c8] sm:$0xff] }
  0xde   :  { %v5318_v54 = vpop.xlane.xlu2 %235  ;;  %v5320_v10 = vpop.xlane.xlu1 %232 }
  0xdf   :  { %10074 = vst [vmem:[#allocation62_spill] sm:$0xff] %v5318_v54  ;;  %v5325_v62 = vpop.xlane.xlu0 %229  ;;  %v387_v54 = vmul.f32 0.020408163, %v5010_v3  ;;  %v109_v3 = vld [vmem:[%s9868_s0 + $0x2d8] sm:$0xff] }
  0xe0   :  { %10075 = vst [vmem:[#allocation63_spill] sm:$0xff] %v5320_v10  ;;  %v106_v10 = vld [vmem:[%s9868_s0 + $0x2c0] sm:$0xff] }
  0xe1   :  { %10076 = vst [vmem:[#allocation64_spill] sm:$0xff] %v5325_v62  ;;  %v5350_v48 = vsub.f32 %v4689_v2, %v387_v54  ;;  %v108_v2 = vld [vmem:[%s9868_s0 + $0x2d0] sm:$0xff] }
  0xe3   :  { %370 = vadd.xlane.f32.xlu2 %v369_v56  ;;  %367 = vadd.xlane.f32.xlu1 %v366_v61  ;;  %v378_v56 = vsel %vm110_vm0, %v107_v40, 0.0  ;;  %v375_v61 = vsel %vm110_vm0, %v106_v10, 0.0  ;;  %10080 = vst [vmem:[#allocation68_spill] sm:$0xff] %v5350_v48  ;;  %v571_v54 = vmul.f32 %v5350_v48, %v5350_v48  ;;  %v388_v10 = vmul.f32 0.020408163, %v5037_v39 }
  0xe4   :  { %364 = vadd.xlane.f32.xlu0 %v363_v23  ;;  %v372_v23 = vsel %vm110_vm0, %v105_v22, 0.0  ;;  %v392_v39 = vmul.f32 0.020408163, %v5028_v27 }
  0xe6   :  { %v5337_v62 = vpop.xlane.xlu2 %244  ;;  %v5339_v49 = vpop.xlane.xlu1 %241  ;;  %v5397_v27 = vsub.f32 %v4700_v6, %v392_v39  ;;  %v396_v6 = vmul.f32 0.020408163, %v5091_v16 }
  0xe7   :  { %10077 = vst [vmem:[#allocation65_spill] sm:$0xff] %v5337_v62  ;;  %v5344_v55 = vpop.xlane.xlu0 %238  ;;  %v390_v62 = vmul.f32 0.020408163, %v5030_v28 }
  0xe8   :  { %10078 = vst [vmem:[#allocation66_spill] sm:$0xff] %v5339_v49  ;;  %v389_v49 = vmul.f32 0.020408163, %v5003_v59  ;;  %v381_v59 = vsel %vm110_vm0, %v108_v2, 0.0  ;;  %v576_v39 = vmul.f32 %v5397_v27, %v5397_v27  ;;  %v5427_v16 = vsub.f32 %v4752_v20, %v396_v6 }
  0xe9   :  { %10079 = vst [vmem:[#allocation67_spill] sm:$0xff] %v5344_v55  ;;  %v397_v6 = vmul.f32 0.020408163, %v5084_v53 }
  0xea   :  { %v5372_v28 = vsub.f32 %v4684_v1, %v389_v49  ;;  %10085 = vst [vmem:[#allocation73_spill] sm:$0xff] %v5397_v27  ;;  %v10140_v27 = vld [vmem:[#allocation64_spill] sm:$0xff] }
  0xeb   :  { %379 = vadd.xlane.f32.xlu2 %v378_v56  ;;  %376 = vadd.xlane.f32.xlu1 %v375_v61  ;;  %v384_v56 = vsel %vm110_vm0, %v109_v3, 0.0  ;;  %v5375_v61 = vsub.f32 %v4705_v7, %v390_v62  ;;  %v393_v3 = vmul.f32 0.020408163, %v5064_v47  ;;  %10089 = vst [vmem:[#allocation77_spill] sm:$0xff] %v5427_v16 }
  0xec   :  { %373 = vadd.xlane.f32.xlu0 %v372_v23  ;;  %10082 = vst [vmem:[#allocation70_spill] sm:$0xff] %v5372_v28  ;;  %v663_v23 = vsel %vm110_vm0, %v571_v54, 0.0  ;;  %v573_v1 = vmul.f32 %v5372_v28, %v5372_v28  ;;  %v10131_v28 = vld [vmem:[#allocation61_spill] sm:$0xff] }
  0xed   :  { %10083 = vst [vmem:[#allocation71_spill] sm:$0xff] %v5375_v61  ;;  %v574_v7 = vmul.f32 %v5375_v61, %v5375_v61  ;;  %v5400_v47 = vsub.f32 %v4731_v14, %v393_v3  ;;  %v394_v3 = vmul.f32 0.020408163, %v5057_v15  ;;  %v10137_v61 = vld [vmem:[#allocation11_spill] sm:$0xff] }
  0xee   :  { %v5357_v55 = vpop.xlane.xlu2 %253  ;;  %v5359_v40 = vpop.xlane.xlu1 %250  ;;  %v669_v54 = vsel %vm110_vm0, %v573_v1, 0.0 }
  0xef   :  { %10081 = vst [vmem:[#allocation69_spill] sm:$0xff] %v5359_v40  ;;  %v5367_v22 = vpop.xlane.xlu0 %247  ;;  %v5379_v40 = vsub.f32 %v4710_v8, %v388_v10  ;;  %v391_v8 = vmul.f32 0.020408163, %v5001_v58  ;;  %v672_v10 = vsel %vm110_vm0, %v574_v7, 0.0 }
  0xf0   :  { %10086 = vst [vmem:[#allocation74_spill] sm:$0xff] %v5400_v47 }
  0xf1   :  { %10084 = vst [vmem:[#allocation72_spill] sm:$0xff] %v5379_v40  ;;  %v572_v49 = vmul.f32 %v5379_v40, %v5379_v40 }
  0xf3   :  { %385 = vadd.xlane.f32.xlu1 %v384_v56  ;;  %664 = vadd.xlane.f32.xlu2 %v663_v23  ;;  %v5405_v56 = vsub.f32 %v4679_v0, %v391_v8  ;;  %v666_v58 = vsel %vm110_vm0, %v572_v49, 0.0  ;;  %v577_v0 = vmul.f32 %v5400_v47, %v5400_v47  ;;  %v678_v8 = vsel %vm110_vm0, %v576_v39, 0.0 }
  0xf4   :  { %382 = vadd.xlane.f32.xlu0 %v381_v59  ;;  %v395_v59 = vmul.f32 0.020408163, %v5055_v11 }
  0xf5   :  { %10087 = vst [vmem:[#allocation75_spill] sm:$0xff] %v5405_v56  ;;  %v575_v7 = vmul.f32 %v5405_v56, %v5405_v56  ;;  %v681_v49 = vsel %vm110_vm0, %v577_v0, 0.0 }
  0xf6   :  { %v5383_v48 = vpop.xlane.xlu2 %262  ;;  %v5385_v2 = vpop.xlane.xlu1 %259  ;;  %v5424_v11 = vsub.f32 %v4721_v12, %v395_v59  ;;  %v399_v12 = vmul.f32 0.020408163, %v5118_v4 }
  0xf7   :  { %v5392_v62 = vpop.xlane.xlu0 %256  ;;  %v675_v15 = vsel %vm110_vm0, %v575_v7, 0.0 }
  0xf8   :  { %10088 = vst [vmem:[#allocation76_spill] sm:$0xff] %v5424_v11  ;;  %v579_v59 = vmul.f32 %v5424_v11, %v5424_v11  ;;  %v5454_v4 = vsub.f32 %v4773_v26, %v399_v12  ;;  %v400_v12 = vmul.f32 0.020408163, %v5111_v41  ;;  %v10149_v11 = vld [vmem:[#allocation67_spill] sm:$0xff] }
  0xfa   :  { %10092 = vst [vmem:[#allocation80_spill] sm:$0xff] %v5454_v4 }
  0xfb   :  { %670 = vadd.xlane.f32.xlu1 %v669_v54  ;;  %673 = vadd.xlane.f32.xlu2 %v672_v10  ;;  %v5432_v54 = vsub.f32 %v4726_v13, %v394_v3  ;;  %v398_v10 = vmul.f32 0.020408163, %v5082_v52  ;;  %v580_v13 = vmul.f32 %v5427_v16, %v5427_v16  ;;  %v687_v3 = vsel %vm110_vm0, %v579_v59, 0.0  ;;  %v10155_v16 = vld [vmem:[#allocation17_spill] sm:$0xff] }
  0xfc   :  { %667 = vadd.xlane.f32.xlu0 %v666_v58 }
  0xfd   :  { %10090 = vst [vmem:[#allocation78_spill] sm:$0xff] %v5432_v54  ;;  %v578_v0 = vmul.f32 %v5432_v54, %v5432_v54  ;;  %v5451_v52 = vsub.f32 %v4742_v18, %v398_v10  ;;  %v690_v7 = vsel %vm110_vm0, %v580_v13, 0.0  ;;  %v402_v18 = vmul.f32 0.020408163, %v5145_v35  ;;  %v10146_v54 = vld [vmem:[#allocation14_spill] sm:$0xff] }
  0xfe   :  { %v5410_v23 = vpop.xlane.xlu2 %271  ;;  %v5412_v14 = vpop.xlane.xlu1 %268 }
  0xff   :  { %v5419_v1 = vpop.xlane.xlu0 %265  ;;  %10091 = vst [vmem:[#allocation79_spill] sm:$0xff] %v5451_v52  ;;  %v684_v53 = vsel %vm110_vm0, %v578_v0, 0.0  ;;  %v582_v10 = vmul.f32 %v5451_v52, %v5451_v52  ;;  %v5481_v35 = vsub.f32 %v4794_v32, %v402_v18  ;;  %v403_v18 = vmul.f32 0.020408163, %v5138_v29  ;;  %v10163_v52 = vld [vmem:[#allocation20_spill] sm:$0xff] }
 0x101   :  { %10095 = vst [vmem:[#allocation83_spill] sm:$0xff] %v5481_v35 }
 0x103   :  { %679 = vadd.xlane.f32.xlu1 %v678_v8  ;;  %682 = vadd.xlane.f32.xlu2 %v681_v49  ;;  %v5459_v8 = vsub.f32 %v4747_v19, %v397_v6  ;;  %v401_v49 = vmul.f32 0.020408163, %v5109_v57  ;;  %v583_v19 = vmul.f32 %v5454_v4, %v5454_v4  ;;  %v696_v6 = vsel %vm110_vm0, %v582_v10, 0.0 }
 0x104   :  { %676 = vadd.xlane.f32.xlu0 %v675_v15 }
 0x105   :  { %10093 = vst [vmem:[#allocation81_spill] sm:$0xff] %v5459_v8  ;;  %v581_v13 = vmul.f32 %v5459_v8, %v5459_v8  ;;  %v5478_v57 = vsub.f32 %v4763_v24, %v401_v49  ;;  %v699_v0 = vsel %vm110_vm0, %v583_v19, 0.0  ;;  %v405_v24 = vmul.f32 0.020408163, %v5172_v63 }
 0x106   :  { %v5437_v58 = vpop.xlane.xlu2 %280  ;;  %v5439_v20 = vpop.xlane.xlu1 %277 }
 0x107   :  { %v5446_v39 = vpop.xlane.xlu0 %274  ;;  %10094 = vst [vmem:[#allocation82_spill] sm:$0xff] %v5478_v57  ;;  %v693_v41 = vsel %vm110_vm0, %v581_v13, 0.0  ;;  %v585_v49 = vmul.f32 %v5478_v57, %v5478_v57  ;;  %v5508_v63 = vsub.f32 %v4815_v38, %v405_v24  ;;  %v406_v24 = vmul.f32 0.020408163, %v5165_v17 }
 0x109   :  { %10098 = vst [vmem:[#allocation86_spill] sm:$0xff] %v5508_v63 }
 0x10b   :  { %688 = vadd.xlane.f32.xlu1 %v687_v3  ;;  %691 = vadd.xlane.f32.xlu2 %v690_v7  ;;  %v5486_v3 = vsub.f32 %v4768_v25, %v400_v12  ;;  %v404_v7 = vmul.f32 0.020408163, %v5136_v45  ;;  %v586_v25 = vmul.f32 %v5481_v35, %v5481_v35  ;;  %v705_v12 = vsel %vm110_vm0, %v585_v49, 0.0 }
 0x10c   :  { %685 = vadd.xlane.f32.xlu0 %v684_v53 }
 0x10d   :  { %10096 = vst [vmem:[#allocation84_spill] sm:$0xff] %v5486_v3  ;;  %v584_v19 = vmul.f32 %v5486_v3, %v5486_v3  ;;  %v5505_v45 = vsub.f32 %v4784_v30, %v404_v7  ;;  %v708_v13 = vsel %vm110_vm0, %v586_v25, 0.0  ;;  %v408_v30 = vmul.f32 0.020408163, %v5199_v46 }
 0x10e   :  { %v5464_v15 = vpop.xlane.xlu2 %289  ;;  %v5466_v26 = vpop.xlane.xlu1 %286 }
 0x10f   :  { %v5473_v59 = vpop.xlane.xlu0 %283  ;;  %10097 = vst [vmem:[#allocation85_spill] sm:$0xff] %v5505_v45  ;;  %v702_v29 = vsel %vm110_vm0, %v584_v19, 0.0  ;;  %v588_v7 = vmul.f32 %v5505_v45, %v5505_v45  ;;  %v5535_v46 = vsub.f32 %v4836_v44, %v408_v30  ;;  %v409_v30 = vmul.f32 0.020408163, %v5192_v5 }
 0x111   :  { %10101 = vst [vmem:[#allocation89_spill] sm:$0xff] %v5535_v46 }
 0x113   :  { %697 = vadd.xlane.f32.xlu1 %v696_v6  ;;  %700 = vadd.xlane.f32.xlu2 %v699_v0  ;;  %v5513_v6 = vsub.f32 %v4789_v31, %v403_v18  ;;  %v407_v0 = vmul.f32 0.020408163, %v5163_v33  ;;  %v589_v31 = vmul.f32 %v5508_v63, %v5508_v63  ;;  %v714_v18 = vsel %vm110_vm0, %v588_v7, 0.0  ;;  %v10112_v63 = vld [vmem:[#allocation48_spill] sm:$0xff] }
 0x114   :  { %694 = vadd.xlane.f32.xlu0 %v693_v41 }
 0x115   :  { %10099 = vst [vmem:[#allocation87_spill] sm:$0xff] %v5513_v6  ;;  %v587_v25 = vmul.f32 %v5513_v6, %v5513_v6  ;;  %v5532_v33 = vsub.f32 %v4805_v36, %v407_v0  ;;  %v717_v19 = vsel %vm110_vm0, %v589_v31, 0.0  ;;  %v411_v36 = vmul.f32 0.020408163, %v5224_v34  ;;  %v10128_v6 = vld [vmem:[#allocation8_spill] sm:$0xff] }
 0x116   :  { %v5491_v53 = vpop.xlane.xlu2 %298  ;;  %v5493_v32 = vpop.xlane.xlu1 %295 }
 0x117   :  { %v5500_v10 = vpop.xlane.xlu0 %292  ;;  %10100 = vst [vmem:[#allocation88_spill] sm:$0xff] %v5532_v33  ;;  %v711_v17 = vsel %vm110_vm0, %v587_v25, 0.0  ;;  %v591_v0 = vmul.f32 %v5532_v33, %v5532_v33  ;;  %v5562_v34 = vsub.f32 %v4857_v50, %v411_v36  ;;  %v412_v36 = vmul.f32 0.020408163, %v5217_v9 }
 0x118   :  { %v416_v33 = vmul.f32 0.020408163, %v10112_v63  ;;  %v10115_v63 = vld [vmem:[#allocation4_spill] sm:$0xff] }
 0x119   :  { %10104 = vst [vmem:[#allocation92_spill] sm:$0xff] %v5562_v34 }
 0x11b   :  { %706 = vadd.xlane.f32.xlu1 %v705_v12  ;;  %709 = vadd.xlane.f32.xlu2 %v708_v13  ;;  %v5540_v12 = vsub.f32 %v4810_v37, %v406_v24  ;;  %v410_v13 = vmul.f32 0.020408163, %v5190_v21  ;;  %v592_v37 = vmul.f32 %v5535_v46, %v5535_v46  ;;  %v723_v24 = vsel %vm110_vm0, %v591_v0, 0.0  ;;  %v10113_v46 = vld [vmem:[#allocation54_spill] sm:$0xff] }
 0x11c   :  { %703 = vadd.xlane.f32.xlu0 %v702_v29 }
 0x11d   :  { %10102 = vst [vmem:[#allocation90_spill] sm:$0xff] %v5540_v12  ;;  %v590_v31 = vmul.f32 %v5540_v12, %v5540_v12  ;;  %v5559_v21 = vsub.f32 %v4826_v42, %v410_v13  ;;  %v726_v25 = vsel %vm110_vm0, %v592_v37, 0.0  ;;  %v414_v42 = vmul.f32 0.020408163, %v5246_v51  ;;  %v10108_v51 = vld [vmem:[#allocation6_spill] sm:$0xff] }
 0x11e   :  { %v5518_v41 = vpop.xlane.xlu2 %307  ;;  %v5520_v38 = vpop.xlane.xlu1 %304 }
 0x11f   :  { %v5527_v49 = vpop.xlane.xlu0 %301  ;;  %10103 = vst [vmem:[#allocation91_spill] sm:$0xff] %v5559_v21  ;;  %v720_v5 = vsel %vm110_vm0, %v590_v31, 0.0  ;;  %v594_v13 = vmul.f32 %v5559_v21, %v5559_v21  ;;  %v5589_v31 = vsub.f32 %v10108_v51, %v414_v42  ;;  %v10119_v21 = vld [vmem:[#allocation5_spill] sm:$0xff] }
 0x121   :  { %10109 = vst [vmem:[#allocation6_spill] sm:$0xff] %v5589_v31 }
 0x123   :  { %715 = vadd.xlane.f32.xlu1 %v714_v18  ;;  %718 = vadd.xlane.f32.xlu2 %v717_v19  ;;  %v5567_v18 = vsub.f32 %v4831_v43, %v409_v30  ;;  %v413_v19 = vmul.f32 0.020408163, %v5215_v60  ;;  %v595_v43 = vmul.f32 %v5562_v34, %v5562_v34  ;;  %v10106_v60 = vld [vmem:[#allocation2_spill] sm:$0xff]  ;;  %v10121_v34 = vld [vmem:[#allocation51_spill] sm:$0xff] }
 0x124   :  { %712 = vadd.xlane.f32.xlu0 %v711_v17 }
 0x125   :  { %10105 = vst [vmem:[#allocation93_spill] sm:$0xff] %v5567_v18  ;;  %v593_v37 = vmul.f32 %v5567_v18, %v5567_v18  ;;  %v5586_v30 = vsub.f32 %v10106_v60, %v413_v19  ;;  %v417_v19 = vmul.f32 0.020408163, %v10113_v46  ;;  %v10117_v46 = vld [vmem:[#allocation9_spill] sm:$0xff] }
 0x126   :  { %v5545_v29 = vpop.xlane.xlu2 %316  ;;  %v5547_v44 = vpop.xlane.xlu1 %313 }
 0x127   :  { %v5554_v7 = vpop.xlane.xlu0 %310  ;;  %10107 = vst [vmem:[#allocation2_spill] sm:$0xff] %v5586_v30  ;;  %v729_v9 = vsel %vm110_vm0, %v593_v37, 0.0 }
 0x12b   :  { %724 = vadd.xlane.f32.xlu1 %v723_v24  ;;  %727 = vadd.xlane.f32.xlu2 %v726_v25  ;;  %v732_v24 = vsel %vm110_vm0, %v594_v13, 0.0  ;;  %v735_v25 = vsel %vm110_vm0, %v595_v43, 0.0  ;;  %v597_v13 = vmul.f32 %v5586_v30, %v5586_v30  ;;  %v598_v43 = vmul.f32 %v5589_v31, %v5589_v31  ;;  %v10122_v31 = vld [vmem:[#allocation58_spill] sm:$0xff] }
 0x12c   :  { %721 = vadd.xlane.f32.xlu0 %v720_v5  ;;  %v10110_v5 = vld [vmem:[#allocation3_spill] sm:$0xff] }
 0x12d   :  { %v5594_v12 = vsub.f32 %v10110_v5, %v412_v36  ;;  %v10114_v36 = vld [vmem:[#allocation49_spill] sm:$0xff]  ;;  %v5616_v5 = vsub.f32 %v10117_v46, %v417_v19  ;;  %v744_v18 = vsel %vm110_vm0, %v598_v43, 0.0  ;;  %v10123_v43 = vld [vmem:[#allocation52_spill] sm:$0xff] }
 0x12e   :  { %v5572_v17 = vpop.xlane.xlu2 %325  ;;  %v5574_v50 = vpop.xlane.xlu1 %322  ;;  %v415_v51 = vmul.f32 0.020408163, %v10114_v36 }
 0x12f   :  { %v5581_v0 = vpop.xlane.xlu0 %319  ;;  %10111 = vst [vmem:[#allocation3_spill] sm:$0xff] %v5594_v12  ;;  %v596_v37 = vmul.f32 %v5594_v12, %v5594_v12  ;;  %v419_v12 = vmul.f32 0.020408163, %v10121_v34  ;;  %v10124_v34 = vld [vmem:[#allocation7_spill] sm:$0xff] }
 0x130   :  { %10118 = vst [vmem:[#allocation54_spill] sm:$0xff] %v5616_v5  ;;  %v5621_v30 = vsub.f32 %v10119_v21, %v415_v51  ;;  %v601_v21 = vmul.f32 %v5616_v5, %v5616_v5  ;;  %v418_v51 = vmul.f32 0.020408163, %v10123_v43  ;;  %v10130_v5 = vld [vmem:[#allocation55_spill] sm:$0xff] }
 0x131   :  { %v738_v36 = vsel %vm110_vm0, %v596_v37, 0.0  ;;  %v5640_v37 = vsub.f32 %v10124_v34, %v419_v12  ;;  %v423_v12 = vmul.f32 0.020408163, %v10131_v28  ;;  %v10135_v28 = vld [vmem:[#allocation15_spill] sm:$0xff] }
 0x132   :  { %10120 = vst [vmem:[#allocation49_spill] sm:$0xff] %v5621_v30  ;;  %v5648_v45 = vsub.f32 %v10128_v6, %v418_v51 }
 0x133   :  { %733 = vadd.xlane.f32.xlu1 %v732_v24  ;;  %736 = vadd.xlane.f32.xlu2 %v735_v25  ;;  %v5613_v25 = vsub.f32 %v10115_v63, %v416_v33  ;;  %v420_v33 = vmul.f32 0.020408163, %v10122_v31  ;;  %10125 = vst [vmem:[#allocation4_spill] sm:$0xff] %v5640_v37  ;;  %v10126_v31 = vld [vmem:[#allocation12_spill] sm:$0xff] }
 0x134   :  { %730 = vadd.xlane.f32.xlu0 %v729_v9  ;;  %v741_v9 = vsel %vm110_vm0, %v597_v13, 0.0  ;;  %10129 = vst [vmem:[#allocation5_spill] sm:$0xff] %v5648_v45 }
 0x135   :  { %10116 = vst [vmem:[#allocation48_spill] sm:$0xff] %v5613_v25  ;;  %v600_v13 = vmul.f32 %v5613_v25, %v5613_v25  ;;  %v753_v25 = vsel %vm110_vm0, %v601_v21, 0.0  ;;  %v10132_v21 = vld [vmem:[#allocation56_spill] sm:$0xff] }
 0x136   :  { %v5599_v60 = vpop.xlane.xlu2 %334  ;;  %v5601_v42 = vpop.xlane.xlu1 %331  ;;  %v421_v51 = vmul.f32 0.020408163, %v10132_v21 }
 0x137   :  { %v5608_v24 = vpop.xlane.xlu0 %328 }
 0x138   :  { %v5675_v56 = vsub.f32 %v10137_v61, %v421_v51 }
 0x13a   :  { %10138 = vst [vmem:[#allocation52_spill] sm:$0xff] %v5675_v56 }
 0x13b   :  { %742 = vadd.xlane.f32.xlu1 %v741_v9  ;;  %745 = vadd.xlane.f32.xlu2 %v744_v18  ;;  %v599_v18 = vmul.f32 %v5621_v30, %v5621_v30  ;;  %v5643_v9 = vsub.f32 %v10126_v31, %v420_v33  ;;  %v422_v30 = vmul.f32 0.020408163, %v10130_v5  ;;  %v10133_v5 = vld [vmem:[#allocation10_spill] sm:$0xff] }
 0x13c   :  { %739 = vadd.xlane.f32.xlu0 %v738_v36  ;;  %v750_v36 = vsel %vm110_vm0, %v600_v13, 0.0  ;;  %v603_v13 = vmul.f32 %v5640_v37, %v5640_v37 }
 0x13d   :  { %10127 = vst [vmem:[#allocation9_spill] sm:$0xff] %v5643_v9  ;;  %v747_v43 = vsel %vm110_vm0, %v599_v18, 0.0  ;;  %v604_v6 = vmul.f32 %v5643_v9, %v5643_v9  ;;  %v5667_v18 = vsub.f32 %v10133_v5, %v422_v30  ;;  %v10139_v9 = vld [vmem:[#allocation59_spill] sm:$0xff]  ;;  %v426_v30 = vmul.f32 0.020408163, %v10140_v27  ;;  %v10144_v27 = vld [vmem:[#allocation18_spill] sm:$0xff] }
 0x13e   :  { %v5626_v63 = vpop.xlane.xlu2 %343  ;;  %v5628_v19 = vpop.xlane.xlu1 %340 }
 0x13f   :  { %v5635_v46 = vpop.xlane.xlu0 %337  ;;  %10134 = vst [vmem:[#allocation51_spill] sm:$0xff] %v5667_v18  ;;  %v762_v37 = vsel %vm110_vm0, %v604_v6, 0.0  ;;  %v10141_v6 = vld [vmem:[#allocation60_spill] sm:$0xff] }
 0x140   :  { %v424_v51 = vmul.f32 0.020408163, %v10141_v6 }
 0x142   :  { %v5702_v47 = vsub.f32 %v10146_v54, %v424_v51 }
 0x143   :  { %751 = vadd.xlane.f32.xlu1 %v750_v36  ;;  %754 = vadd.xlane.f32.xlu2 %v753_v25  ;;  %v602_v25 = vmul.f32 %v5648_v45, %v5648_v45  ;;  %v5670_v36 = vsub.f32 %v10135_v28, %v423_v12  ;;  %v425_v45 = vmul.f32 0.020408163, %v10139_v9  ;;  %v10142_v9 = vld [vmem:[#allocation13_spill] sm:$0xff] }
 0x144   :  { %748 = vadd.xlane.f32.xlu0 %v747_v43  ;;  %v759_v43 = vsel %vm110_vm0, %v603_v13, 0.0  ;;  %v606_v13 = vmul.f32 %v5667_v18, %v5667_v18  ;;  %10147 = vst [vmem:[#allocation8_spill] sm:$0xff] %v5702_v47 }
 0x145   :  { %10136 = vst [vmem:[#allocation58_spill] sm:$0xff] %v5670_v36  ;;  %v756_v21 = vsel %vm110_vm0, %v602_v25, 0.0  ;;  %v607_v61 = vmul.f32 %v5670_v36, %v5670_v36  ;;  %v5694_v25 = vsub.f32 %v10142_v9, %v425_v45  ;;  %v10148_v36 = vld [vmem:[#allocation62_spill] sm:$0xff]  ;;  %v429_v45 = vmul.f32 0.020408163, %v10149_v11  ;;  %v10153_v11 = vld [vmem:[#allocation21_spill] sm:$0xff] }
 0x146   :  { %v5653_v34 = vpop.xlane.xlu2 %352  ;;  %v5655_v33 = vpop.xlane.xlu1 %349 }
 0x147   :  { %v5662_v31 = vpop.xlane.xlu0 %346  ;;  %10143 = vst [vmem:[#allocation7_spill] sm:$0xff] %v5694_v25  ;;  %v771_v18 = vsel %vm110_vm0, %v607_v61, 0.0  ;;  %v10150_v61 = vld [vmem:[#allocation63_spill] sm:$0xff] }
 0x148   :  { %v427_v51 = vmul.f32 0.020408163, %v10150_v61 }
 0x14a   :  { %v5729_v8 = vsub.f32 %v10155_v16, %v427_v51 }
 0x14b   :  { %760 = vadd.xlane.f32.xlu1 %v759_v43  ;;  %763 = vadd.xlane.f32.xlu2 %v762_v37  ;;  %v605_v37 = vmul.f32 %v5675_v56, %v5675_v56  ;;  %v5697_v43 = vsub.f32 %v10144_v27, %v426_v30  ;;  %v428_v56 = vmul.f32 0.020408163, %v10148_v36  ;;  %v10151_v36 = vld [vmem:[#allocation16_spill] sm:$0xff] }
 0x14c   :  { %757 = vadd.xlane.f32.xlu0 %v756_v21  ;;  %v768_v21 = vsel %vm110_vm0, %v606_v13, 0.0  ;;  %v609_v13 = vmul.f32 %v5694_v25, %v5694_v25  ;;  %10156 = vst [vmem:[#allocation56_spill] sm:$0xff] %v5729_v8 }
 0x14d   :  { %10145 = vst [vmem:[#allocation12_spill] sm:$0xff] %v5697_v43  ;;  %v765_v6 = vsel %vm110_vm0, %v605_v37, 0.0  ;;  %v610_v54 = vmul.f32 %v5697_v43, %v5697_v43  ;;  %v5721_v37 = vsub.f32 %v10151_v36, %v428_v56  ;;  %v10157_v43 = vld [vmem:[#allocation65_spill] sm:$0xff]  ;;  %v432_v56 = vmul.f32 0.020408163, %v5367_v22  ;;  %v10161_v22 = vld [vmem:[#allocation24_spill] sm:$0xff] }
 0x14e   :  { %v5680_v5 = vpop.xlane.xlu2 %361  ;;  %v5682_v12 = vpop.xlane.xlu1 %358 }
 0x14f   :  { %v5689_v28 = vpop.xlane.xlu0 %355  ;;  %10152 = vst [vmem:[#allocation55_spill] sm:$0xff] %v5721_v37  ;;  %v780_v25 = vsel %vm110_vm0, %v610_v54, 0.0  ;;  %v10158_v54 = vld [vmem:[#allocation66_spill] sm:$0xff] }
 0x150   :  { %v430_v51 = vmul.f32 0.020408163, %v10158_v54 }
 0x152   :  { %v5756_v3 = vsub.f32 %v10163_v52, %v430_v51 }
 0x153   :  { %769 = vadd.xlane.f32.xlu1 %v768_v21  ;;  %772 = vadd.xlane.f32.xlu2 %v771_v18  ;;  %v608_v18 = vmul.f32 %v5702_v47, %v5702_v47  ;;  %v5724_v21 = vsub.f32 %v10153_v11, %v429_v45  ;;  %v431_v47 = vmul.f32 0.020408163, %v10157_v43  ;;  %v10159_v43 = vld [vmem:[#allocation19_spill] sm:$0xff] }
 0x154   :  { %766 = vadd.xlane.f32.xlu0 %v765_v6  ;;  %v777_v6 = vsel %vm110_vm0, %v609_v13, 0.0  ;;  %v612_v13 = vmul.f32 %v5721_v37, %v5721_v37  ;;  %10164 = vst [vmem:[#allocation11_spill] sm:$0xff] %v5756_v3 }
 0x155   :  { %10154 = vst [vmem:[#allocation61_spill] sm:$0xff] %v5724_v21  ;;  %v774_v61 = vsel %vm110_vm0, %v608_v18, 0.0  ;;  %v613_v16 = vmul.f32 %v5724_v21, %v5724_v21  ;;  %v5748_v18 = vsub.f32 %v10159_v43, %v431_v47  ;;  %v435_v47 = vmul.f32 0.020408163, %v5392_v62  ;;  %v10168_v62 = vld [vmem:[#allocation27_spill] sm:$0xff] }
 0x156   :  { %v5707_v9 = vpop.xlane.xlu2 %370  ;;  %v5709_v30 = vpop.xlane.xlu1 %367 }
 0x157   :  { %v5716_v27 = vpop.xlane.xlu0 %364  ;;  %10160 = vst [vmem:[#allocation10_spill] sm:$0xff] %v5748_v18  ;;  %v789_v37 = vsel %vm110_vm0, %v613_v16, 0.0  ;;  %v10165_v16 = vld [vmem:[#allocation69_spill] sm:$0xff] }
 0x158   :  { %v433_v51 = vmul.f32 0.020408163, %v10165_v16 }
 0x15b   :  { %778 = vadd.xlane.f32.xlu1 %v777_v6  ;;  %781 = vadd.xlane.f32.xlu2 %v780_v25  ;;  %v611_v25 = vmul.f32 %v5729_v8, %v5729_v8  ;;  %v5751_v6 = vsub.f32 %v10161_v22, %v432_v56  ;;  %v434_v8 = vmul.f32 0.020408163, %v5357_v55  ;;  %v10166_v55 = vld [vmem:[#allocation22_spill] sm:$0xff] }
 0x15c   :  { %775 = vadd.xlane.f32.xlu0 %v774_v61  ;;  %v786_v61 = vsel %vm110_vm0, %v612_v13, 0.0  ;;  %v615_v13 = vmul.f32 %v5748_v18, %v5748_v18  ;;  %v10170_v18 = vld [vmem:[#allocation23_spill] sm:$0xff] }
 0x15d   :  { %10162 = vst [vmem:[#allocation15_spill] sm:$0xff] %v5751_v6  ;;  %v783_v54 = vsel %vm110_vm0, %v611_v25, 0.0  ;;  %v616_v52 = vmul.f32 %v5751_v6, %v5751_v6  ;;  %v5775_v25 = vsub.f32 %v10166_v55, %v434_v8  ;;  %v5783_v35 = vsub.f32 %v10170_v18, %v433_v51 }
 0x15e   :  { %v5734_v36 = vpop.xlane.xlu2 %379  ;;  %v5736_v45 = vpop.xlane.xlu1 %376  ;;  %v438_v8 = vmul.f32 0.020408163, %v5419_v1  ;;  %v10174_v1 = vld [vmem:[#allocation30_spill] sm:$0xff] }
 0x15f   :  { %v5743_v11 = vpop.xlane.xlu0 %373  ;;  %10167 = vst [vmem:[#allocation59_spill] sm:$0xff] %v5775_v25  ;;  %v798_v21 = vsel %vm110_vm0, %v616_v52, 0.0  ;;  %v436_v52 = vmul.f32 0.020408163, %v5385_v2 }
 0x160   :  { %10171 = vst [vmem:[#allocation60_spill] sm:$0xff] %v5783_v35 }
 0x163   :  { %787 = vadd.xlane.f32.xlu1 %v786_v61  ;;  %790 = vadd.xlane.f32.xlu2 %v789_v37  ;;  %v614_v37 = vmul.f32 %v5756_v3, %v5756_v3  ;;  %v5778_v61 = vsub.f32 %v10168_v62, %v435_v47  ;;  %v437_v3 = vmul.f32 0.020408163, %v5383_v48  ;;  %v10172_v48 = vld [vmem:[#allocation25_spill] sm:$0xff]  ;;  %v5805_v62 = vsub.f32 %v10174_v1, %v438_v8 }
 0x164   :  { %784 = vadd.xlane.f32.xlu0 %v783_v54  ;;  %v795_v54 = vsel %vm110_vm0, %v615_v13, 0.0  ;;  %v618_v13 = vmul.f32 %v5775_v25, %v5775_v25  ;;  %v10176_v25 = vld [vmem:[#allocation26_spill] sm:$0xff] }
 0x165   :  { %10169 = vst [vmem:[#allocation64_spill] sm:$0xff] %v5778_v61  ;;  %v792_v16 = vsel %vm110_vm0, %v614_v37, 0.0  ;;  %v619_v18 = vmul.f32 %v5778_v61, %v5778_v61  ;;  %v5802_v37 = vsub.f32 %v10172_v48, %v437_v3  ;;  %v5810_v6 = vsub.f32 %v10176_v25, %v436_v52 }
 0x166   :  { %v5761_v43 = vpop.xlane.xlu1 %385  ;;  %v5763_v56 = vpop.xlane.xlu2 %664  ;;  %10175 = vst [vmem:[#allocation18_spill] sm:$0xff] %v5805_v62  ;;  %v440_v61 = vmul.f32 0.020408163, %v5410_v23  ;;  %v441_v3 = vmul.f32 0.020408163, %v5446_v39  ;;  %v622_v25 = vmul.f32 %v5805_v62, %v5805_v62  ;;  %v10178_v23 = vld [vmem:[#allocation28_spill] sm:$0xff] }
 0x167   :  { %v5770_v22 = vpop.xlane.xlu0 %382  ;;  %10173 = vst [vmem:[#allocation13_spill] sm:$0xff] %v5802_v37  ;;  %v10180_v39 = vld [vmem:[#allocation33_spill] sm:$0xff]  ;;  %v10188_v62 = vld [vmem:[#allocation32_spill] sm:$0xff] }
 0x168   :  { %10177 = vst [vmem:[#allocation14_spill] sm:$0xff] %v5810_v6  ;;  %v5829_v1 = vsub.f32 %v10178_v23, %v440_v61  ;;  %v444_v61 = vmul.f32 0.020408163, %v5473_v59  ;;  %v10186_v59 = vld [vmem:[#allocation36_spill] sm:$0xff] }
 0x16a   :  { %10179 = vst [vmem:[#allocation62_spill] sm:$0xff] %v5829_v1 }
 0x16b   :  { %796 = vadd.xlane.f32.xlu1 %v795_v54  ;;  %799 = vadd.xlane.f32.xlu2 %v798_v21  ;;  %v617_v21 = vmul.f32 %v5783_v35, %v5783_v35  ;;  %v804_v54 = vsel %vm110_vm0, %v618_v13, 0.0  ;;  %v621_v13 = vmul.f32 %v5802_v37, %v5802_v37  ;;  %v10182_v37 = vld [vmem:[#allocation29_spill] sm:$0xff] }
 0x16c   :  { %793 = vadd.xlane.f32.xlu0 %v792_v16  ;;  %v807_v16 = vsel %vm110_vm0, %v619_v18, 0.0  ;;  %v439_v18 = vmul.f32 0.020408163, %v5412_v14 }
 0x16d   :  { %v801_v2 = vsel %vm110_vm0, %v617_v21, 0.0  ;;  %v620_v21 = vmul.f32 %v5810_v6, %v5810_v6  ;;  %v443_v6 = vmul.f32 0.020408163, %v5437_v58  ;;  %v10184_v58 = vld [vmem:[#allocation31_spill] sm:$0xff] }
 0x16e   :  { %v5788_v55 = vpop.xlane.xlu1 %670  ;;  %v5790_v47 = vpop.xlane.xlu2 %673  ;;  %v5837_v35 = vsub.f32 %v10182_v37, %v439_v18 }
 0x16f   :  { %v5797_v51 = vpop.xlane.xlu0 %667  ;;  %v810_v14 = vsel %vm110_vm0, %v620_v21, 0.0 }
 0x170   :  { %10183 = vst [vmem:[#allocation63_spill] sm:$0xff] %v5837_v35  ;;  %v623_v21 = vmul.f32 %v5837_v35, %v5837_v35  ;;  %v446_v35 = vmul.f32 0.020408163, %v5464_v15  ;;  %v10190_v15 = vld [vmem:[#allocation34_spill] sm:$0xff] }
 0x173   :  { %805 = vadd.xlane.f32.xlu1 %v804_v54  ;;  %808 = vadd.xlane.f32.xlu2 %v807_v16  ;;  %v5832_v54 = vsub.f32 %v10180_v39, %v441_v3  ;;  %v813_v16 = vsel %vm110_vm0, %v621_v13, 0.0  ;;  %v624_v13 = vmul.f32 %v5829_v1, %v5829_v1  ;;  %v5856_v39 = vsub.f32 %v10184_v58, %v443_v6 }
 0x174   :  { %802 = vadd.xlane.f32.xlu0 %v801_v2  ;;  %v816_v2 = vsel %vm110_vm0, %v622_v25, 0.0  ;;  %v442_v25 = vmul.f32 0.020408163, %v5439_v20  ;;  %v819_v20 = vsel %vm110_vm0, %v623_v21, 0.0  ;;  %v447_v6 = vmul.f32 0.020408163, %v5500_v10 }
 0x175   :  { %10181 = vst [vmem:[#allocation67_spill] sm:$0xff] %v5832_v54  ;;  %v625_v37 = vmul.f32 %v5832_v54, %v5832_v54  ;;  %v10192_v10 = vld [vmem:[#allocation39_spill] sm:$0xff] }
 0x176   :  { %v5815_v48 = vpop.xlane.xlu1 %679  ;;  %v5817_v8 = vpop.xlane.xlu2 %682  ;;  %10185 = vst [vmem:[#allocation16_spill] sm:$0xff] %v5856_v39  ;;  %v5864_v1 = vsub.f32 %v10188_v62, %v442_v25  ;;  %v10194_v54 = vld [vmem:[#allocation35_spill] sm:$0xff] }
 0x177   :  { %v5824_v52 = vpop.xlane.xlu0 %676 }
 0x178   :  { %10189 = vst [vmem:[#allocation17_spill] sm:$0xff] %v5864_v1  ;;  %v626_v21 = vmul.f32 %v5864_v1, %v5864_v1  ;;  %v449_v1 = vmul.f32 0.020408163, %v5491_v53  ;;  %v10196_v53 = vld [vmem:[#allocation37_spill] sm:$0xff] }
 0x17b   :  { %814 = vadd.xlane.f32.xlu1 %v813_v16  ;;  %817 = vadd.xlane.f32.xlu2 %v816_v2  ;;  %v5859_v16 = vsub.f32 %v10186_v59, %v444_v61  ;;  %v822_v2 = vsel %vm110_vm0, %v624_v13, 0.0  ;;  %v627_v13 = vmul.f32 %v5856_v39, %v5856_v39  ;;  %v5883_v59 = vsub.f32 %v10190_v15, %v446_v35 }
 0x17c   :  { %811 = vadd.xlane.f32.xlu0 %v810_v14  ;;  %v825_v14 = vsel %vm110_vm0, %v625_v37, 0.0  ;;  %v445_v37 = vmul.f32 0.020408163, %v5466_v26  ;;  %v828_v26 = vsel %vm110_vm0, %v626_v21, 0.0  ;;  %v450_v35 = vmul.f32 0.020408163, %v5527_v49 }
 0x17d   :  { %10187 = vst [vmem:[#allocation21_spill] sm:$0xff] %v5859_v16  ;;  %v628_v62 = vmul.f32 %v5859_v16, %v5859_v16  ;;  %v10198_v49 = vld [vmem:[#allocation42_spill] sm:$0xff] }
 0x17e   :  { %v5842_v23 = vpop.xlane.xlu1 %688  ;;  %v5844_v3 = vpop.xlane.xlu2 %691  ;;  %10191 = vst [vmem:[#allocation65_spill] sm:$0xff] %v5883_v59  ;;  %v5891_v39 = vsub.f32 %v10194_v54, %v445_v37  ;;  %v10200_v16 = vld [vmem:[#allocation38_spill] sm:$0xff] }
 0x17f   :  { %v5851_v18 = vpop.xlane.xlu0 %685 }
 0x180   :  { %10195 = vst [vmem:[#allocation19_spill] sm:$0xff] %v5891_v39  ;;  %v629_v21 = vmul.f32 %v5891_v39, %v5891_v39  ;;  %v10206_v39 = vld [vmem:[#allocation41_spill] sm:$0xff] }
 0x183   :  { %823 = vadd.xlane.f32.xlu1 %v822_v2  ;;  %826 = vadd.xlane.f32.xlu2 %v825_v14  ;;  %v5886_v2 = vsub.f32 %v10192_v10, %v447_v6  ;;  %v831_v14 = vsel %vm110_vm0, %v627_v13, 0.0  ;;  %v630_v13 = vmul.f32 %v5883_v59, %v5883_v59  ;;  %v5910_v10 = vsub.f32 %v10196_v53, %v449_v1 }
 0x184   :  { %820 = vadd.xlane.f32.xlu0 %v819_v20  ;;  %v834_v20 = vsel %vm110_vm0, %v628_v62, 0.0  ;;  %v448_v62 = vmul.f32 0.020408163, %v5493_v32  ;;  %v837_v32 = vsel %vm110_vm0, %v629_v21, 0.0  ;;  %v453_v1 = vmul.f32 0.020408163, %v5554_v7 }
 0x185   :  { %10193 = vst [vmem:[#allocation66_spill] sm:$0xff] %v5886_v2  ;;  %v631_v54 = vmul.f32 %v5886_v2, %v5886_v2  ;;  %v452_v2 = vmul.f32 0.020408163, %v5518_v41  ;;  %v10202_v41 = vld [vmem:[#allocation40_spill] sm:$0xff]  ;;  %v10204_v7 = vld [vmem:[#allocation45_spill] sm:$0xff] }
 0x186   :  { %v5869_v58 = vpop.xlane.xlu1 %697  ;;  %v5871_v61 = vpop.xlane.xlu2 %700  ;;  %10197 = vst [vmem:[#allocation24_spill] sm:$0xff] %v5910_v10  ;;  %v5918_v59 = vsub.f32 %v10200_v16, %v448_v62 }
 0x187   :  { %v5878_v25 = vpop.xlane.xlu0 %694 }
 0x188   :  { %10201 = vst [vmem:[#allocation69_spill] sm:$0xff] %v5918_v59  ;;  %v632_v21 = vmul.f32 %v5918_v59, %v5918_v59  ;;  %v455_v59 = vmul.f32 0.020408163, %v5545_v29  ;;  %v10208_v29 = vld [vmem:[#allocation43_spill] sm:$0xff] }
 0x18b   :  { %832 = vadd.xlane.f32.xlu1 %v831_v14  ;;  %835 = vadd.xlane.f32.xlu2 %v834_v20  ;;  %v5913_v14 = vsub.f32 %v10198_v49, %v450_v35  ;;  %v840_v20 = vsel %vm110_vm0, %v630_v13, 0.0  ;;  %v633_v13 = vmul.f32 %v5910_v10, %v5910_v10  ;;  %v5937_v49 = vsub.f32 %v10202_v41, %v452_v2 }
 0x18c   :  { %829 = vadd.xlane.f32.xlu0 %v828_v26  ;;  %v843_v26 = vsel %vm110_vm0, %v631_v54, 0.0  ;;  %v451_v54 = vmul.f32 0.020408163, %v5520_v38  ;;  %v846_v38 = vsel %vm110_vm0, %v632_v21, 0.0  ;;  %v456_v2 = vmul.f32 0.020408163, %v5581_v0 }
 0x18d   :  { %10199 = vst [vmem:[#allocation20_spill] sm:$0xff] %v5913_v14  ;;  %v634_v16 = vmul.f32 %v5913_v14, %v5913_v14  ;;  %v10210_v0 = vld [vmem:[#allocation47_spill] sm:$0xff] }
 0x18e   :  { %v5896_v15 = vpop.xlane.xlu1 %706  ;;  %v5898_v6 = vpop.xlane.xlu2 %709  ;;  %10203 = vst [vmem:[#allocation22_spill] sm:$0xff] %v5937_v49  ;;  %v5945_v10 = vsub.f32 %v10206_v39, %v451_v54 }
 0x18f   :  { %v5905_v37 = vpop.xlane.xlu0 %703 }
 0x190   :  { %10207 = vst [vmem:[#allocation23_spill] sm:$0xff] %v5945_v10  ;;  %v635_v21 = vmul.f32 %v5945_v10, %v5945_v10  ;;  %v4632_v10 = vld [vmem:[%s9868_s0 + $0x230] sm:$0xff] }
 0x193   :  { %841 = vadd.xlane.f32.xlu1 %v840_v20  ;;  %844 = vadd.xlane.f32.xlu2 %v843_v26  ;;  %v5940_v20 = vsub.f32 %v10204_v7, %v453_v1  ;;  %v849_v26 = vsel %vm110_vm0, %v633_v13, 0.0  ;;  %v636_v13 = vmul.f32 %v5937_v49, %v5937_v49  ;;  %v5964_v7 = vsub.f32 %v10208_v29, %v455_v59  ;;  %v10212_v49 = vld [vmem:[#allocation44_spill] sm:$0xff] }
 0x194   :  { %838 = vadd.xlane.f32.xlu0 %v837_v32  ;;  %v852_v32 = vsel %vm110_vm0, %v634_v16, 0.0  ;;  %v454_v16 = vmul.f32 0.020408163, %v5547_v44  ;;  %v855_v44 = vsel %vm110_vm0, %v635_v21, 0.0  ;;  %v459_v59 = vmul.f32 0.020408163, %v5608_v24 }
 0x195   :  { %10205 = vst [vmem:[#allocation27_spill] sm:$0xff] %v5940_v20  ;;  %v637_v39 = vmul.f32 %v5940_v20, %v5940_v20  ;;  %v458_v20 = vmul.f32 0.020408163, %v5572_v17  ;;  %v10214_v17 = vld [vmem:[#allocation46_spill] sm:$0xff] }
 0x196   :  { %v5923_v53 = vpop.xlane.xlu1 %715  ;;  %v5925_v35 = vpop.xlane.xlu2 %718  ;;  %10209 = vst [vmem:[#allocation25_spill] sm:$0xff] %v5964_v7  ;;  %v5972_v14 = vsub.f32 %v10212_v49, %v454_v16  ;;  %v10216_v24 = vld [vmem:[#allocation50_spill] sm:$0xff] }
 0x197   :  { %v5932_v62 = vpop.xlane.xlu0 %712 }
 0x198   :  { %10213 = vst [vmem:[#allocation26_spill] sm:$0xff] %v5972_v14  ;;  %v638_v21 = vmul.f32 %v5972_v14, %v5972_v14 }
 0x19b   :  { %850 = vadd.xlane.f32.xlu1 %v849_v26  ;;  %853 = vadd.xlane.f32.xlu2 %v852_v32  ;;  %v5967_v26 = vsub.f32 %v10210_v0, %v456_v2  ;;  %v858_v32 = vsel %vm110_vm0, %v636_v13, 0.0  ;;  %v639_v13 = vmul.f32 %v5964_v7, %v5964_v7  ;;  %v5991_v0 = vsub.f32 %v10214_v17, %v458_v20 }
 0x19c   :  { %847 = vadd.xlane.f32.xlu0 %v846_v38  ;;  %v861_v38 = vsel %vm110_vm0, %v637_v39, 0.0  ;;  %v457_v39 = vmul.f32 0.020408163, %v5574_v50  ;;  %v461_v20 = vmul.f32 0.020408163, %v5599_v60  ;;  %v4633_v60 = vld [vmem:[%s9868_s0 + $0x250] sm:$0xff] }
 0x19d   :  { %10211 = vst [vmem:[#allocation30_spill] sm:$0xff] %v5967_v26  ;;  %v640_v49 = vmul.f32 %v5967_v26, %v5967_v26  ;;  %v864_v26 = vsel %vm110_vm0, %v638_v21, 0.0  ;;  %v10220_v21 = vld [vmem:[#allocation53_spill] sm:$0xff] }
 0x19e   :  { %v5950_v41 = vpop.xlane.xlu1 %724  ;;  %v5952_v1 = vpop.xlane.xlu2 %727  ;;  %10215 = vst [vmem:[#allocation28_spill] sm:$0xff] %v5991_v0  ;;  %v6001_v50 = vsub.f32 %v4632_v10, %v457_v39  ;;  %v460_v39 = vmul.f32 0.020408163, %v5601_v42  ;;  %v4634_v42 = vld [vmem:[%s9868_s0 + $0x248] sm:$0xff] }
 0x19f   :  { %v5959_v54 = vpop.xlane.xlu0 %721 }
 0x1a0   :  { %10218 = vst [vmem:[#allocation29_spill] sm:$0xff] %v6001_v50  ;;  %v6032_v7 = vsub.f32 %v4634_v42, %v460_v39 }
 0x1a2   :  { %10222 = vst [vmem:[#allocation32_spill] sm:$0xff] %v6032_v7 }
 0x1a3   :  { %859 = vadd.xlane.f32.xlu1 %v858_v32  ;;  %862 = vadd.xlane.f32.xlu2 %v861_v38  ;;  %v5994_v32 = vsub.f32 %v10216_v24, %v459_v59  ;;  %v867_v38 = vsel %vm110_vm0, %v639_v13, 0.0  ;;  %v462_v59 = vmul.f32 0.020408163, %v5635_v46  ;;  %v6022_v46 = vsub.f32 %v4633_v60, %v461_v20 }
 0x1a4   :  { %856 = vadd.xlane.f32.xlu0 %v855_v44  ;;  %v870_v44 = vsel %vm110_vm0, %v640_v49, 0.0  ;;  %v642_v49 = vmul.f32 %v5991_v0, %v5991_v0  ;;  %v464_v20 = vmul.f32 0.020408163, %v5626_v63  ;;  %v4635_v63 = vld [vmem:[%s9868_s0 + $0x268] sm:$0xff] }
 0x1a5   :  { %10217 = vst [vmem:[#allocation33_spill] sm:$0xff] %v5994_v32  ;;  %v643_v10 = vmul.f32 %v5994_v32, %v5994_v32 }
 0x1a6   :  { %v5977_v29 = vpop.xlane.xlu1 %733  ;;  %v5979_v2 = vpop.xlane.xlu2 %736  ;;  %10219 = vst [vmem:[#allocation31_spill] sm:$0xff] %v6022_v46 }
 0x1a7   :  { %v5986_v16 = vpop.xlane.xlu0 %730  ;;  %v879_v14 = vsel %vm110_vm0, %v643_v10, 0.0  ;;  %v645_v10 = vmul.f32 %v6022_v46, %v6022_v46  ;;  %v4639_v46 = vld [vmem:[%s9868_s0 + $0x278] sm:$0xff] }
 0x1a9   :  { %v885_v42 = vsel %vm110_vm0, %v645_v10, 0.0 }
 0x1ab   :  { %868 = vadd.xlane.f32.xlu1 %v867_v38  ;;  %871 = vadd.xlane.f32.xlu2 %v870_v44  ;;  %v6025_v38 = vsub.f32 %v10220_v21, %v462_v59  ;;  %v876_v44 = vsel %vm110_vm0, %v642_v49, 0.0  ;;  %v465_v59 = vmul.f32 0.020408163, %v5662_v31  ;;  %v463_v21 = vmul.f32 0.020408163, %v5628_v19  ;;  %v4636_v19 = vld [vmem:[%s9868_s0 + $0x260] sm:$0xff] }
 0x1ac   :  { %865 = vadd.xlane.f32.xlu0 %v864_v26  ;;  %v641_v26 = vmul.f32 %v6001_v50, %v6001_v50  ;;  %v6053_v31 = vsub.f32 %v4635_v63, %v464_v20  ;;  %v467_v20 = vmul.f32 0.020408163, %v5653_v34  ;;  %v4637_v34 = vld [vmem:[%s9868_s0 + $0x280] sm:$0xff] }
 0x1ad   :  { %10221 = vst [vmem:[#allocation36_spill] sm:$0xff] %v6025_v38  ;;  %v646_v39 = vmul.f32 %v6025_v38, %v6025_v38  ;;  %v6063_v32 = vsub.f32 %v4636_v19, %v463_v21 }
 0x1ae   :  { %v6006_v17 = vpop.xlane.xlu1 %742  ;;  %v6008_v13 = vpop.xlane.xlu2 %745  ;;  %v873_v0 = vsel %vm110_vm0, %v641_v26, 0.0  ;;  %10223 = vst [vmem:[#allocation34_spill] sm:$0xff] %v6053_v31 }
 0x1af   :  { %v6015_v24 = vpop.xlane.xlu0 %739  ;;  %v888_v50 = vsel %vm110_vm0, %v646_v39, 0.0  ;;  %10226 = vst [vmem:[#allocation35_spill] sm:$0xff] %v6063_v32  ;;  %v648_v39 = vmul.f32 %v6053_v31, %v6053_v31  ;;  %v941_v31 = vmul.f32 0.020408163, %v5788_v55 }
 0x1b1   :  { %v894_v19 = vsel %vm110_vm0, %v648_v39, 0.0 }
 0x1b3   :  { %877 = vadd.xlane.f32.xlu1 %v876_v44  ;;  %880 = vadd.xlane.f32.xlu2 %v879_v14  ;;  %v644_v14 = vmul.f32 %v6032_v7, %v6032_v7 }
 0x1b4   :  { %874 = vadd.xlane.f32.xlu0 %v873_v0  ;;  %v10224_v0 = vld [vmem:[#allocation57_spill] sm:$0xff] }
 0x1b5   :  { %v6056_v26 = vsub.f32 %v10224_v0, %v465_v59  ;;  %v882_v7 = vsel %vm110_vm0, %v644_v14, 0.0  ;;  %v468_v59 = vmul.f32 0.020408163, %v5689_v28  ;;  %v466_v0 = vmul.f32 0.020408163, %v5655_v33 }
 0x1b6   :  { %v6037_v60 = vpop.xlane.xlu1 %751  ;;  %v6039_v49 = vpop.xlane.xlu2 %754  ;;  %v6084_v28 = vsub.f32 %v4637_v34, %v467_v20  ;;  %v470_v34 = vmul.f32 0.020408163, %v5680_v5  ;;  %v4640_v5 = vld [vmem:[%s9868_s0 + $0x298] sm:$0xff] }
 0x1b7   :  { %v6046_v44 = vpop.xlane.xlu0 %748  ;;  %10225 = vst [vmem:[#allocation39_spill] sm:$0xff] %v6056_v26  ;;  %v649_v21 = vmul.f32 %v6056_v26, %v6056_v26  ;;  %v6096_v38 = vsub.f32 %v4639_v46, %v466_v0  ;;  %v469_v0 = vmul.f32 0.020408163, %v5682_v12 }
 0x1b8   :  { %10227 = vst [vmem:[#allocation37_spill] sm:$0xff] %v6084_v28 }
 0x1b9   :  { %v897_v33 = vsel %vm110_vm0, %v649_v21, 0.0  ;;  %10229 = vst [vmem:[#allocation38_spill] sm:$0xff] %v6096_v38  ;;  %v651_v21 = vmul.f32 %v6084_v28, %v6084_v28 }
 0x1bb   :  { %886 = vadd.xlane.f32.xlu1 %v885_v42  ;;  %889 = vadd.xlane.f32.xlu2 %v888_v50  ;;  %v4638_v50 = vld [vmem:[%s9868_s0 + $0x288] sm:$0xff]  ;;  %v903_v28 = vsel %vm110_vm0, %v651_v21, 0.0 }
 0x1bc   :  { %883 = vadd.xlane.f32.xlu0 %v882_v7  ;;  %v647_v7 = vmul.f32 %v6063_v32, %v6063_v32  ;;  %v6089_v14 = vsub.f32 %v4638_v50, %v468_v59  ;;  %v471_v59 = vmul.f32 0.020408163, %v5716_v27  ;;  %v6117_v27 = vsub.f32 %v4640_v5, %v470_v34 }
 0x1bd   :  { %v473_v5 = vmul.f32 0.020408163, %v5707_v9  ;;  %v939_v9 = vmul.f32 0.020408163, %v5763_v56  ;;  %v4645_v56 = vld [vmem:[%s9868_s0 + $0x2a8] sm:$0xff] }
 0x1be   :  { %v6068_v63 = vpop.xlane.xlu1 %760  ;;  %v6070_v10 = vpop.xlane.xlu2 %763  ;;  %10228 = vst [vmem:[#allocation42_spill] sm:$0xff] %v6089_v14  ;;  %v891_v20 = vsel %vm110_vm0, %v647_v7, 0.0  ;;  %v652_v46 = vmul.f32 %v6089_v14, %v6089_v14  ;;  %v650_v7 = vmul.f32 %v6096_v38, %v6096_v38  ;;  %v4642_v14 = vld [vmem:[%s9868_s0 + $0x290] sm:$0xff] }
 0x1bf   :  { %v6077_v42 = vpop.xlane.xlu0 %757  ;;  %10230 = vst [vmem:[#allocation40_spill] sm:$0xff] %v6117_v27  ;;  %v6129_v32 = vsub.f32 %v4642_v14, %v469_v0 }
 0x1c0   :  { %v906_v12 = vsel %vm110_vm0, %v652_v46, 0.0  ;;  %v900_v34 = vsel %vm110_vm0, %v650_v7, 0.0  ;;  %v654_v46 = vmul.f32 %v6117_v27, %v6117_v27  ;;  %v4644_v27 = vld [vmem:[%s9868_s0 + $0x2b8] sm:$0xff] }
 0x1c1   :  { %10232 = vst [vmem:[#allocation41_spill] sm:$0xff] %v6129_v32  ;;  %v653_v7 = vmul.f32 %v6129_v32, %v6129_v32 }
 0x1c3   :  { %895 = vadd.xlane.f32.xlu1 %v894_v19  ;;  %898 = vadd.xlane.f32.xlu2 %v897_v33  ;;  %v4641_v33 = vld [vmem:[%s9868_s0 + $0x2a0] sm:$0xff] }
 0x1c4   :  { %892 = vadd.xlane.f32.xlu0 %v891_v20  ;;  %v6122_v20 = vsub.f32 %v4641_v33, %v471_v59  ;;  %v474_v59 = vmul.f32 0.020408163, %v5743_v11  ;;  %v940_v11 = vmul.f32 0.020408163, %v5797_v51 }
 0x1c6   :  { %v6101_v50 = vpop.xlane.xlu1 %769  ;;  %v6103_v39 = vpop.xlane.xlu2 %772  ;;  %10231 = vst [vmem:[#allocation45_spill] sm:$0xff] %v6122_v20  ;;  %v655_v14 = vmul.f32 %v6122_v20, %v6122_v20  ;;  %v912_v20 = vsel %vm110_vm0, %v654_v46, 0.0  ;;  %v477_v46 = vmul.f32 0.020408163, %v5770_v22  ;;  %v942_v22 = vmul.f32 0.020408163, %v5790_v47 }
 0x1c7   :  { %v6110_v19 = vpop.xlane.xlu0 %766 }
 0x1c8   :  { %v915_v32 = vsel %vm110_vm0, %v655_v14, 0.0 }
 0x1cb   :  { %904 = vadd.xlane.f32.xlu1 %v903_v28  ;;  %907 = vadd.xlane.f32.xlu2 %v906_v12  ;;  %v472_v28 = vmul.f32 0.020408163, %v5709_v30  ;;  %v4643_v12 = vld [vmem:[%s9868_s0 + $0x2b0] sm:$0xff]  ;;  %v6157_v30 = vsub.f32 %v4644_v27, %v474_v59  ;;  %v6170_v27 = vadd.f32 1e-05, %v940_v11  ;;  %v4646_v11 = vld [vmem:[%s9868_s0 + $0x2c8] sm:$0xff] }
 0x1cc   :  { %901 = vadd.xlane.f32.xlu0 %v900_v34  ;;  %v6152_v34 = vsub.f32 %v4643_v12, %v473_v5  ;;  %v909_v5 = vsel %vm110_vm0, %v653_v7, 0.0  ;;  %v6167_v12 = vadd.f32 1e-05, %v939_v9  ;;  %v476_v59 = vmul.f32 0.020408163, %v5734_v36 }
 0x1cd   :  { %10236 = vst [vmem:[#allocation46_spill] sm:$0xff] %v6157_v30  ;;  %v6164_v51 = vsub.f32 %v4645_v56, %v472_v28  ;;  %v475_v28 = vmul.f32 0.020408163, %v5736_v45  ;;  %v6188_v36 = vadd.f32 1e-05, %v941_v31  ;;  %v4647_v56 = vld [vmem:[%s9868_s0 + $0x2d0] sm:$0xff]  ;;  %vm1231_vm7 = vweird.f32 %v6170_v27 }
 0x1ce   :  { %v6134_v33 = vpop.xlane.xlu1 %778  ;;  %v6136_v21 = vpop.xlane.xlu2 %781  ;;  %10235 = vst [vmem:[#allocation44_spill] sm:$0xff] %v6152_v34  ;;  %4448 = vrsqrt.f32 %v6167_v12  ;;  %v943_v9 = vmul.f32 0.020408163, %v5824_v52  ;;  %v6196_v45 = vsub.f32 %v4646_v11, %v476_v59  ;;  %v4648_v52 = vld [vmem:[%s9868_s0 + $0x2c0] sm:$0xff]  ;;  %v6212_v11 = vadd.f32 1e-05, %v942_v22 }
 0x1cf   :  { %10233 = vst [vmem:[#allocation43_spill] sm:$0xff] %v6136_v21  ;;  %v6143_v0 = vpop.xlane.xlu0 %775  ;;  %v656_v7 = vmul.f32 %v6164_v51, %v6164_v51  ;;  %4450 = vrsqrt.f32 %v6170_v27  ;;  %vm1221_vm1 = vweird.f32 %v6167_v12  ;;  %vm1241_vm3 = vweird.f32 %v6188_v36 }
 0x1d0   :  { %10234 = vst [vmem:[#allocation47_spill] sm:$0xff] %v6143_v0  ;;  %4452 = vrsqrt.f32 %v6188_v36  ;;  %vm1251_vm6 = vweird.f32 %v6212_v11 }
 0x1d1   :  { %10237 = vst [vmem:[#allocation50_spill] sm:$0xff] %v6164_v51  ;;  %v6208_v51 = vsub.f32 %v4648_v52, %v475_v28  ;;  %v918_v59 = vsel %vm110_vm0, %v656_v7, 0.0  ;;  %v660_v7 = vmul.f32 %v6196_v45, %v6196_v45  ;;  %4454 = vrsqrt.f32 %v6212_v11 }
 0x1d2   :  { %10241 = vst [vmem:[#allocation95_spill] sm:$0xff] %v6196_v45 }
 0x1d3   :  { %913 = vadd.xlane.f32.xlu1 %v912_v20  ;;  %916 = vadd.xlane.f32.xlu2 %v915_v32  ;;  %v657_v20 = vmul.f32 %v6152_v34, %v6152_v34  ;;  %v658_v32 = vmul.f32 %v6157_v30, %v6157_v30  ;;  %10243 = vst [vmem:[#allocation97_spill] sm:$0xff] %v6208_v51  ;;  %v930_v45 = vsel %vm110_vm0, %v660_v7, 0.0 }
 0x1d4   :  { %910 = vadd.xlane.f32.xlu0 %v909_v5  ;;  %v6201_v5 = vsub.f32 %v4647_v56, %v477_v46  ;;  %v944_v46 = vmul.f32 0.020408163, %v5815_v48  ;;  %v948_v56 = vmul.f32 0.020408163, %v5844_v3  ;;  %v478_v48 = vmul.f32 0.020408163, %v5761_v43 }
 0x1d5   :  { %v921_v31 = vsel %vm110_vm0, %v657_v20, 0.0  ;;  %v924_v47 = vsel %vm110_vm0, %v658_v32, 0.0  ;;  %v6215_v20 = vadd.f32 1e-05, %v943_v9  ;;  %v6217_v32 = vpop.eup %4448  ;;  %v945_v9 = vmul.f32 0.020408163, %v5817_v8 }
 0x1d6   :  { %v6174_v14 = vpop.xlane.xlu1 %787  ;;  %v6176_v26 = vpop.xlane.xlu2 %790  ;;  %10242 = vst [vmem:[#allocation96_spill] sm:$0xff] %v6201_v5  ;;  %v661_v22 = vmul.f32 %v6201_v5, %v6201_v5  ;;  %v659_v3 = vmul.f32 %v6208_v51, %v6208_v51  ;;  %v6237_v52 = vadd.f32 1e-05, %v944_v46  ;;  %v6246_v8 = vadd.f32 1e-05, %v948_v56  ;;  %v4649_v46 = vld [vmem:[%s9868_s0 + $0x2d8] sm:$0xff] }
 0x1d7   :  { %10238 = vst [vmem:[#allocation53_spill] sm:$0xff] %v6174_v14  ;;  %v6183_v55 = vpop.xlane.xlu0 %784  ;;  %4456 = vrsqrt.f32 %v6215_v20  ;;  %v4650_v5 = vmov 0   ;;  %v6253_v38 = vsub.f32 %v4649_v46, %v478_v48  ;;  %v6255_v4 = vadd.f32 1e-05, %v945_v9 }
 0x1d8   :  { %10239 = vst [vmem:[#allocation57_spill] sm:$0xff] %v6176_v26  ;;  %v933_v51 = vsel %vm110_vm0, %v661_v22, 0.0  ;;  %4446 = vset.pattern.permute.xlu2 %v4650_v5  ;;  %4445 = vset.pattern.permute.xlu1 %v4650_v5  ;;  %v927_v57 = vsel %vm110_vm0, %v659_v3, 0.0  ;;  %4458 = vrsqrt.f32 %v6237_v52  ;;  %vm1222_vm2 = vweird.f32 %v6217_v32 }
 0x1d9   :  { %10240 = vst [vmem:[#allocation94_spill] sm:$0xff] %v6183_v55  ;;  %4447 = vset.pattern.permute.xlu0 %v4650_v5  ;;  %4460 = vrsqrt.f32 %v6246_v8  ;;  %v662_v5 = vmul.f32 %v6253_v38, %v6253_v38  ;;  %vm6339_vm8 = vmor %vm1221_vm1, %vm1222_vm2  ;;  %vm1261_vm10 = vweird.f32 %v6215_v20  ;;  %vm1311_vm1 = vweird.f32 %v6246_v8 }
 0x1da   :  { %10247 = vst [vmem:[#allocation101_spill] sm:$0xff] %v6253_v38  ;;  %4462 = vrsqrt.f32 %v6255_v4 }
 0x1db   :  { %922 = vadd.xlane.f32.xlu1 %v921_v31  ;;  %925 = vadd.xlane.f32.xlu2 %v924_v47  ;;  %v6228_v31 = vpop.eup %4450  ;;  %v936_v38 = vsel %vm110_vm0, %v662_v5, 0.0  ;;  %v954_v5 = vmul.f32 0.020408163, %v5898_v6 }
 0x1dc   :  { %919 = vadd.xlane.f32.xlu0 %v918_v59  ;;  %v1216_v59 = vmul.f32 %v6217_v32, %v6167_v12  ;;  %v6242_v30 = vpop.eup %4452  ;;  %v1226_v43 = vmul.f32 %v6228_v31, %v6170_v27  ;;  %vm1232_vm4 = vweird.f32 %v6228_v31 }
 0x1dd   :  { %v1236_v7 = vmul.f32 %v6242_v30, %v6188_v36  ;;  %v6262_v22 = vpop.eup %4454  ;;  %vm1242_vm5 = vweird.f32 %v6242_v30  ;;  %vm6353_vm11 = vmor %vm1231_vm7, %vm1232_vm4  ;;  %v1033_v36 = vld [vmem:[%s9869_s1 + $0x10] sm:$0xff]  ;;  %vm1281_vm4 = vweird.f32 %v6255_v4 }
 0x1de   :  { %v6220_v34 = vpop.xlane.xlu1 %796  ;;  %v6222_v28 = vpop.xlane.xlu2 %799  ;;  %v1217_v56 = vmul.f32 %v6217_v32, %v1216_v59  ;;  %v1227_v48 = vmul.f32 %v6228_v31, %v1226_v43  ;;  %v946_v43 = vmul.f32 0.020408163, %v5851_v18  ;;  %v1246_v40 = vmul.f32 %v6262_v22, %v6212_v11  ;;  %vm6393_vm12 = vmor %vm1241_vm3, %vm1242_vm5 }
 0x1df   :  { %10244 = vst [vmem:[#allocation98_spill] sm:$0xff] %v6220_v34  ;;  %v6232_v47 = vpop.xlane.xlu0 %793  ;;  %v6271_v3 = vpop.eup %4456  ;;  %vm1252_vm9 = vweird.f32 %v6262_v22  ;;  %vm1271_vm3 = vweird.f32 %v6237_v52 }
 0x1e0   :  { %10245 = vst [vmem:[#allocation99_spill] sm:$0xff] %v6222_v28  ;;  %v1218_v46 = vmul.f32 0.5, %v1217_v56  ;;  %v6295_v18 = vadd.f32 1e-05, %v946_v43  ;;  %v1247_v34 = vmul.f32 %v6262_v22, %v1246_v40  ;;  %vm1262_vm14 = vweird.f32 %v6271_v3  ;;  %vm6422_vm2 = vmor %vm1251_vm6, %vm1252_vm9 }
 0x1e1   :  { %10246 = vst [vmem:[#allocation100_spill] sm:$0xff] %v6232_v47  ;;  %v1256_v47 = vmul.f32 %v6271_v3, %v6215_v20  ;;  %vm6438_vm5 = vmor %vm1261_vm10, %vm1262_vm14 }
 0x1e3   :  { %931 = vadd.xlane.f32.xlu1 %v930_v45  ;;  %934 = vadd.xlane.f32.xlu2 %v933_v51  ;;  %v951_v45 = vmul.f32 0.020408163, %v5871_v61  ;;  %v1237_v61 = vmul.f32 %v6242_v30, %v1236_v7  ;;  %v1219_v7 = vsub.f32 1.5, %v1218_v46  ;;  %v1257_v55 = vmul.f32 %v6271_v3, %v1256_v47 }
 0x1e4   :  { %928 = vadd.xlane.f32.xlu0 %v927_v57  ;;  %v947_v57 = vmul.f32 0.020408163, %v5842_v23  ;;  %v949_v47 = vmul.f32 0.020408163, %v5878_v25 }
 0x1e5   :  { %v6287_v23 = vadd.f32 1e-05, %v951_v45  ;;  %v1220_v46 = vmul.f32 %v6217_v32, %v1219_v7 }
 0x1e6   :  { %v6267_v9 = vpop.xlane.xlu1 %805  ;;  %v6269_v51 = vpop.xlane.xlu2 %808  ;;  %v6346_v27 = vadd.f32 1e-05, %v949_v47 }
 0x1e7   :  { %10248 = vst [vmem:[#allocation102_spill] sm:$0xff] %v6267_v9  ;;  %v6275_v59 = vpop.xlane.xlu0 %802  ;;  %v6283_v9 = vpop.eup %4458  ;;  %4464 = vrsqrt.f32 %v6287_v23  ;;  %vm1341_vm9 = vweird.f32 %v6287_v23 }
 0x1e8   :  { %10249 = vst [vmem:[#allocation103_spill] sm:$0xff] %v6269_v51  ;;  %v1228_v51 = vmul.f32 0.5, %v1227_v48  ;;  %v6292_v28 = vpop.eup %4460  ;;  %v1238_v48 = vmul.f32 0.5, %v1237_v61  ;;  %v1266_v45 = vmul.f32 %v6283_v9, %v6237_v52  ;;  %vm1272_vm13 = vweird.f32 %v6283_v9 }
 0x1e9   :  { %10250 = vst [vmem:[#allocation104_spill] sm:$0xff] %v6275_v59  ;;  %v6289_v59 = vadd.f32 1e-05, %v947_v57  ;;  %v6297_v56 = vpop.eup %4462  ;;  %v1306_v40 = vmul.f32 %v6292_v28, %v6246_v8  ;;  %vm1312_vm6 = vweird.f32 %v6292_v28 }
 0x1ea   :  { %v1229_v57 = vsub.f32 1.5, %v1228_v51  ;;  %v1276_v6 = vmul.f32 %v6297_v56, %v6255_v4  ;;  %v1239_v61 = vsub.f32 1.5, %v1238_v48  ;;  %vm1282_vm15 = vweird.f32 %v6297_v56  ;;  %vm6487_vm7 = vmor %vm1311_vm1, %vm1312_vm6 }
 0x1eb   :  { %4466 = vrsqrt.f32 %v6289_v59  ;;  %v1307_v25 = vmul.f32 %v6292_v28, %v1306_v40  ;;  %vm6529_vm14 = vmor %vm1281_vm4, %vm1282_vm15  ;;  %vm1291_vm1 = vweird.f32 %v6295_v18 }
 0x1ec   :  { %937 = vadd.xlane.f32.xlu0 %v936_v38  ;;  %v950_v38 = vmul.f32 0.020408163, %v5869_v58  ;;  %4468 = vrsqrt.f32 %v6295_v18  ;;  %v1230_v14 = vmul.f32 %v6228_v31, %v1229_v57  ;;  %v1258_v58 = vmul.f32 0.5, %v1257_v55 }
 0x1ed   :  { %v1277_v48 = vmul.f32 %v6297_v56, %v1276_v6  ;;  %v1240_v57 = vmul.f32 %v6242_v30, %v1239_v61  ;;  %v957_v61 = vmul.f32 0.020408163, %v5925_v35 }
 0x1ee   :  { %v6305_v26 = vpop.xlane.xlu1 %814  ;;  %v6307_v43 = vpop.xlane.xlu2 %817  ;;  %v6331_v7 = vadd.f32 1e-05, %v950_v38  ;;  %v1224_v38 = vsel %vm6339_vm8, %v6217_v32, %v1220_v46  ;;  %v1259_v47 = vsub.f32 1.5, %v1258_v58  ;;  %v1234_v55 = vsel %vm6353_vm11, %v6228_v31, %v1230_v14  ;;  %v1031_v32 = vld [vmem:[%s9869_s1] sm:$0xff]  ;;  %vm6515_vm11 = vmor %vm1271_vm3, %vm1272_vm13 }
 0x1ef   :  { %10251 = vst [vmem:[#allocation105_spill] sm:$0xff] %v6305_v26  ;;  %v6314_v51 = vpop.xlane.xlu0 %811  ;;  %v1267_v26 = vmul.f32 %v6283_v9, %v1266_v45  ;;  %v1308_v46 = vmul.f32 0.5, %v1307_v25  ;;  %v953_v58 = vmul.f32 0.020408163, %v5896_v15  ;;  %v952_v14 = vmul.f32 0.020408163, %v5905_v37 }
 0x1f0   :  { %10252 = vst [vmem:[#allocation106_spill] sm:$0xff] %v6307_v43  ;;  %v1248_v43 = vmul.f32 0.5, %v1247_v34  ;;  %v6333_v34 = vpop.eup %4464  ;;  %v2135_v12 = vmul.f32 %v1224_v38, %v1031_v32  ;;  %v6403_v37 = vadd.f32 1e-05, %v957_v61 }
 0x1f1   :  { %10253 = vst [vmem:[#allocation107_spill] sm:$0xff] %v6314_v51  ;;  %v6325_v51 = vadd.f32 1e-05, %v954_v5  ;;  %v6348_v45 = vpop.eup %4466  ;;  %v6357_v40 = vmul.f32 0.5, %v1267_v26  ;;  %v1032_v26 = vld [vmem:[%s9869_s1 + $0x8] sm:$0xff]  ;;  %v1336_v35 = vmul.f32 %v6333_v34, %v6287_v23  ;;  %vm1342_vm10 = vweird.f32 %v6333_v34 }
 0x1f2   :  { %v1249_v5 = vsub.f32 1.5, %v1248_v43  ;;  %v6362_v6 = vpop.eup %4468  ;;  %v1296_v21 = vmul.f32 %v6348_v45, %v6289_v59  ;;  %vm1302_vm8 = vweird.f32 %v6348_v45  ;;  %vm6572_vm15 = vmor %vm1341_vm9, %vm1342_vm10  ;;  %vm1331_vm9 = vweird.f32 %v6331_v7 }
 0x1f3   :  { %4470 = vrsqrt.f32 %v6325_v51  ;;  %v1286_v25 = vmul.f32 %v6362_v6, %v6295_v18  ;;  %v1337_v38 = vmul.f32 %v6333_v34, %v1336_v35  ;;  %vm1292_vm13 = vweird.f32 %v6362_v6 }
 0x1f4   :  { %4472 = vrsqrt.f32 %v6331_v7  ;;  %v1250_v15 = vmul.f32 %v6262_v22, %v1249_v5  ;;  %v1244_v5 = vsel %vm6393_vm12, %v6242_v30, %v1240_v57  ;;  %v1269_v30 = vsub.f32 1.5, %v6357_v40 }
 0x1f5   :  { %4474 = vrsqrt.f32 %v6346_v27  ;;  %v1297_v32 = vmul.f32 %v6348_v45, %v1296_v21  ;;  %v956_v21 = vmul.f32 0.020408163, %v5923_v53  ;;  %v2137_v40 = vmul.f32 %v1244_v5, %v1033_v36 }
 0x1f6   :  { %v6366_v43 = vpop.xlane.xlu1 %823  ;;  %v6368_v0 = vpop.xlane.xlu2 %826  ;;  %4476 = vrsqrt.f32 %v6403_v37  ;;  %v1338_v36 = vmul.f32 0.5, %v1337_v38  ;;  %v1270_v11 = vmul.f32 %v6283_v9, %v1269_v30  ;;  %vm1301_vm12 = vweird.f32 %v6289_v59 }
 0x1f7   :  { %10258 = vst [vmem:[#allocation108_spill] sm:$0xff] %v6366_v43  ;;  %v6383_v43 = vpop.xlane.xlu0 %820  ;;  %vm6610_vm4 = vmor %vm1301_vm12, %vm1302_vm8  ;;  %vm1371_vm6 = vweird.f32 %v6325_v51  ;;  %vm1321_vm10 = vweird.f32 %v6346_v27 }
 0x1f8   :  { %10259 = vst [vmem:[#allocation109_spill] sm:$0xff] %v6368_v0  ;;  %v1278_v0 = vmul.f32 0.5, %v1277_v48  ;;  %v2136_v48 = vmul.f32 %v1234_v55, %v1032_v26  ;;  %v1309_v26 = vsub.f32 1.5, %v1308_v46  ;;  %v6429_v46 = vadd.f32 1e-05, %v952_v14 }
 0x1f9   :  { %10260 = vst [vmem:[#allocation110_spill] sm:$0xff] %v6383_v43  ;;  %v1260_v43 = vmul.f32 %v6271_v3, %v1259_v47  ;;  %v6414_v47 = vadd.f32 1e-05, %v953_v58  ;;  %v6416_v61 = vpop.eup %4470  ;;  %v960_v14 = vmul.f32 0.020408163, %v5952_v1  ;;  %v6471_v55 = vmul.f32 0.5, %v1297_v32 }
 0x1fa   :  { %v1279_v57 = vsub.f32 1.5, %v1278_v0  ;;  %v6431_v35 = vpop.eup %4472  ;;  %v1287_v0 = vmul.f32 %v6362_v6, %v1286_v25  ;;  %v1254_v25 = vsel %vm6422_vm2, %v6262_v22, %v1250_v15  ;;  %v1366_v1 = vmul.f32 %v6416_v61, %v6325_v51  ;;  %vm6597_vm2 = vmor %vm1291_vm1, %vm1292_vm13  ;;  %v1042_v51 = vld [vmem:[%s9869_s1 + $0x58] sm:$0xff] }
 0x1fb   :  { %2234 = vperm.xlu2 %4446, %v2136_v48   ;;  %v6445_v58 = vpop.eup %4474  ;;  %v1034_v48 = vld [vmem:[%s9869_s1 + $0x18] sm:$0xff]  ;;  %v1264_v53 = vsel %vm6438_vm5, %v6271_v3, %v1260_v43  ;;  %4478 = vrsqrt.f32 %v6414_v47  ;;  %v1326_v22 = vmul.f32 %v6431_v35, %v6331_v7  ;;  %v955_v3 = vmul.f32 0.020408163, %v5932_v62 }
 0x1fc   :  { %2229 = vperm.xlu1 %4445, %v2135_v12   ;;  %v1310_v12 = vmul.f32 %v6292_v28, %v1309_v26  ;;  %4480 = vrsqrt.f32 %v6429_v46  ;;  %v1288_v43 = vmul.f32 0.5, %v1287_v0  ;;  %v1316_v15 = vmul.f32 %v6445_v58, %v6346_v27 }
 0x1fd   :  { %v6479_v26 = vadd.f32 1e-05, %v956_v21  ;;  %v2138_v38 = vmul.f32 %v1254_v25, %v1034_v48  ;;  %v1280_v32 = vmul.f32 %v6297_v56, %v1279_v57  ;;  %v6491_v62 = vadd.f32 1e-05, %v960_v14  ;;  %v1040_v57 = vld [vmem:[%s9869_s1 + $0x48] sm:$0xff] }
 0x1fe   :  { %v6449_v31 = vpop.xlane.xlu1 %832  ;;  %v6451_v20 = vpop.xlane.xlu2 %835  ;;  %v1339_v21 = vsub.f32 1.5, %v1338_v36  ;;  %v1367_v30 = vmul.f32 %v6416_v61, %v1366_v1  ;;  %v1314_v8 = vsel %vm6487_vm7, %v6292_v28, %v1310_v12  ;;  %v1299_v14 = vsub.f32 1.5, %v6471_v55 }
 0x1ff   :  { %10267 = vst [vmem:[#allocation111_spill] sm:$0xff] %v6449_v31  ;;  %v6466_v5 = vpop.xlane.xlu0 %829  ;;  %v1035_v31 = vld [vmem:[%s9869_s1 + $0x20] sm:$0xff]  ;;  %v6507_v48 = vadd.f32 1e-05, %v955_v3  ;;  %v1289_v28 = vsub.f32 1.5, %v1288_v43  ;;  %v1317_v12 = vmul.f32 %v6445_v58, %v1316_v15  ;;  %4482 = vrsqrt.f32 %v6479_v26 }
 0x200   :  { %10268 = vst [vmem:[#allocation112_spill] sm:$0xff] %v6466_v5  ;;  %2239 = vperm.xlu0 %4447, %v2137_v40   ;;  %v2139_v0 = vmul.f32 %v1264_v53, %v1035_v31  ;;  %v6502_v40 = vpop.eup %4476  ;;  %v1327_v31 = vmul.f32 %v6431_v35, %v1326_v22  ;;  %v959_v36 = vmul.f32 0.020408163, %v5950_v41  ;;  %4484 = vrsqrt.f32 %v6491_v62  ;;  %v1036_v41 = vld [vmem:[%s9869_s1 + $0x28] sm:$0xff] }
 0x201   :  { %v6509_v25 = vpop.eup %4478  ;;  %v963_v5 = vmul.f32 0.020408163, %v5979_v2  ;;  %v2144_v3 = vmul.f32 %v1314_v8, %v1040_v57  ;;  %v1274_v4 = vsel %vm6515_vm11, %v6283_v9, %v1270_v11  ;;  %v1340_v43 = vmul.f32 %v6333_v34, %v1339_v21 }
 0x202   :  { %v6523_v1 = vpop.eup %4480  ;;  %v1368_v15 = vmul.f32 0.5, %v1367_v30  ;;  %v1284_v57 = vsel %vm6529_vm14, %v6297_v56, %v1280_v32  ;;  %v6556_v8 = vmul.f32 0.5, %v1327_v31  ;;  %v1356_v9 = vmul.f32 %v6509_v25, %v6414_v47  ;;  %v1039_v56 = vld [vmem:[%s9869_s1 + $0x40] sm:$0xff] }
 0x203   :  { %2244 = vperm.xlu2 %4446, %v2138_v38   ;;  %v1396_v38 = vmul.f32 %v6502_v40, %v6403_v37  ;;  %4486 = vrsqrt.f32 %v6507_v48  ;;  %v958_v11 = vmul.f32 0.020408163, %v5959_v54  ;;  %v1318_v21 = vmul.f32 0.5, %v1317_v12 }
 0x204   :  { %2249 = vperm.xlu1 %4445, %v2139_v0   ;;  %v1037_v0 = vld [vmem:[%s9869_s1 + $0x30] sm:$0xff]  ;;  %v1346_v30 = vmul.f32 %v6523_v1, %v6429_v46  ;;  %v6564_v53 = vadd.f32 1e-05, %v959_v36  ;;  %v1290_v52 = vmul.f32 %v6362_v6, %v1289_v28  ;;  %v6576_v54 = vadd.f32 1e-05, %v963_v5 }
 0x205   :  { %v2141_v32 = vmul.f32 %v1284_v57, %v1037_v0  ;;  %v6578_v31 = vpop.eup %4482  ;;  %v1300_v12 = vmul.f32 %v6348_v45, %v1299_v14  ;;  %v1369_v36 = vsub.f32 1.5, %v1368_v15  ;;  %v1397_v28 = vmul.f32 %v6502_v40, %v1396_v38 }
 0x206   :  { %v6535_v55 = vpop.xlane.xlu1 %841  ;;  %v6537_v22 = vpop.xlane.xlu2 %844  ;;  %v1344_v23 = vsel %vm6572_vm15, %v6333_v34, %v1340_v43  ;;  %v1329_v5 = vsub.f32 1.5, %v6556_v8  ;;  %v1357_v14 = vmul.f32 %v6509_v25, %v1356_v9  ;;  %v1319_v38 = vsub.f32 1.5, %v1318_v21  ;;  %v1038_v9 = vld [vmem:[%s9869_s1 + $0x38] sm:$0xff] }
 0x207   :  { %v6548_v2 = vpop.xlane.xlu0 %838  ;;  %vm1372_vm3 = vweird.f32 %v6416_v61  ;;  %v1347_v34 = vmul.f32 %v6523_v1, %v1346_v30  ;;  %4488 = vrsqrt.f32 %v6564_v53  ;;  %v1294_v59 = vsel %vm6597_vm2, %v6362_v6, %v1290_v52 }
 0x208   :  { %10275 = vst [vmem:[#allocation113_spill] sm:$0xff] %v6548_v2  ;;  %2274 = vperm.xlu0 %4447, %v2144_v3   ;;  %v2140_v2 = vmul.f32 %v1274_v4, %v1036_v41  ;;  %v1043_v3 = vld [vmem:[%s9869_s1 + $0x60] sm:$0xff]  ;;  %v6588_v41 = vpop.eup %4484  ;;  %v6593_v4 = vadd.f32 1e-05, %v958_v11  ;;  %4490 = vrsqrt.f32 %v6576_v54  ;;  %v1370_v11 = vmul.f32 %v6416_v61, %v1369_v36  ;;  %vm6648_vm8 = vmor %vm1371_vm6, %vm1372_vm3 }
 0x209   :  { %v6604_v18 = vpop.eup %4486  ;;  %v2147_v8 = vmul.f32 %v1344_v23, %v1043_v3  ;;  %v1398_v21 = vmul.f32 0.5, %v1397_v28  ;;  %v1426_v30 = vmul.f32 %v6588_v41, %v6491_v62  ;;  %vm1332_vm5 = vweird.f32 %v6431_v35 }
 0x20a   :  { %v1386_v6 = vmul.f32 %v6578_v31, %v6479_v26  ;;  %4492 = vrsqrt.f32 %v6593_v4  ;;  %v1358_v52 = vmul.f32 0.5, %v1357_v14  ;;  %v1348_v36 = vmul.f32 0.5, %v1347_v34  ;;  %vm6683_vm13 = vmor %vm1331_vm9, %vm1332_vm5 }
 0x20b   :  { %2254 = vperm.xlu2 %4446, %v2140_v2   ;;  %v966_v2 = vmul.f32 0.020408163, %v6008_v13  ;;  %v1376_v28 = vmul.f32 %v6604_v18, %v6507_v48  ;;  %v2142_v3 = vmul.f32 %v1294_v59, %v1038_v9  ;;  %v1320_v23 = vmul.f32 %v6445_v58, %v1319_v38  ;;  %v1046_v38 = vld [vmem:[%s9869_s1 + $0x78] sm:$0xff] }
 0x20c   :  { %2259 = vperm.xlu1 %4445, %v2141_v32   ;;  %v1304_v32 = vsel %vm6610_vm4, %v6348_v45, %v1300_v12  ;;  %vm1322_vm7 = vweird.f32 %v6445_v58  ;;  %v1330_v14 = vmul.f32 %v6431_v35, %v1329_v5  ;;  %v1399_v34 = vsub.f32 1.5, %v1398_v21 }
 0x20d   :  { %v6652_v45 = vadd.f32 1e-05, %v966_v2  ;;  %v2143_v12 = vmul.f32 %v1304_v32, %v1039_v56  ;;  %v6654_v15 = vpop.eup %4488  ;;  %v1427_v43 = vmul.f32 %v6588_v41, %v1426_v30  ;;  %v1387_v5 = vmul.f32 %v6578_v31, %v1386_v6  ;;  %vm6672_vm11 = vmor %vm1321_vm10, %vm1322_vm7  ;;  %v1041_v6 = vld [vmem:[%s9869_s1 + $0x50] sm:$0xff] }
 0x20e   :  { %v6616_v0 = vpop.xlane.xlu1 %850  ;;  %v6618_v57 = vpop.xlane.xlu2 %853  ;;  %v962_v2 = vmul.f32 0.020408163, %v5977_v29  ;;  %v1359_v21 = vsub.f32 1.5, %v1358_v52  ;;  %vm1361_vm12 = vweird.f32 %v6414_v47  ;;  %vm1402_vm14 = vweird.f32 %v6502_v40 }
 0x20f   :  { %v6629_v13 = vpop.xlane.xlu0 %847  ;;  %v6664_v9 = vpop.eup %4490  ;;  %v1377_v7 = vmul.f32 %v6604_v18, %v1376_v28  ;;  %4494 = vrsqrt.f32 %v6652_v45  ;;  %v1324_v52 = vsel %vm6672_vm11, %v6445_v58, %v1320_v23  ;;  %v1428_v28 = vmul.f32 0.5, %v1427_v43 }
 0x210   :  { %2289 = vperm.xlu0 %4447, %v2147_v8   ;;  %v1374_v8 = vsel %vm6648_vm8, %v6416_v61, %v1370_v11  ;;  %v1349_v61 = vsub.f32 1.5, %v1348_v36  ;;  %v6679_v27 = vpop.eup %4492  ;;  %v961_v11 = vmul.f32 0.020408163, %v5986_v16  ;;  %v1400_v36 = vmul.f32 %v6502_v40, %v1399_v34 }
 0x211   :  { %v2150_v32 = vmul.f32 %v1374_v8, %v1046_v38  ;;  %v1456_v16 = vmul.f32 %v6664_v9, %v6576_v54  ;;  %vm1362_vm15 = vweird.f32 %v6509_v25  ;;  %v1388_v38 = vmul.f32 0.5, %v1387_v5 }
 0x212   :  { %vm1401_vm1 = vweird.f32 %v6403_v37  ;;  %v6712_v58 = vadd.f32 1e-05, %v962_v2  ;;  %v1378_v23 = vmul.f32 0.5, %v1377_v7  ;;  %v1416_v34 = vmul.f32 %v6654_v15, %v6564_v53  ;;  %vm6754_vm7 = vmor %vm1361_vm12, %vm1362_vm15 }
 0x213   :  { %2264 = vperm.xlu2 %4446, %v2142_v3   ;;  %v1406_v43 = vmul.f32 %v6679_v27, %v6593_v4  ;;  %v2145_v8 = vmul.f32 %v1324_v52, %v1041_v6  ;;  %v1350_v59 = vmul.f32 %v6523_v1, %v1349_v61  ;;  %vm1352_vm2 = vweird.f32 %v6523_v1  ;;  %vm6722_vm3 = vmor %vm1401_vm1, %vm1402_vm14  ;;  %v1049_v61 = vld [vmem:[%s9869_s1 + $0x90] sm:$0xff] }
 0x214   :  { %2269 = vperm.xlu1 %4445, %v2143_v12   ;;  %v1334_v12 = vsel %vm6683_vm13, %v6431_v35, %v1330_v14  ;;  %v6726_v37 = vadd.f32 1e-05, %v961_v11  ;;  %v1360_v5 = vmul.f32 %v6509_v25, %v1359_v21  ;;  %v1429_v2 = vsub.f32 1.5, %v1428_v28 }
 0x215   :  { %v2146_v14 = vmul.f32 %v1334_v12, %v1042_v51  ;;  %v1457_v7 = vmul.f32 %v6664_v9, %v1456_v16  ;;  %v1404_v29 = vsel %vm6722_vm3, %v6502_v40, %v1400_v36  ;;  %vm1351_vm4 = vweird.f32 %v6429_v46  ;;  %v1044_v51 = vld [vmem:[%s9869_s1 + $0x68] sm:$0xff] }
 0x216   :  { %v6689_v30 = vpop.xlane.xlu1 %859  ;;  %v6691_v56 = vpop.xlane.xlu2 %862  ;;  %v1389_v11 = vsub.f32 1.5, %v1388_v38  ;;  %4496 = vrsqrt.f32 %v6712_v58  ;;  %v965_v21 = vmul.f32 0.020408163, %v6006_v17  ;;  %vm6743_vm5 = vmor %vm1351_vm4, %vm1352_vm2  ;;  %v1379_v52 = vsub.f32 1.5, %v1378_v23 }
 0x217   :  { %v6702_v3 = vpop.xlane.xlu0 %856  ;;  %v1417_v28 = vmul.f32 %v6654_v15, %v1416_v34  ;;  %vm1432_vm6 = vweird.f32 %v6588_v41  ;;  %v1407_v40 = vmul.f32 %v6679_v27, %v1406_v43  ;;  %4498 = vrsqrt.f32 %v6726_v37 }
 0x218   :  { %2304 = vperm.xlu0 %4447, %v2150_v32   ;;  %v6736_v32 = vpop.eup %4494  ;;  %v969_v46 = vmul.f32 0.020408163, %v6039_v49  ;;  %v2153_v16 = vmul.f32 %v1404_v29, %v1049_v61  ;;  %v1354_v12 = vsel %vm6743_vm5, %v6523_v1, %v1350_v59  ;;  %v1430_v47 = vmul.f32 %v6588_v41, %v1429_v2  ;;  %v1045_v49 = vld [vmem:[%s9869_s1 + $0x70] sm:$0xff] }
 0x219   :  { %v1458_v38 = vmul.f32 0.5, %v1457_v7  ;;  %v1486_v23 = vmul.f32 %v6736_v32, %v6652_v45  ;;  %v1364_v43 = vsel %vm6754_vm7, %v6509_v25, %v1360_v5  ;;  %vm1392_vm8 = vweird.f32 %v6578_v31 }
 0x21a   :  { %vm1431_vm9 = vweird.f32 %v6491_v62  ;;  %v6781_v1 = vadd.f32 1e-05, %v965_v21  ;;  %vm1382_vm10 = vweird.f32 %v6604_v18  ;;  %v1418_v59 = vmul.f32 0.5, %v1417_v28 }
 0x21b   :  { %2279 = vperm.xlu2 %4446, %v2145_v8   ;;  %v1408_v35 = vmul.f32 0.5, %v1407_v40  ;;  %v1390_v7 = vmul.f32 %v6578_v31, %v1389_v11  ;;  %v1380_v25 = vmul.f32 %v6604_v18, %v1379_v52  ;;  %vm6792_vm11 = vmor %vm1431_vm9, %vm1432_vm6  ;;  %v6796_v5 = vadd.f32 1e-05, %v969_v46  ;;  %v1052_v11 = vld [vmem:[%s9869_s1 + $0xa8] sm:$0xff] }
 0x21c   :  { %2284 = vperm.xlu1 %4445, %v2146_v14   ;;  %v2148_v14 = vmul.f32 %v1354_v12, %v1044_v51  ;;  %v6786_v2 = vpop.eup %4496  ;;  %v2149_v61 = vmul.f32 %v1364_v43, %v1045_v49  ;;  %v1459_v29 = vsub.f32 1.5, %v1458_v38  ;;  %v1487_v21 = vmul.f32 %v6736_v32, %v1486_v23  ;;  %v1048_v23 = vld [vmem:[%s9869_s1 + $0x88] sm:$0xff] }
 0x21d   :  { %v964_v6 = vmul.f32 0.020408163, %v6015_v24  ;;  %v1434_v52 = vsel %vm6792_vm11, %v6588_v41, %v1430_v47  ;;  %v6806_v28 = vpop.eup %4498  ;;  %vm1381_vm12 = vweird.f32 %v6507_v48  ;;  %4500 = vrsqrt.f32 %v6781_v1  ;;  %v1047_v48 = vld [vmem:[%s9869_s1 + $0x80] sm:$0xff] }
 0x21e   :  { %v6760_v36 = vpop.xlane.xlu2 %871  ;;  %v6783_v8 = vpop.xlane.xlu1 %868  ;;  %v968_v40 = vmul.f32 0.020408163, %v6037_v60  ;;  %vm1391_vm14 = vweird.f32 %v6479_v26  ;;  %vm6814_vm13 = vmor %vm1381_vm12, %vm1382_vm10  ;;  %v1419_v17 = vsub.f32 1.5, %v1418_v59  ;;  %v1409_v46 = vsub.f32 1.5, %v1408_v35 }
 0x21f   :  { %10294 = vst [vmem:[#allocation114_spill] sm:$0xff] %v6760_v36  ;;  %v6771_v34 = vpop.xlane.xlu0 %865  ;;  %vm6820_vm15 = vmor %vm1391_vm14, %vm1392_vm8  ;;  %vm1462_vm1 = vweird.f32 %v6664_v9  ;;  %4502 = vrsqrt.f32 %v6796_v5  ;;  %v2156_v26 = vmul.f32 %v1434_v52, %v1052_v11  ;;  %v1460_v51 = vmul.f32 %v6664_v9, %v1459_v29 }
 0x220   :  { %10295 = vst [vmem:[#allocation115_spill] sm:$0xff] %v6771_v34  ;;  %2319 = vperm.xlu0 %4447, %v2153_v16   ;;  %v1384_v16 = vsel %vm6814_vm13, %v6604_v18, %v1380_v25  ;;  %v1488_v12 = vmul.f32 0.5, %v1487_v21  ;;  %v6835_v47 = vadd.f32 1e-05, %v964_v6  ;;  %v1394_v49 = vsel %vm6820_vm15, %v6578_v31, %v1390_v7  ;;  %v1055_v21 = vld [vmem:[%s9869_s1 + $0xc0] sm:$0xff] }
 0x221   :  { %10296 = vst [vmem:[#allocation116_spill] sm:$0xff] %v6783_v8  ;;  %vm1421_vm2 = vweird.f32 %v6564_v53  ;;  %v1446_v18 = vmul.f32 %v6786_v2, %v6712_v58  ;;  %v1436_v43 = vmul.f32 %v6806_v28, %v6726_v37  ;;  %v6850_v59 = vadd.f32 1e-05, %v968_v40 }
 0x222   :  { %vm1422_vm3 = vweird.f32 %v6654_v15  ;;  %vm1461_vm4 = vweird.f32 %v6576_v54  ;;  %v967_v35 = vmul.f32 0.020408163, %v6046_v44  ;;  %v1410_v31 = vmul.f32 %v6679_v27, %v1409_v46 }
 0x223   :  { %2294 = vperm.xlu2 %4446, %v2148_v14   ;;  %v2151_v14 = vmul.f32 %v1384_v16, %v1047_v48  ;;  %v6855_v25 = vpop.eup %4500  ;;  %vm1412_vm5 = vweird.f32 %v6679_v27  ;;  %vm6861_vm6 = vmor %vm1461_vm4, %vm1462_vm1  ;;  %v972_v62 = vmul.f32 0.020408163, %v6070_v10  ;;  %v2152_v54 = vmul.f32 %v1394_v49, %v1048_v23  ;;  %v1050_v16 = vld [vmem:[%s9869_s1 + $0x98] sm:$0xff] }
 0x224   :  { %2299 = vperm.xlu1 %4445, %v2149_v61   ;;  %v1420_v44 = vmul.f32 %v6654_v15, %v1419_v17  ;;  %v1489_v29 = vsub.f32 1.5, %v1488_v12  ;;  %4504 = vrsqrt.f32 %v6835_v47  ;;  %v1464_v6 = vsel %vm6861_vm6, %v6664_v9, %v1460_v51  ;;  %vm6898_vm10 = vmor %vm1421_vm2, %vm1422_vm3 }
 0x225   :  { %v6876_v11 = vpop.eup %4502  ;;  %vm1411_vm7 = vweird.f32 %v6593_v4  ;;  %v1447_v10 = vmul.f32 %v6786_v2, %v1446_v18  ;;  %v1437_v52 = vmul.f32 %v6806_v28, %v1436_v43  ;;  %4506 = vrsqrt.f32 %v6850_v59 }
 0x226   :  { %v6826_v60 = vpop.xlane.xlu2 %880  ;;  %v6866_v61 = vpop.xlane.xlu1 %877  ;;  %vm6884_vm8 = vmor %vm1411_vm7, %vm1412_vm5  ;;  %v1476_v9 = vmul.f32 %v6855_v25, %v6781_v1  ;;  %vm1492_vm9 = vweird.f32 %v6736_v32  ;;  %v6891_v24 = vadd.f32 1e-05, %v967_v35  ;;  %v971_v4 = vmul.f32 0.020408163, %v6068_v63 }
 0x227   :  { %10303 = vst [vmem:[#allocation117_spill] sm:$0xff] %v6826_v60  ;;  %v6837_v38 = vpop.xlane.xlu0 %874  ;;  %v6902_v46 = vadd.f32 1e-05, %v972_v62  ;;  %v970_v41 = vmul.f32 0.020408163, %v6077_v42  ;;  %v2159_v48 = vmul.f32 %v1464_v6, %v1055_v21  ;;  %v1414_v63 = vsel %vm6884_vm8, %v6679_v27, %v1410_v31  ;;  %v1051_v42 = vld [vmem:[%s9869_s1 + $0xa0] sm:$0xff] }
 0x228   :  { %10304 = vst [vmem:[#allocation118_spill] sm:$0xff] %v6837_v38  ;;  %2334 = vperm.xlu0 %4447, %v2156_v26   ;;  %v1490_v53 = vmul.f32 %v6736_v32, %v1489_v29  ;;  %v1516_v51 = vmul.f32 %v6876_v11, %v6796_v5  ;;  %v974_v12 = vmul.f32 0.020408163, %v6101_v50  ;;  %v1424_v49 = vsel %vm6898_vm10, %v6654_v15, %v1420_v44  ;;  %v1058_v44 = vld [vmem:[%s9869_s1 + $0xd8] sm:$0xff]  ;;  %v10320_v15 = vld [vmem:[#allocation47_spill] sm:$0xff] }
 0x229   :  { %10307 = vst [vmem:[#allocation119_spill] sm:$0xff] %v6866_v61  ;;  %v1438_v18 = vmul.f32 0.5, %v1437_v52  ;;  %vm1491_vm11 = vweird.f32 %v6652_v45  ;;  %v975_v27 = vmul.f32 0.020408163, %v6103_v39  ;;  %v1448_v35 = vmul.f32 0.5, %v1447_v10  ;;  %v10338_v61 = vld [vmem:[#allocation99_spill] sm:$0xff] }
 0x22a   :  { %v6927_v43 = vpop.eup %4504  ;;  %4508 = vrsqrt.f32 %v6891_v24  ;;  %v6930_v50 = vadd.f32 1e-05, %v971_v4  ;;  %vm6936_vm12 = vmor %vm1491_vm11, %vm1492_vm9  ;;  %v6941_v39 = vadd.f32 1e-05, %v970_v41  ;;  %v2155_v45 = vmul.f32 %v1424_v49, %v1051_v42 }
 0x22b   :  { %2309 = vperm.xlu2 %4446, %v2151_v14   ;;  %v2154_v14 = vmul.f32 %v1414_v63, %v1050_v16  ;;  %v6932_v31 = vpop.eup %4506  ;;  %4510 = vrsqrt.f32 %v6902_v46  ;;  %v1477_v7 = vmul.f32 %v6855_v25, %v1476_v9  ;;  %v1517_v62 = vmul.f32 %v6876_v11, %v1516_v51 }
 0x22c   :  { %2314 = vperm.xlu1 %4445, %v2152_v54   ;;  %v6945_v54 = vadd.f32 1e-05, %v974_v12  ;;  %v1494_v29 = vsel %vm6936_vm12, %v6736_v32, %v1490_v53  ;;  %v1439_v21 = vsub.f32 1.5, %v1438_v18  ;;  %v1466_v6 = vmul.f32 %v6927_v43, %v6835_v47 }
 0x22d   :  { %v6955_v10 = vadd.f32 1e-05, %v975_v27  ;;  %v1449_v40 = vsub.f32 1.5, %v1448_v35  ;;  %v1506_v9 = vmul.f32 %v6932_v31, %v6850_v59  ;;  %4512 = vrsqrt.f32 %v6930_v50  ;;  %v10319_v27 = vld [vmem:[#allocation43_spill] sm:$0xff] }
 0x22e   :  { %v6905_v26 = vpop.xlane.xlu2 %889  ;;  %v6957_v52 = vpop.xlane.xlu1 %886  ;;  %v973_v4 = vmul.f32 0.020408163, %v6110_v19  ;;  %vm1452_vm14 = vweird.f32 %v6786_v2  ;;  %4514 = vrsqrt.f32 %v6941_v39  ;;  %v2162_v17 = vmul.f32 %v1494_v29, %v1058_v44  ;;  %v10328_v29 = vld [vmem:[#allocation57_spill] sm:$0xff] }
 0x22f   :  { %10312 = vst [vmem:[#allocation120_spill] sm:$0xff] %v6905_v26  ;;  %v6917_v23 = vpop.xlane.xlu0 %883  ;;  %vm1442_vm13 = vweird.f32 %v6806_v28  ;;  %v1518_v16 = vmul.f32 0.5, %v1517_v62  ;;  %4516 = vrsqrt.f32 %v6945_v54  ;;  %v1440_v53 = vmul.f32 %v6806_v28, %v1439_v21 }
 0x230   :  { %10313 = vst [vmem:[#allocation121_spill] sm:$0xff] %v6917_v23  ;;  %2349 = vperm.xlu0 %4447, %v2159_v48   ;;  %v6967_v41 = vpop.eup %4508  ;;  %v1478_v48 = vmul.f32 0.5, %v1477_v7  ;;  %v1467_v19 = vmul.f32 %v6927_v43, %v1466_v6  ;;  %4518 = vrsqrt.f32 %v6955_v10  ;;  %v977_v51 = vmul.f32 0.020408163, %v6134_v33  ;;  %v10336_v23 = vld [vmem:[#allocation98_spill] sm:$0xff] }
 0x231   :  { %10316 = vst [vmem:[#allocation122_spill] sm:$0xff] %v6957_v52  ;;  %v6971_v63 = vpop.eup %4510  ;;  %v1450_v42 = vmul.f32 %v6786_v2, %v1449_v40  ;;  %v1507_v49 = vmul.f32 %v6932_v31, %v1506_v9  ;;  %v6981_v18 = vadd.f32 1e-05, %v973_v4  ;;  %v978_v35 = vmul.f32 0.020408163, %v10319_v27  ;;  %v1053_v40 = vld [vmem:[%s9869_s1 + $0xb0] sm:$0xff] }
 0x232   :  { %vm1451_vm15 = vweird.f32 %v6712_v58  ;;  %vm1441_vm1 = vweird.f32 %v6726_v37  ;;  %v976_v33 = vmul.f32 0.020408163, %v10320_v15  ;;  %v1479_v62 = vsub.f32 1.5, %v1478_v48  ;;  %v10325_v27 = vld [vmem:[#allocation53_spill] sm:$0xff] }
 0x233   :  { %2324 = vperm.xlu2 %4446, %v2154_v14   ;;  %v1496_v14 = vmul.f32 %v6967_v41, %v6891_v24  ;;  %vm6993_vm2 = vmor %vm1441_vm1, %vm1442_vm13  ;;  %v1519_v44 = vsub.f32 1.5, %v1518_v16  ;;  %vm1521_vm3 = vweird.f32 %v6796_v5  ;;  %v1546_v58 = vmul.f32 %v6971_v63, %v6902_v46  ;;  %v1054_v16 = vld [vmem:[%s9869_s1 + $0xb8] sm:$0xff] }
 0x234   :  { %2329 = vperm.xlu1 %4445, %v2155_v45   ;;  %v6989_v45 = vpop.eup %4512  ;;  %vm7004_vm4 = vmor %vm1451_vm15, %vm1452_vm14  ;;  %vm1482_vm5 = vweird.f32 %v6855_v25  ;;  %v1468_v21 = vmul.f32 0.5, %v1467_v19  ;;  %vm1522_vm6 = vweird.f32 %v6876_v11  ;;  %v7010_v6 = vadd.f32 1e-05, %v977_v51 }
 0x235   :  { %v7000_v37 = vpop.eup %4514  ;;  %v1444_v9 = vsel %vm6993_vm2, %v6806_v28, %v1440_v53  ;;  %vm1472_vm7 = vweird.f32 %v6927_v43  ;;  %4520 = vrsqrt.f32 %v6981_v18  ;;  %v7022_v48 = vadd.f32 1e-05, %v978_v35  ;;  %vm7068_vm11 = vmor %vm1521_vm3, %vm1522_vm6 }
 0x236   :  { %v6965_v32 = vpop.xlane.xlu2 %898  ;;  %v7018_v4 = vpop.eup %4516  ;;  %v1454_v19 = vsel %vm7004_vm4, %v6786_v2, %v1450_v42  ;;  %vm1481_vm8 = vweird.f32 %v6781_v1  ;;  %v1497_v28 = vmul.f32 %v6967_v41, %v1496_v14  ;;  %v1536_v53 = vmul.f32 %v6989_v45, %v6930_v50 }
 0x237   :  { %10317 = vst [vmem:[#allocation123_spill] sm:$0xff] %v6965_v32  ;;  %v6977_v12 = vpop.xlane.xlu0 %892  ;;  %v7030_v51 = vpop.eup %4518  ;;  %v980_v35 = vmul.f32 0.020408163, %v10325_v27  ;;  %vm1471_vm9 = vweird.f32 %v6835_v47  ;;  %v1520_v2 = vmul.f32 %v6876_v11, %v1519_v44  ;;  %v1547_v42 = vmul.f32 %v6971_v63, %v1546_v58  ;;  %vm7106_vm1 = vmor %vm1481_vm8, %vm1482_vm5 }
 0x238   :  { %10318 = vst [vmem:[#allocation124_spill] sm:$0xff] %v6977_v12  ;;  %2364 = vperm.xlu0 %4447, %v2162_v17   ;;  %v1508_v17 = vmul.f32 0.5, %v1507_v49  ;;  %v7036_v49 = vadd.f32 1e-05, %v976_v33  ;;  %v7039_v15 = vpop.xlane.xlu1 %895  ;;  %v981_v12 = vmul.f32 0.020408163, %v10328_v29  ;;  %v2157_v14 = vmul.f32 %v1444_v9, %v1053_v40  ;;  %vm1473_vm3 = vmor %vm1471_vm9, %vm1472_vm7 }
 0x239   :  { %10326 = vst [vmem:[#allocation43_spill] sm:$0xff] %v7039_v15  ;;  %v1526_v32 = vmul.f32 %v7000_v37, %v6941_v39  ;;  %v1566_v33 = vmul.f32 %v7018_v4, %v6945_v54  ;;  %4522 = vrsqrt.f32 %v7010_v6  ;;  %v2158_v27 = vmul.f32 %v1454_v19, %v1054_v16  ;;  %v10332_v16 = vld [vmem:[#allocation94_spill] sm:$0xff] }
 0x23a   :  { %v1469_v15 = vsub.f32 1.5, %v1468_v21  ;;  %v1576_v52 = vmul.f32 %v7030_v51, %v6955_v10  ;;  %4524 = vrsqrt.f32 %v7022_v48  ;;  %v1480_v44 = vmul.f32 %v6855_v25, %v1479_v62  ;;  %v1056_v21 = vld [vmem:[%s9869_s1 + $0xc8] sm:$0xff] }
 0x23b   :  { %2339 = vperm.xlu2 %4446, %v2157_v14   ;;  %v1498_v58 = vmul.f32 0.5, %v1497_v28  ;;  %4526 = vrsqrt.f32 %v7036_v49  ;;  %v7057_v40 = vadd.f32 1e-05, %v980_v35  ;;  %v7061_v29 = vpop.eup %4520  ;;  %vm1512_vm10 = vweird.f32 %v6932_v31 }
 0x23c   :  { %2344 = vperm.xlu1 %4445, %v2158_v27   ;;  %v1537_v62 = vmul.f32 %v6989_v45, %v1536_v53  ;;  %v979_v19 = vmul.f32 0.020408163, %v10332_v16  ;;  %v1548_v28 = vmul.f32 0.5, %v1547_v42  ;;  %v1527_v35 = vmul.f32 %v7000_v37, %v1526_v32  ;;  %v1061_v27 = vld [vmem:[%s9869_s1 + $0xf0] sm:$0xff] }
 0x23d   :  { %v1567_v14 = vmul.f32 %v7018_v4, %v1566_v33  ;;  %v1524_v5 = vsel %vm7068_vm11, %v6876_v11, %v1520_v2  ;;  %vm1511_vm12 = vweird.f32 %v6850_v59  ;;  %vm1502_vm14 = vweird.f32 %v6967_v41 }
 0x23e   :  { %v7041_v7 = vpop.xlane.xlu2 %907  ;;  %v1577_v32 = vmul.f32 %v7030_v51, %v1576_v52  ;;  %v1499_v42 = vsub.f32 1.5, %v1498_v58  ;;  %vm1551_vm13 = vweird.f32 %v6902_v46  ;;  %vm1552_vm15 = vweird.f32 %v6971_v63  ;;  %vm7170_vm7 = vmor %vm1511_vm12, %vm1512_vm10 }
 0x23f   :  { %10327 = vst [vmem:[#allocation47_spill] sm:$0xff] %v7041_v7  ;;  %v1509_v7 = vsub.f32 1.5, %v1508_v17  ;;  %v7059_v9 = vpop.xlane.xlu0 %901  ;;  %v7073_v17 = vadd.f32 1e-05, %v981_v12  ;;  %v7091_v53 = vpop.eup %4522  ;;  %v1556_v11 = vmul.f32 %v7061_v29, %v6981_v18  ;;  %4528 = vrsqrt.f32 %v7057_v40  ;;  %vm7189_vm9 = vmor %vm1551_vm13, %vm1552_vm15 }
 0x240   :  { %10329 = vst [vmem:[#allocation53_spill] sm:$0xff] %v7059_v9  ;;  %v1470_v9 = vmul.f32 %v6927_v43, %v1469_v15  ;;  %vm1501_vm2 = vweird.f32 %v6891_v24  ;;  %v7111_v2 = vmul.f32 0.5, %v1537_v62  ;;  %v7114_v33 = vadd.f32 1e-05, %v979_v19  ;;  %v7130_v26 = vpop.xlane.xlu1 %904  ;;  %v1060_v24 = vld [vmem:[%s9869_s1 + $0xe8] sm:$0xff] }
 0x241   :  { %v7086_v12 = vmul.f32 %v6932_v31, %v1509_v7  ;;  %v7100_v7 = vpop.eup %4524  ;;  %4530 = vrsqrt.f32 %v7073_v17  ;;  %v2165_v58 = vmul.f32 %v1524_v5, %v1061_v27  ;;  %v1549_v1 = vsub.f32 1.5, %v1548_v28  ;;  %10337 = vst [vmem:[#allocation94_spill] sm:$0xff] %v7130_v26  ;;  %v1057_v27 = vld [vmem:[%s9869_s1 + $0xd0] sm:$0xff]  ;;  %vm7206_vm11 = vmor %vm1501_vm2, %vm1502_vm14 }
 0x242   :  { %v7119_v16 = vpop.eup %4526  ;;  %v7127_v62 = vmul.f32 0.5, %v1567_v14  ;;  %v983_v19 = vmul.f32 0.020408163, %v10336_v23  ;;  %v1578_v5 = vmul.f32 0.5, %v1577_v32  ;;  %v984_v38 = vmul.f32 0.020408163, %v10338_v61 }
 0x243   :  { %2379 = vperm.xlu0 %4447, %v2165_v58   ;;  %v1474_v47 = vsel %vm1473_vm3, %v6927_v43, %v1470_v9  ;;  %v1484_v28 = vsel %vm7106_vm1, %v6855_v25, %v1480_v44  ;;  %v1596_v23 = vmul.f32 %v7091_v53, %v7010_v6  ;;  %v10339_v14 = vld [vmem:[#allocation100_spill] sm:$0xff]  ;;  %v1606_v32 = vmul.f32 %v7100_v7, %v7022_v48 }
 0x244   :  { %v982_v26 = vmul.f32 0.020408163, %v10339_v14  ;;  %v2160_v60 = vmul.f32 %v1474_v47, %v1056_v21  ;;  %v1586_v61 = vmul.f32 %v7119_v16, %v7036_v49  ;;  %4532 = vrsqrt.f32 %v7114_v33  ;;  %v10348_v14 = vld [vmem:[#allocation103_spill] sm:$0xff] }
 0x245   :  { %v2161_v43 = vmul.f32 %v1484_v28, %v1057_v27  ;;  %v7149_v9 = vpop.eup %4528  ;;  %v1500_v25 = vmul.f32 %v6967_v41, %v1499_v42  ;;  %v1550_v44 = vmul.f32 %v6971_v63, %v1549_v1  ;;  %vm1581_vm4 = vweird.f32 %v6955_v10 }
 0x246   :  { %v7098_v15 = vpop.xlane.xlu2 %916  ;;  %2354 = vperm.xlu2 %4446, %v2160_v60   ;;  %v1539_v21 = vsub.f32 1.5, %v7111_v2  ;;  %vm1532_vm5 = vweird.f32 %v7000_v37  ;;  %vm1582_vm6 = vweird.f32 %v7030_v51  ;;  %v7164_v42 = vadd.f32 1e-05, %v984_v38  ;;  %v1064_v38 = vld [vmem:[%s9869_s1 + $0x108] sm:$0xff] }
 0x247   :  { %10333 = vst [vmem:[#allocation57_spill] sm:$0xff] %v7098_v15  ;;  %v7125_v15 = vmul.f32 0.5, %v1527_v35  ;;  %v1557_v35 = vmul.f32 %v7061_v29, %v1556_v11  ;;  %v7154_v11 = vadd.f32 1e-05, %v983_v19  ;;  %v7156_v52 = vpop.xlane.xlu0 %910  ;;  %v7158_v58 = vpop.eup %4530  ;;  %2359 = vperm.xlu1 %4445, %v2161_v43   ;;  %vm1542_vm8 = vweird.f32 %v6989_v45  ;;  %vm7256_vm14 = vmor %vm1581_vm4, %vm1582_vm6 }
 0x248   :  { %10340 = vst [vmem:[#allocation98_spill] sm:$0xff] %v7156_v52  ;;  %v1569_v2 = vsub.f32 1.5, %v7127_v62  ;;  %v7178_v19 = vadd.f32 1e-05, %v982_v26  ;;  %vm1531_vm10 = vweird.f32 %v6941_v39  ;;  %v1597_v62 = vmul.f32 %v7091_v53, %v1596_v23  ;;  %v7234_v34 = vpop.xlane.xlu1 %913 }
 0x249   :  { %v1529_v47 = vsub.f32 1.5, %v7125_v15  ;;  %v1579_v15 = vsub.f32 1.5, %v1578_v5  ;;  %v7176_v1 = vmul.f32 0.5, %v1557_v35  ;;  %v1607_v26 = vmul.f32 %v7100_v7, %v1606_v32  ;;  %v1059_v35 = vld [vmem:[%s9869_s1 + $0xe0] sm:$0xff]  ;;  %vm1533_vm4 = vmor %vm1531_vm10, %vm1532_vm5 }
 0x24a   :  { %v1587_v5 = vmul.f32 %v7119_v16, %v1586_v61  ;;  %v1626_v28 = vmul.f32 %v7149_v9, %v7057_v40  ;;  %vm1541_vm12 = vweird.f32 %v6930_v50  ;;  %v1636_v23 = vmul.f32 %v7158_v58, %v7073_v17  ;;  %v7221_v43 = vpop.eup %4532 }
 0x24b   :  { %4534 = vrsqrt.f32 %v7154_v11  ;;  %v987_v32 = vmul.f32 0.020408163, %v10348_v14  ;;  %v1554_v61 = vsel %vm7189_vm9, %v6971_v63, %v1550_v44  ;;  %v1504_v52 = vsel %vm7206_vm11, %v6967_v41, %v1500_v25  ;;  %v10349_v44 = vld [vmem:[#allocation102_spill] sm:$0xff] }
 0x24c   :  { %4536 = vrsqrt.f32 %v7164_v42  ;;  %v1514_v14 = vsel %vm7170_vm7, %v6932_v31, %v7086_v12  ;;  %v1580_v63 = vmul.f32 %v7030_v51, %v1579_v15  ;;  %v986_v59 = vmul.f32 0.020408163, %v10349_v44  ;;  %vm1543_vm7 = vmor %vm1541_vm12, %vm1542_vm8 }
 0x24d   :  { %4538 = vrsqrt.f32 %v7178_v19  ;;  %v2163_v8 = vmul.f32 %v1504_v52, %v1059_v35  ;;  %v7236_v36 = vmul.f32 0.5, %v1597_v62  ;;  %v7240_v46 = vmul.f32 0.5, %v1587_v5 }
 0x24e   :  { %v7183_v27 = vpop.xlane.xlu2 %925  ;;  %v2164_v41 = vmul.f32 %v1514_v14, %v1060_v24  ;;  %v1540_v25 = vmul.f32 %v6989_v45, %v1539_v21  ;;  %v1627_v31 = vmul.f32 %v7149_v9, %v1626_v28  ;;  %v1616_v12 = vmul.f32 %v7221_v43, %v7114_v33  ;;  %v1062_v24 = vld [vmem:[%s9869_s1 + $0xf8] sm:$0xff] }
 0x24f   :  { %10343 = vst [vmem:[#allocation99_spill] sm:$0xff] %v7183_v27  ;;  %v2168_v27 = vmul.f32 %v1554_v61, %v1064_v38  ;;  %v7238_v38 = vmul.f32 0.5, %v1607_v26  ;;  %v7246_v60 = vadd.f32 1e-05, %v987_v32  ;;  %2369 = vperm.xlu2 %4446, %v2163_v8   ;;  %v1530_v52 = vmul.f32 %v7000_v37, %v1529_v47  ;;  %v7270_v47 = vpop.xlane.xlu0 %919  ;;  %v10354_v32 = vld [vmem:[#allocation104_spill] sm:$0xff] }
 0x250   :  { %v7250_v15 = vmul.f32 %v7018_v4, %v1569_v2  ;;  %vm1562_vm13 = vweird.f32 %v7061_v29  ;;  %v1637_v21 = vmul.f32 %v7158_v58, %v1636_v23  ;;  %2374 = vperm.xlu1 %4445, %v2164_v41   ;;  %vm1572_vm15 = vweird.f32 %v7018_v4  ;;  %10352 = vst [vmem:[#allocation100_spill] sm:$0xff] %v7270_v47  ;;  %v1067_v2 = vld [vmem:[%s9869_s1 + $0x120] sm:$0xff] }
 0x251   :  { %2394 = vperm.xlu0 %4447, %v2168_v27   ;;  %v7262_v62 = vpop.eup %4534  ;;  %v1559_v8 = vsub.f32 1.5, %v7176_v1  ;;  %vm1561_vm1 = vweird.f32 %v6981_v18  ;;  %vm1612_vm2 = vweird.f32 %v7100_v7  ;;  %v7268_v10 = vadd.f32 1e-05, %v986_v59  ;;  %v1063_v59 = vld [vmem:[%s9869_s1 + $0x100] sm:$0xff]  ;;  %v1065_v18 = vld [vmem:[%s9869_s1 + $0x110] sm:$0xff] }
 0x252   :  { %v1584_v26 = vsel %vm7256_vm14, %v7030_v51, %v1580_v63  ;;  %v7280_v28 = vpop.eup %4536  ;;  %v1599_v1 = vsub.f32 1.5, %v7236_v36  ;;  %v1609_v35 = vsub.f32 1.5, %v7238_v38  ;;  %vm1611_vm3 = vweird.f32 %v7022_v48  ;;  %v10355_v63 = vld [vmem:[#allocation105_spill] sm:$0xff]  ;;  %v10356_v38 = vld [vmem:[#allocation106_spill] sm:$0xff]  ;;  %vm7353_vm12 = vmor %vm1561_vm1, %vm1562_vm13 }
 0x253   :  { %v1589_v23 = vsub.f32 1.5, %v7240_v46  ;;  %v985_v61 = vmul.f32 0.020408163, %v10354_v32  ;;  %v7290_v14 = vpop.eup %4538  ;;  %vm1571_vm6 = vweird.f32 %v6945_v54  ;;  %v7297_v36 = vmul.f32 0.5, %v1627_v31  ;;  %vm1613_vm13 = vmor %vm1611_vm3, %vm1612_vm2 }
 0x254   :  { %v1617_v51 = vmul.f32 %v7221_v43, %v1616_v12  ;;  %4540 = vrsqrt.f32 %v7246_v60  ;;  %v989_v44 = vmul.f32 0.020408163, %v10355_v63  ;;  %v1638_v39 = vmul.f32 0.5, %v1637_v21  ;;  %vm1573_vm1 = vmor %vm1571_vm6, %vm1572_vm15 }
 0x255   :  { %v990_v46 = vmul.f32 0.020408163, %v10356_v38  ;;  %v2171_v41 = vmul.f32 %v1584_v26, %v1067_v2  ;;  %v1534_v31 = vsel %vm1533_vm4, %v7000_v37, %v1530_v52  ;;  %v1656_v12 = vmul.f32 %v7262_v62, %v7154_v11 }
 0x256   :  { %v7278_v5 = vpop.xlane.xlu2 %934  ;;  %4542 = vrsqrt.f32 %v7268_v10  ;;  %v2166_v27 = vmul.f32 %v1534_v31, %v1062_v24  ;;  %v1544_v32 = vsel %vm1543_vm7, %v6989_v45, %v1540_v25  ;;  %v1666_v63 = vmul.f32 %v7280_v28, %v7164_v42  ;;  %v10357_v24 = vld [vmem:[#allocation107_spill] sm:$0xff]  ;;  %v7328_v25 = vpop.xlane.xlu1 %922  ;;  %v1070_v31 = vld [vmem:[%s9869_s1 + $0x138] sm:$0xff] }
 0x257   :  { %10353 = vst [vmem:[#allocation103_spill] sm:$0xff] %v7278_v5  ;;  %v1646_v50 = vmul.f32 %v7290_v14, %v7178_v19  ;;  %v7319_v21 = vadd.f32 1e-05, %v985_v61  ;;  %v2167_v2 = vmul.f32 %v1544_v32, %v1063_v59  ;;  %v1560_v37 = vmul.f32 %v7061_v29, %v1559_v8  ;;  %v10362_v32 = vld [vmem:[#allocation109_spill] sm:$0xff] }
 0x258   :  { %vm1591_vm5 = vweird.f32 %v7036_v49  ;;  %v7323_v52 = vmul.f32 0.5, %v1617_v51  ;;  %v7325_v26 = vadd.f32 1e-05, %v989_v44  ;;  %v988_v45 = vmul.f32 0.020408163, %v10357_v24  ;;  %10358 = vst [vmem:[#allocation102_spill] sm:$0xff] %v7328_v25  ;;  %2384 = vperm.xlu2 %4446, %v2166_v27  }
 0x259   :  { %2409 = vperm.xlu0 %4447, %v2171_v41   ;;  %v7331_v38 = vmul.f32 %v7091_v53, %v1599_v1  ;;  %vm1602_vm8 = vweird.f32 %v7091_v53  ;;  %v1610_v61 = vmul.f32 %v7100_v7, %v1609_v35  ;;  %vm1592_vm9 = vweird.f32 %v7119_v16  ;;  %2389 = vperm.xlu1 %4445, %v2167_v2   ;;  %v1066_v2 = vld [vmem:[%s9869_s1 + $0x118] sm:$0xff]  ;;  %v10367_v35 = vld [vmem:[#allocation110_spill] sm:$0xff] }
 0x25a   :  { %vm1641_vm10 = vweird.f32 %v7073_v17  ;;  %v7337_v8 = vadd.f32 1e-05, %v990_v46  ;;  %v7339_v51 = vpop.eup %4540  ;;  %v7342_v44 = vmul.f32 %v7119_v16, %v1589_v23  ;;  %v1629_v59 = vsub.f32 1.5, %v7297_v36  ;;  %vm7412_vm3 = vmor %vm1591_vm5, %vm1592_vm9  ;;  %v1073_v17 = vld [vmem:[%s9869_s1 + $0x150] sm:$0xff] }
 0x25b   :  { %vm1642_vm11 = vweird.f32 %v7158_v58  ;;  %v1657_v1 = vmul.f32 %v7262_v62, %v1656_v12  ;;  %vm1601_vm14 = vweird.f32 %v7010_v6  ;;  %v1639_v23 = vsub.f32 1.5, %v1638_v39 }
 0x25c   :  { %v1667_v46 = vmul.f32 %v7280_v28, %v1666_v63  ;;  %v1647_v36 = vmul.f32 %v7290_v14, %v1646_v50  ;;  %4544 = vrsqrt.f32 %v7319_v21  ;;  %v7367_v12 = vpop.eup %4542  ;;  %v1619_v39 = vsub.f32 1.5, %v7323_v52  ;;  %v7378_v50 = vpop.xlane.xlu0 %928  ;;  %vm7431_vm5 = vmor %vm1641_vm10, %vm1642_vm11 }
 0x25d   :  { %4546 = vrsqrt.f32 %v7325_v26  ;;  %v7375_v27 = vadd.f32 1e-05, %v988_v45  ;;  %v993_v63 = vmul.f32 0.020408163, %v10362_v32  ;;  %10363 = vst [vmem:[#allocation105_spill] sm:$0xff] %v7378_v50  ;;  %v1696_v48 = vmul.f32 %v7339_v51, %v7246_v60  ;;  %vm7463_vm10 = vmor %vm1601_vm14, %vm1602_vm8 }
 0x25e   :  { %v7347_v41 = vpop.permute.xlu2 %2234  ;;  %4548 = vrsqrt.f32 %v7337_v8  ;;  %v1614_v52 = vsel %vm1613_vm13, %v7100_v7, %v1610_v61  ;;  %v1564_v24 = vsel %vm7353_vm12, %v7061_v29, %v1560_v37  ;;  %v1658_v45 = vmul.f32 0.5, %v1657_v1  ;;  %v10366_v61 = vld [vmem:[#allocation108_spill] sm:$0xff] }
 0x25f   :  { %10359 = vst [vmem:[#allocation104_spill] sm:$0xff] %v7347_v41  ;;  %v2174_v32 = vmul.f32 %v1614_v52, %v1070_v31  ;;  %v2169_v41 = vmul.f32 %v1564_v24, %v1065_v18  ;;  %v1574_v50 = vsel %vm1573_vm1, %v7018_v4, %v7250_v15  ;;  %v1640_v54 = vmul.f32 %v7158_v58, %v1639_v23 }
 0x260   :  { %v1668_v25 = vmul.f32 0.5, %v1667_v46  ;;  %v7397_v5 = vmul.f32 0.5, %v1647_v36  ;;  %v2170_v47 = vmul.f32 %v1574_v50, %v1066_v2  ;;  %vm1632_vm15 = vweird.f32 %v7149_v9  ;;  %v1068_v2 = vld [vmem:[%s9869_s1 + $0x128] sm:$0xff] }
 0x261   :  { %vm1621_vm2 = vweird.f32 %v7114_v33  ;;  %v1686_v7 = vmul.f32 %v7367_v12, %v7268_v10  ;;  %4550 = vrsqrt.f32 %v7375_v27  ;;  %v7404_v29 = vadd.f32 1e-05, %v993_v63  ;;  %2424 = vperm.xlu0 %4447, %v2174_v32   ;;  %2399 = vperm.xlu2 %4446, %v2169_v41  }
 0x262   :  { %v7406_v4 = vpop.eup %4544  ;;  %vm1622_vm4 = vweird.f32 %v7221_v43  ;;  %vm1671_vm6 = vweird.f32 %v7164_v42  ;;  %v1697_v37 = vmul.f32 %v7339_v51, %v1696_v48  ;;  %v992_v1 = vmul.f32 0.020408163, %v10366_v61  ;;  %2404 = vperm.xlu1 %4445, %v2170_v47   ;;  %v7439_v47 = vpop.xlane.xlu1 %931 }
 0x263   :  { %v991_v41 = vmul.f32 0.020408163, %v10367_v35  ;;  %v7421_v23 = vpop.eup %4546  ;;  %v7424_v46 = vmul.f32 %v7149_v9, %v1629_v59  ;;  %vm1631_vm7 = vweird.f32 %v7057_v40  ;;  %v7436_v36 = vmul.f32 %v7221_v43, %v1619_v39  ;;  %vm7506_vm13 = vmor %vm1621_vm2, %vm1622_vm4  ;;  %v1071_v40 = vld [vmem:[%s9869_s1 + $0x140] sm:$0xff] }
 0x264   :  { %v1659_v31 = vsub.f32 1.5, %v1658_v45  ;;  %vm1672_vm9 = vweird.f32 %v7280_v28  ;;  %v7443_v18 = vpop.eup %4548  ;;  %v1669_v63 = vsub.f32 1.5, %v1668_v25  ;;  %v1649_v50 = vsub.f32 1.5, %v7397_v5  ;;  %vm7540_vm4 = vmor %vm1631_vm7, %vm1632_vm15 }
 0x265   :  { %v1644_v39 = vsel %vm7431_vm5, %v7158_v58, %v1640_v54  ;;  %v1594_v48 = vsel %vm7412_vm3, %v7119_v16, %v7342_v44  ;;  %v1687_v25 = vmul.f32 %v7367_v12, %v1686_v7  ;;  %v1676_v58 = vmul.f32 %v7406_v4, %v7319_v21  ;;  %v1069_v16 = vld [vmem:[%s9869_s1 + $0x130] sm:$0xff]  ;;  %v7489_v7 = vpop.xlane.xlu0 %937  ;;  %vm7525_vm3 = vmor %vm1671_vm6, %vm1672_vm9 }
 0x266   :  { %v7441_v59 = vpop.permute.xlu2 %2244  ;;  %4552 = vrsqrt.f32 %v7404_v29  ;;  %v996_v52 = vmul.f32 0.020408163, %v6451_v20  ;;  %v1698_v44 = vmul.f32 0.5, %v1697_v37  ;;  %v7475_v24 = vadd.f32 1e-05, %v992_v1  ;;  %v10373_v1 = vld [vmem:[#allocation111_spill] sm:$0xff] }
 0x267   :  { %10370 = vst [vmem:[#allocation106_spill] sm:$0xff] %v7441_v59  ;;  %v7477_v6 = vadd.f32 1e-05, %v991_v41  ;;  %v1604_v45 = vsel %vm7463_vm10, %v7091_v53, %v7331_v38  ;;  %v7483_v32 = vpop.eup %4550  ;;  %v1716_v54 = vmul.f32 %v7421_v23, %v7325_v26  ;;  %v1726_v20 = vmul.f32 %v7443_v18, %v7337_v8 }
 0x268   :  { %v2177_v15 = vmul.f32 %v1644_v39, %v1073_v17  ;;  %v2172_v37 = vmul.f32 %v1594_v48, %v1068_v2  ;;  %v1670_v61 = vmul.f32 %v7280_v28, %v1669_v63  ;;  %vm1652_vm8 = vweird.f32 %v7290_v14 }
 0x269   :  { %v995_v35 = vmul.f32 0.020408163, %v10373_v1  ;;  %v2173_v41 = vmul.f32 %v1604_v45, %v1069_v16  ;;  %v7495_v53 = vmul.f32 %v7262_v62, %v1659_v31  ;;  %vm1662_vm11 = vweird.f32 %v7262_v62  ;;  %v10381_v16 = vld [vmem:[#allocation112_spill] sm:$0xff]  ;;  %v1076_v45 = vld [vmem:[%s9869_s1 + $0x168] sm:$0xff] }
 0x26a   :  { %vm1651_vm12 = vweird.f32 %v7178_v19  ;;  %v1688_v38 = vmul.f32 0.5, %v1687_v25  ;;  %vm1702_vm14 = vweird.f32 %v7339_v51  ;;  %v7500_v49 = vadd.f32 1e-05, %v996_v52  ;;  %2439 = vperm.xlu0 %4447, %v2177_v15   ;;  %2414 = vperm.xlu2 %4446, %v2172_v37   ;;  %v1072_v1 = vld [vmem:[%s9869_s1 + $0x148] sm:$0xff] }
 0x26b   :  { %v7511_v31 = vmul.f32 %v7290_v14, %v1649_v50  ;;  %vm1701_vm1 = vweird.f32 %v7246_v60  ;;  %v1677_v17 = vmul.f32 %v7406_v4, %v1676_v58  ;;  %v1706_v39 = vmul.f32 %v7483_v32, %v7375_v27  ;;  %2419 = vperm.xlu1 %4445, %v2173_v41   ;;  %vm7597_vm5 = vmor %vm1651_vm12, %vm1652_vm8 }
 0x26c   :  { %4554 = vrsqrt.f32 %v7477_v6  ;;  %v7518_v2 = vpop.eup %4552  ;;  %vm1661_vm2 = vweird.f32 %v7154_v11  ;;  %v1699_v50 = vsub.f32 1.5, %v1698_v44  ;;  %v1717_v48 = vmul.f32 %v7421_v23, %v1716_v54  ;;  %vm7612_vm8 = vmor %vm1701_vm1, %vm1702_vm14 }
 0x26d   :  { %v1727_v5 = vmul.f32 %v7443_v18, %v1726_v20  ;;  %4556 = vrsqrt.f32 %v7475_v24  ;;  %v7544_v52 = vadd.f32 1e-05, %v995_v35  ;;  %v994_v44 = vmul.f32 0.020408163, %v10381_v16  ;;  %vm7629_vm14 = vmor %vm1661_vm2, %vm1662_vm11 }
 0x26e   :  { %v7532_v25 = vpop.permute.xlu1 %2229  ;;  %v7534_v58 = vpop.permute.xlu2 %2254  ;;  %v1674_v54 = vsel %vm7525_vm3, %v7280_v28, %v1670_v61  ;;  %v1624_v20 = vsel %vm7506_vm13, %v7221_v43, %v7436_v36  ;;  %v1689_v15 = vsub.f32 1.5, %v1688_v38  ;;  %4558 = vrsqrt.f32 %v7500_v49 }
 0x26f   :  { %10378 = vst [vmem:[#allocation107_spill] sm:$0xff] %v7534_v58  ;;  %v998_v37 = vmul.f32 0.020408163, %v6535_v55  ;;  %v1634_v28 = vsel %vm7540_vm4, %v7149_v9, %v7424_v46  ;;  %v1678_v61 = vmul.f32 0.5, %v1677_v17  ;;  %v1707_v35 = vmul.f32 %v7483_v32, %v1706_v39 }
 0x270   :  { %v1756_v43 = vmul.f32 %v7518_v2, %v7404_v29  ;;  %v999_v36 = vmul.f32 0.020408163, %v6537_v22  ;;  %v1700_v41 = vmul.f32 %v7339_v51, %v1699_v50  ;;  %v7574_v55 = vmul.f32 0.5, %v1717_v48 }
 0x271   :  { %v2180_v38 = vmul.f32 %v1674_v54, %v1076_v45  ;;  %v2175_v63 = vmul.f32 %v1624_v20, %v1071_v40  ;;  %v1728_v42 = vmul.f32 0.5, %v1727_v5  ;;  %4560 = vrsqrt.f32 %v7544_v52 }
 0x272   :  { %v7576_v33 = vpop.permute.xlu0 %2239  ;;  %v7578_v16 = vpop.eup %4554  ;;  %v7581_v9 = vadd.f32 1e-05, %v994_v44  ;;  %v2176_v46 = vmul.f32 %v1634_v28, %v1072_v1  ;;  %v7586_v22 = vmul.f32 %v7367_v12, %v1689_v15  ;;  %vm1692_vm15 = vweird.f32 %v7367_v12  ;;  %v10387_v15 = vld [vmem:[#allocation113_spill] sm:$0xff] }
 0x273   :  { %10382 = vst [vmem:[#allocation109_spill] sm:$0xff] %v7576_v33  ;;  %v7583_v17 = vpop.eup %4556  ;;  %vm1681_vm6 = vweird.f32 %v7319_v21  ;;  %vm1682_vm7 = vweird.f32 %v7406_v4  ;;  %v7591_v39 = vadd.f32 1e-05, %v998_v37  ;;  %2454 = vperm.xlu0 %4447, %v2180_v38   ;;  %2429 = vperm.xlu2 %4446, %v2175_v63   ;;  %v1679_v48 = vsub.f32 1.5, %v1678_v61 }
 0x274   :  { %vm1731_vm9 = vweird.f32 %v7337_v8  ;;  %v1708_v5 = vmul.f32 0.5, %v1707_v35  ;;  %v1757_v44 = vmul.f32 %v7518_v2, %v1756_v43  ;;  %v7603_v45 = vadd.f32 1e-05, %v999_v36  ;;  %2434 = vperm.xlu1 %4445, %v2176_v46   ;;  %v7605_v54 = vpop.eup %4558  ;;  %v1079_v35 = vld [vmem:[%s9869_s1 + $0x180] sm:$0xff]  ;;  %v1074_v36 = vld [vmem:[%s9869_s1 + $0x158] sm:$0xff]  ;;  %vm7684_vm2 = vmor %vm1681_vm6, %vm1682_vm7 }
 0x275   :  { %vm1691_vm10 = vweird.f32 %v7268_v10  ;;  %v1719_v40 = vsub.f32 1.5, %v7574_v55  ;;  %vm1732_vm12 = vweird.f32 %v7443_v18  ;;  %v1736_v20 = vmul.f32 %v7578_v16, %v7477_v6  ;;  %v1077_v10 = vld [vmem:[%s9869_s1 + $0x170] sm:$0xff] }
 0x276   :  { %v997_v37 = vmul.f32 0.020408163, %v10387_v15  ;;  %v7621_v1 = vpop.permute.xlu1 %2249  ;;  %v7623_v28 = vpop.permute.xlu2 %2264  ;;  %v1729_v61 = vsub.f32 1.5, %v1728_v42  ;;  %4562 = vrsqrt.f32 %v7581_v9  ;;  %v1704_v43 = vsel %vm7612_vm8, %v7339_v51, %v1700_v41  ;;  %v1075_v51 = vld [vmem:[%s9869_s1 + $0x160] sm:$0xff]  ;;  %vm7702_vm6 = vmor %vm1731_vm9, %vm1732_vm12 }
 0x277   :  { %10388 = vst [vmem:[#allocation108_spill] sm:$0xff] %v7621_v1  ;;  %v1654_v11 = vsel %vm7597_vm5, %v7290_v14, %v7511_v31  ;;  %v1746_v55 = vmul.f32 %v7583_v17, %v7475_v24  ;;  %4564 = vrsqrt.f32 %v7591_v39  ;;  %v1002_v38 = vmul.f32 0.020408163, %v6618_v57  ;;  %v7658_v63 = vpop.eup %4560  ;;  %vm7722_vm7 = vmor %vm1691_vm10, %vm1692_vm15 }
 0x278   :  { %10389 = vst [vmem:[#allocation110_spill] sm:$0xff] %v7623_v28  ;;  %v1664_v41 = vsel %vm7629_vm14, %v7262_v62, %v7495_v53  ;;  %v1709_v42 = vsub.f32 1.5, %v1708_v5  ;;  %v1758_v14 = vmul.f32 0.5, %v1757_v44  ;;  %v1786_v31 = vmul.f32 %v7605_v54, %v7500_v49 }
 0x279   :  { %4566 = vrsqrt.f32 %v7603_v45  ;;  %v1737_v57 = vmul.f32 %v7578_v16, %v1736_v20  ;;  %v7664_v46 = vadd.f32 1e-05, %v997_v37  ;;  %v2183_v50 = vmul.f32 %v1704_v43, %v1079_v35 }
 0x27a   :  { %v2178_v19 = vmul.f32 %v1654_v11, %v1074_v36  ;;  %v7666_v15 = vpop.permute.xlu0 %2274  ;;  %v1680_v60 = vmul.f32 %v7406_v4, %v1679_v48  ;;  %v1730_v62 = vmul.f32 %v7443_v18, %v1729_v61  ;;  %v1001_v53 = vmul.f32 0.020408163, %v6616_v0 }
 0x27b   :  { %v2179_v5 = vmul.f32 %v1664_v41, %v1075_v51  ;;  %vm1722_vm11 = vweird.f32 %v7421_v23  ;;  %vm1711_vm13 = vweird.f32 %v7375_v27  ;;  %vm1712_vm1 = vweird.f32 %v7483_v32  ;;  %2469 = vperm.xlu0 %4447, %v2183_v50  }
 0x27c   :  { %v1776_v44 = vmul.f32 %v7658_v63, %v7544_v52  ;;  %v7676_v20 = vadd.f32 1e-05, %v1002_v38  ;;  %2444 = vperm.xlu2 %4446, %v2178_v19   ;;  %v7678_v37 = vpop.eup %4562  ;;  %v7689_v48 = vmul.f32 %v7421_v23, %v1719_v40  ;;  %v1747_v61 = vmul.f32 %v7583_v17, %v1746_v55  ;;  %v1078_v19 = vld [vmem:[%s9869_s1 + $0x178] sm:$0xff]  ;;  %vm7778_vm8 = vmor %vm1711_vm13, %vm1712_vm1 }
 0x27d   :  { %vm1761_vm3 = vweird.f32 %v7404_v29  ;;  %vm1762_vm4 = vweird.f32 %v7518_v2  ;;  %v1787_v35 = vmul.f32 %v7605_v54, %v1786_v31  ;;  %2449 = vperm.xlu1 %4445, %v2179_v5   ;;  %v7695_v43 = vpop.eup %4564  ;;  %vm1721_vm5 = vweird.f32 %v7325_v26  ;;  %v1080_v26 = vld [vmem:[%s9869_s1 + $0x188] sm:$0xff] }
 0x27e   :  { %v7707_v40 = vmul.f32 %v7483_v32, %v1709_v42  ;;  %v1759_v36 = vsub.f32 1.5, %v1758_v14  ;;  %v7709_v11 = vmul.f32 0.5, %v1737_v57  ;;  %4568 = vrsqrt.f32 %v7664_v46  ;;  %v7712_v55 = vpop.permute.xlu1 %2259  ;;  %v7714_v38 = vpop.permute.xlu2 %2279  ;;  %v1082_v14 = vld [vmem:[%s9869_s1 + $0x198] sm:$0xff]  ;;  %vm7795_vm13 = vmor %vm1761_vm3, %vm1762_vm4 }
 0x27f   :  { %10396 = vst [vmem:[#allocation111_spill] sm:$0xff] %v7712_v55  ;;  %v7716_v51 = vpop.eup %4566  ;;  %v7726_v41 = vadd.f32 1e-05, %v1001_v53  ;;  %v1000_v42 = vmul.f32 0.020408163, %v6629_v13  ;;  %v1734_v31 = vsel %vm7702_vm6, %v7443_v18, %v1730_v62  ;;  %v1684_v57 = vsel %vm7684_vm2, %v7406_v4, %v1680_v60  ;;  %vm7810_vm1 = vmor %vm1721_vm5, %vm1722_vm11 }
 0x280   :  { %v1777_v50 = vmul.f32 %v7658_v63, %v1776_v44  ;;  %4570 = vrsqrt.f32 %v7676_v20  ;;  %v1004_v13 = vmul.f32 0.020408163, %v6689_v30  ;;  %v1694_v18 = vsel %vm7722_vm7, %v7367_v12, %v7586_v22 }
 0x281   :  { %v7751_v62 = vmul.f32 0.5, %v1747_v61  ;;  %v1788_v53 = vmul.f32 0.5, %v1787_v35  ;;  %v1766_v4 = vmul.f32 %v7678_v37, %v7581_v9  ;;  %v1005_v60 = vmul.f32 0.020408163, %v6691_v56 }
 0x282   :  { %v1806_v30 = vmul.f32 %v7695_v43, %v7591_v39  ;;  %v1816_v5 = vmul.f32 %v7716_v51, %v7603_v45  ;;  %v2186_v44 = vmul.f32 %v1734_v31, %v1082_v14  ;;  %v2181_v0 = vmul.f32 %v1684_v57, %v1077_v10  ;;  %v7760_v21 = vpop.permute.xlu0 %2289 }
 0x283   :  { %v1760_v12 = vmul.f32 %v7518_v2, %v1759_v36  ;;  %4572 = vrsqrt.f32 %v7726_v41  ;;  %v7764_v22 = vadd.f32 1e-05, %v1000_v42  ;;  %v2182_v61 = vmul.f32 %v1694_v18, %v1078_v19 }
 0x284   :  { %v7766_v35 = vpop.eup %4568  ;;  %vm1752_vm15 = vweird.f32 %v7583_v17  ;;  %v1739_v56 = vsub.f32 1.5, %v7709_v11  ;;  %vm1741_vm9 = vweird.f32 %v7477_v6  ;;  %vm1742_vm10 = vweird.f32 %v7578_v16  ;;  %2484 = vperm.xlu0 %4447, %v2186_v44   ;;  %2459 = vperm.xlu2 %4446, %v2181_v0   ;;  %v1081_v44 = vld [vmem:[%s9869_s1 + $0x190] sm:$0xff] }
 0x285   :  { %v1778_v8 = vmul.f32 0.5, %v1777_v50  ;;  %v7772_v14 = vadd.f32 1e-05, %v1004_v13  ;;  %v1749_v42 = vsub.f32 1.5, %v7751_v62  ;;  %vm1791_vm12 = vweird.f32 %v7500_v49  ;;  %2464 = vperm.xlu1 %4445, %v2182_v61   ;;  %vm7865_vm5 = vmor %vm1741_vm9, %vm1742_vm10 }
 0x286   :  { %vm1792_vm14 = vweird.f32 %v7605_v54  ;;  %v1767_v11 = vmul.f32 %v7678_v37, %v1766_v4  ;;  %v7786_v31 = vadd.f32 1e-05, %v1005_v60  ;;  %v7788_v10 = vpop.eup %4570  ;;  %vm1751_vm2 = vweird.f32 %v7475_v24  ;;  %v7802_v18 = vpop.permute.xlu1 %2269 }
 0x287   :  { %v1789_v57 = vsub.f32 1.5, %v1788_v53  ;;  %v1807_v50 = vmul.f32 %v7695_v43, %v1806_v30  ;;  %v1817_v13 = vmul.f32 %v7716_v51, %v1816_v5  ;;  %v1003_v19 = vmul.f32 0.020408163, %v6702_v3  ;;  %v7804_v62 = vpop.permute.xlu2 %2294  ;;  %v1085_v3 = vld [vmem:[%s9869_s1 + $0x1b0] sm:$0xff]  ;;  %vm7883_vm9 = vmor %vm1791_vm12, %vm1792_vm14 }
 0x288   :  { %v1796_v53 = vmul.f32 %v7766_v35, %v7664_v46  ;;  %4574 = vrsqrt.f32 %v7764_v22  ;;  %v1764_v4 = vsel %vm7795_vm13, %v7518_v2, %v1760_v12  ;;  %v1714_v60 = vsel %vm7778_vm8, %v7483_v32, %v7707_v40  ;;  %v10405_v40 = vld [vmem:[#allocation114_spill] sm:$0xff]  ;;  %vm7900_vm8 = vmor %vm1751_vm2, %vm1752_vm15 }
 0x289   :  { %v7831_v30 = vmul.f32 %v7578_v16, %v1739_v56  ;;  %v1779_v5 = vsub.f32 1.5, %v1778_v8  ;;  %4576 = vrsqrt.f32 %v7772_v14  ;;  %v1724_v2 = vsel %vm7810_vm1, %v7421_v23, %v7689_v48  ;;  %v7841_v0 = vpop.eup %4572 }
 0x28a   :  { %v1768_v12 = vmul.f32 0.5, %v1767_v11  ;;  %v1846_v32 = vmul.f32 %v7788_v10, %v7676_v20  ;;  %4578 = vrsqrt.f32 %v7786_v31  ;;  %v1008_v61 = vmul.f32 0.020408163, %v10405_v40  ;;  %v7849_v33 = vpop.permute.xlu0 %2304 }
 0x28b   :  { %v1808_v56 = vmul.f32 0.5, %v1807_v50  ;;  %v7847_v8 = vadd.f32 1e-05, %v1003_v19  ;;  %v2189_v36 = vmul.f32 %v1764_v4, %v1085_v3  ;;  %v2184_v27 = vmul.f32 %v1714_v60, %v1080_v26  ;;  %v10410_v60 = vld [vmem:[#allocation116_spill] sm:$0xff] }
 0x28c   :  { %v1790_v29 = vmul.f32 %v7605_v54, %v1789_v57  ;;  %v1818_v23 = vmul.f32 0.5, %v1817_v13  ;;  %v1797_v48 = vmul.f32 %v7766_v35, %v1796_v53  ;;  %v2185_v11 = vmul.f32 %v1724_v2, %v1081_v44 }
 0x28d   :  { %v1750_v59 = vmul.f32 %v7583_v17, %v1749_v42  ;;  %vm1782_vm11 = vweird.f32 %v7658_v63  ;;  %vm1771_vm3 = vweird.f32 %v7581_v9  ;;  %vm1772_vm4 = vweird.f32 %v7678_v37  ;;  %2499 = vperm.xlu0 %4447, %v2189_v36   ;;  %2474 = vperm.xlu2 %4446, %v2184_v27   ;;  %v1083_v36 = vld [vmem:[%s9869_s1 + $0x1a0] sm:$0xff] }
 0x28e   :  { %v1836_v50 = vmul.f32 %v7841_v0, %v7726_v41  ;;  %v7859_v19 = vpop.eup %4574  ;;  %v7870_v42 = vmul.f32 %v7658_v63, %v1779_v5  ;;  %v1769_v13 = vsub.f32 1.5, %v1768_v12  ;;  %vm1821_vm6 = vweird.f32 %v7603_v45  ;;  %2479 = vperm.xlu1 %4445, %v2185_v11   ;;  %v7890_v44 = vpop.permute.xlu1 %2284  ;;  %vm7957_vm2 = vmor %vm1771_vm3, %vm1772_vm4 }
 0x28f   :  { %v1847_v53 = vmul.f32 %v7788_v10, %v1846_v32  ;;  %v7874_v3 = vadd.f32 1e-05, %v1008_v61  ;;  %v7876_v4 = vpop.eup %4576  ;;  %vm1781_vm7 = vweird.f32 %v7544_v52  ;;  %v1809_v26 = vsub.f32 1.5, %v1808_v56  ;;  %v7892_v2 = vpop.permute.xlu2 %2309  ;;  %v1088_v61 = vld [vmem:[%s9869_s1 + $0x1c8] sm:$0xff]  ;;  %v1086_v52 = vld [vmem:[%s9869_s1 + $0x1b8] sm:$0xff] }
 0x290   :  { %vm1822_vm10 = vweird.f32 %v7716_v51  ;;  %4580 = vrsqrt.f32 %v7847_v8  ;;  %v1007_v5 = vmul.f32 0.020408163, %v10410_v60  ;;  %10411 = vst [vmem:[#allocation112_spill] sm:$0xff] %v7892_v2  ;;  %v7894_v12 = vpop.eup %4578  ;;  %v1819_v32 = vsub.f32 1.5, %v1818_v23 }
 0x291   :  { %v7904_v40 = vmul.f32 0.5, %v1797_v48  ;;  %v1794_v56 = vsel %vm7883_vm9, %v7605_v54, %v1790_v29  ;;  %v1744_v24 = vsel %vm7865_vm5, %v7578_v16, %v7831_v30  ;;  %v1837_v27 = vmul.f32 %v7841_v0, %v1836_v50  ;;  %v10414_v48 = vld [vmem:[#allocation115_spill] sm:$0xff]  ;;  %v10415_v16 = vld [vmem:[#allocation117_spill] sm:$0xff]  ;;  %vm7971_vm3 = vmor %vm1821_vm6, %vm1822_vm10 }
 0x292   :  { %v1826_v23 = vmul.f32 %v7859_v19, %v7764_v22  ;;  %v1006_v11 = vmul.f32 0.020408163, %v10414_v48  ;;  %v1084_v54 = vld [vmem:[%s9869_s1 + $0x1a8] sm:$0xff]  ;;  %v1754_v29 = vsel %vm7900_vm8, %v7583_v17, %v1750_v59  ;;  %v1848_v6 = vmul.f32 0.5, %v1847_v53  ;;  %v7940_v17 = vpop.permute.xlu0 %2319  ;;  %vm7986_vm5 = vmor %vm1781_vm7, %vm1782_vm11 }
 0x293   :  { %v1866_v57 = vmul.f32 %v7876_v4, %v7772_v14  ;;  %4582 = vrsqrt.f32 %v7874_v3  ;;  %v1011_v30 = vmul.f32 0.020408163, %v10415_v16  ;;  %v1876_v50 = vmul.f32 %v7894_v12, %v7786_v31  ;;  %10416 = vst [vmem:[#allocation113_spill] sm:$0xff] %v7940_v17 }
 0x294   :  { %v7935_v60 = vadd.f32 1e-05, %v1007_v5  ;;  %v2192_v48 = vmul.f32 %v1794_v56, %v1088_v61  ;;  %v2187_v2 = vmul.f32 %v1744_v24, %v1083_v36  ;;  %v1770_v1 = vmul.f32 %v7678_v37, %v1769_v13  ;;  %v10417_v13 = vld [vmem:[#allocation118_spill] sm:$0xff] }
 0x295   :  { %v1820_v49 = vmul.f32 %v7716_v51, %v1819_v32  ;;  %vm1802_vm15 = vweird.f32 %v7766_v35  ;;  %v2188_v59 = vmul.f32 %v1754_v29, %v1084_v54  ;;  %v7945_v16 = vmul.f32 %v7695_v43, %v1809_v26  ;;  %v10425_v29 = vld [vmem:[#allocation119_spill] sm:$0xff] }
 0x296   :  { %v7942_v53 = vpop.eup %4580  ;;  %vm1812_vm12 = vweird.f32 %v7695_v43  ;;  %v1799_v5 = vsub.f32 1.5, %v7904_v40  ;;  %vm1801_vm14 = vweird.f32 %v7664_v46  ;;  %v7950_v61 = vadd.f32 1e-05, %v1006_v11  ;;  %2514 = vperm.xlu0 %4447, %v2192_v48   ;;  %2489 = vperm.xlu2 %4446, %v2187_v2   ;;  %v8005_v48 = vpop.permute.xlu1 %2299 }
 0x297   :  { %v1009_v32 = vmul.f32 0.020408163, %v10417_v13  ;;  %v1838_v26 = vmul.f32 0.5, %v1837_v27  ;;  %vm1851_vm13 = vweird.f32 %v7676_v20  ;;  %v1827_v40 = vmul.f32 %v7859_v19, %v1826_v23  ;;  %2494 = vperm.xlu1 %4445, %v2188_v59   ;;  %v7978_v23 = vpop.permute.xlu2 %2324  ;;  %v10426_v13 = vld [vmem:[#allocation120_spill] sm:$0xff]  ;;  %vm8037_vm7 = vmor %vm1801_vm14, %vm1802_vm15  ;;  %v10436_v20 = vld [vmem:[#allocation122_spill] sm:$0xff] }
 0x298   :  { %v1867_v36 = vmul.f32 %v7876_v4, %v1866_v57  ;;  %v7964_v24 = vadd.f32 1e-05, %v1011_v30  ;;  %vm1811_vm1 = vweird.f32 %v7591_v39  ;;  %v1849_v2 = vsub.f32 1.5, %v1848_v6  ;;  %10422 = vst [vmem:[#allocation114_spill] sm:$0xff] %v7978_v23  ;;  %v1091_v57 = vld [vmem:[%s9869_s1 + $0x1e0] sm:$0xff]  ;;  %v1089_v39 = vld [vmem:[%s9869_s1 + $0x1d0] sm:$0xff] }
 0x299   :  { %vm1852_vm4 = vweird.f32 %v7788_v10  ;;  %v1877_v27 = vmul.f32 %v7894_v12, %v1876_v50  ;;  %4584 = vrsqrt.f32 %v7935_v60  ;;  %v7980_v11 = vpop.eup %4582  ;;  %v1856_v54 = vmul.f32 %v7942_v53, %v7847_v8  ;;  %vm8069_vm14 = vmor %vm1811_vm1, %vm1812_vm12 }
 0x29a   :  { %v1010_v6 = vmul.f32 0.020408163, %v10425_v29  ;;  %v1824_v30 = vsel %vm7971_vm3, %v7716_v51, %v1820_v49  ;;  %v1774_v50 = vsel %vm7957_vm2, %v7678_v37, %v1770_v1  ;;  %4586 = vrsqrt.f32 %v7950_v61  ;;  %v1087_v51 = vld [vmem:[%s9869_s1 + $0x1c0] sm:$0xff]  ;;  %vm8056_vm15 = vmor %vm1851_vm13, %vm1852_vm4 }
 0x29b   :  { %v8008_v59 = vadd.f32 1e-05, %v1009_v32  ;;  %v1014_v29 = vmul.f32 0.020408163, %v10426_v13  ;;  %v1784_v49 = vsel %vm7986_vm5, %v7658_v63, %v7870_v42  ;;  %v1839_v9 = vsub.f32 1.5, %v1838_v26 }
 0x29c   :  { %v1828_v56 = vmul.f32 0.5, %v1827_v40  ;;  %v1868_v1 = vmul.f32 0.5, %v1867_v36  ;;  %4588 = vrsqrt.f32 %v7964_v24  ;;  %v1878_v37 = vmul.f32 0.5, %v1877_v27  ;;  %v10429_v40 = vld [vmem:[#allocation121_spill] sm:$0xff] }
 0x29d   :  { %v1906_v32 = vmul.f32 %v7980_v11, %v7874_v3  ;;  %v2195_v23 = vmul.f32 %v1824_v30, %v1091_v57  ;;  %v2190_v13 = vmul.f32 %v1774_v50, %v1086_v52  ;;  %v1800_v17 = vmul.f32 %v7766_v35, %v1799_v5 }
 0x29e   :  { %v1850_v58 = vmul.f32 %v7788_v10, %v1849_v2  ;;  %v8023_v28 = vadd.f32 1e-05, %v1010_v6  ;;  %v2191_v55 = vmul.f32 %v1784_v49, %v1087_v51  ;;  %vm1842_vm11 = vweird.f32 %v7841_v0  ;;  %v8047_v2 = vpop.permute.xlu0 %2334 }
 0x29f   :  { %v8025_v45 = vpop.eup %4584  ;;  %vm1831_vm6 = vweird.f32 %v7764_v22  ;;  %v1857_v63 = vmul.f32 %v7942_v53, %v1856_v54  ;;  %4590 = vrsqrt.f32 %v8008_v59  ;;  %v8031_v42 = vadd.f32 1e-05, %v1014_v29  ;;  %2529 = vperm.xlu0 %4447, %v2195_v23   ;;  %2504 = vperm.xlu2 %4446, %v2190_v13   ;;  %10430 = vst [vmem:[#allocation116_spill] sm:$0xff] %v8047_v2  ;;  %v1094_v29 = vld [vmem:[%s9869_s1 + $0x1f8] sm:$0xff] }
 0x2a0   :  { %v8042_v26 = vmul.f32 %v7841_v0, %v1839_v9  ;;  %vm1832_vm9 = vweird.f32 %v7859_v19  ;;  %vm1881_vm10 = vweird.f32 %v7786_v31  ;;  %v1012_v36 = vmul.f32 0.020408163, %v10429_v40  ;;  %2509 = vperm.xlu1 %4445, %v2191_v55   ;;  %v8049_v27 = vpop.eup %4586  ;;  %v8061_v55 = vpop.permute.xlu2 %2339  ;;  %v10446_v31 = vld [vmem:[#allocation43_spill] sm:$0xff] }
 0x2a1   :  { %vm1841_vm8 = vweird.f32 %v7726_v41  ;;  %v1829_v23 = vsub.f32 1.5, %v1828_v56  ;;  %v1869_v54 = vsub.f32 1.5, %v1868_v1  ;;  %v1879_v6 = vsub.f32 1.5, %v1878_v37  ;;  %10433 = vst [vmem:[#allocation115_spill] sm:$0xff] %v8061_v55  ;;  %v10437_v56 = vld [vmem:[#allocation123_spill] sm:$0xff]  ;;  %v1090_v37 = vld [vmem:[%s9869_s1 + $0x1d8] sm:$0xff]  ;;  %vm8130_vm3 = vmor %vm1831_vm6, %vm1832_vm9 }
 0x2a2   :  { %v1907_v57 = vmul.f32 %v7980_v11, %v1906_v32  ;;  %v8063_v30 = vpop.eup %4588  ;;  %4592 = vrsqrt.f32 %v8023_v28  ;;  %v1013_v50 = vmul.f32 0.020408163, %v10436_v20  ;;  %v1854_v51 = vsel %vm8056_vm15, %v7788_v10, %v1850_v58  ;;  %v8105_v32 = vpop.permute.xlu1 %2314  ;;  %vm8160_vm9 = vmor %vm1841_vm8, %vm1842_vm11  ;;  %v1092_v41 = vld [vmem:[%s9869_s1 + $0x1e8] sm:$0xff] }
 0x2a3   :  { %v1804_v49 = vsel %vm8037_vm7, %v7766_v35, %v1800_v17  ;;  %v8087_v9 = vmul.f32 0.5, %v1857_v63  ;;  %4594 = vrsqrt.f32 %v8031_v42  ;;  %v1017_v1 = vmul.f32 0.020408163, %v10437_v56 }
 0x2a4   :  { %v1814_v58 = vsel %vm8069_vm14, %v7695_v43, %v7945_v16  ;;  %vm1882_vm12 = vweird.f32 %v7894_v12  ;;  %v1896_v35 = vmul.f32 %v8025_v45, %v7935_v60  ;;  %v1886_v10 = vmul.f32 %v8049_v27, %v7950_v61 }
 0x2a5   :  { %v8103_v17 = vadd.f32 1e-05, %v1012_v36  ;;  %v8107_v13 = vpop.eup %4590  ;;  %v1908_v63 = vmul.f32 0.5, %v1907_v57  ;;  %v1936_v5 = vmul.f32 %v8063_v30, %v7964_v24  ;;  %v2198_v40 = vmul.f32 %v1854_v51, %v1094_v29  ;;  %vm8147_vm6 = vmor %vm1881_vm10, %vm1882_vm12 }
 0x2a6   :  { %v2193_v43 = vmul.f32 %v1804_v49, %v1089_v39  ;;  %v1830_v16 = vmul.f32 %v7859_v19, %v1829_v23  ;;  %v1880_v46 = vmul.f32 %v7894_v12, %v1879_v6  ;;  %v8113_v52 = vadd.f32 1e-05, %v1013_v50 }
 0x2a7   :  { %v2194_v20 = vmul.f32 %v1814_v58, %v1090_v37  ;;  %v8116_v36 = vmul.f32 %v7876_v4, %v1869_v54  ;;  %vm1872_vm2 = vweird.f32 %v7876_v4  ;;  %v1859_v56 = vsub.f32 1.5, %v8087_v9  ;;  %2544 = vperm.xlu0 %4447, %v2198_v40   ;;  %v10442_v9 = vld [vmem:[#allocation124_spill] sm:$0xff] }
 0x2a8   :  { %vm1861_vm13 = vweird.f32 %v7847_v8  ;;  %vm1862_vm1 = vweird.f32 %v7942_v53  ;;  %v8122_v57 = vadd.f32 1e-05, %v1017_v1  ;;  %2519 = vperm.xlu2 %4446, %v2193_v43   ;;  %v8124_v23 = vpop.eup %4592  ;;  %v1897_v6 = vmul.f32 %v8025_v45, %v1896_v35  ;;  %v8154_v37 = vpop.permute.xlu2 %2354 }
 0x2a9   :  { %vm1911_vm4 = vweird.f32 %v7874_v3  ;;  %v1887_v50 = vmul.f32 %v8049_v27, %v1886_v10  ;;  %v1916_v29 = vmul.f32 %v8107_v13, %v8008_v59  ;;  %4596 = vrsqrt.f32 %v8103_v17  ;;  %2524 = vperm.xlu1 %4445, %v2194_v20   ;;  %v8140_v51 = vpop.eup %4594  ;;  %10443 = vst [vmem:[#allocation117_spill] sm:$0xff] %v8154_v37  ;;  %v1097_v10 = vld [vmem:[%s9869_s1 + $0x210] sm:$0xff]  ;;  %v10448_v20 = vld [vmem:[#allocation47_spill] sm:$0xff]  ;;  %vm8218_vm15 = vmor %vm1861_vm13, %vm1862_vm1 }
 0x2aa   :  { %vm1871_vm5 = vweird.f32 %v7772_v14  ;;  %v1909_v39 = vsub.f32 1.5, %v1908_v63  ;;  %vm1912_vm7 = vweird.f32 %v7980_v11  ;;  %v1937_v49 = vmul.f32 %v8063_v30, %v1936_v5  ;;  %v8172_v5 = vpop.permute.xlu0 %2349  ;;  %v1095_v14 = vld [vmem:[%s9869_s1 + $0x200] sm:$0xff] }
 0x2ab   :  { %v1015_v1 = vmul.f32 0.020408163, %v10442_v9  ;;  %4598 = vrsqrt.f32 %v8113_v52  ;;  %v1016_v35 = vmul.f32 0.020408163, %v10446_v31  ;;  %v1884_v63 = vsel %vm8147_vm6, %v7894_v12, %v1880_v46  ;;  %10447 = vst [vmem:[#allocation118_spill] sm:$0xff] %v8172_v5  ;;  %v1093_v12 = vld [vmem:[%s9869_s1 + $0x1f0] sm:$0xff]  ;;  %vm8232_vm13 = vmor %vm1911_vm4, %vm1912_vm7 }
 0x2ac   :  { %v1834_v40 = vsel %vm8130_vm3, %v7859_v19, %v1830_v16  ;;  %v1926_v43 = vmul.f32 %v8124_v23, %v8023_v28  ;;  %4600 = vrsqrt.f32 %v8122_v57  ;;  %v1020_v9 = vmul.f32 0.020408163, %v10448_v20  ;;  %vm8246_vm3 = vmor %vm1871_vm5, %vm1872_vm2 }
 0x2ad   :  { %v1844_v46 = vsel %vm8160_vm9, %v7841_v0, %v8042_v26  ;;  %v8191_v22 = vmul.f32 0.5, %v1897_v6  ;;  %v1888_v54 = vmul.f32 0.5, %v1887_v50  ;;  %v1917_v19 = vmul.f32 %v8107_v13, %v1916_v29  ;;  %v8204_v6 = vpop.permute.xlu1 %2329 }
 0x2ae   :  { %v1966_v16 = vmul.f32 %v8140_v51, %v8031_v42  ;;  %v1938_v31 = vmul.f32 0.5, %v1937_v49  ;;  %v8196_v2 = vadd.f32 1e-05, %v1015_v1  ;;  %v2201_v20 = vmul.f32 %v1884_v63, %v1097_v10  ;;  %10449 = vst [vmem:[#allocation119_spill] sm:$0xff] %v8204_v6 }
 0x2af   :  { %v2196_v55 = vmul.f32 %v1834_v40, %v1092_v41  ;;  %v8198_v37 = vpop.eup %4596  ;;  %v1860_v5 = vmul.f32 %v7942_v53, %v1859_v56  ;;  %v1910_v58 = vmul.f32 %v7980_v11, %v1909_v39  ;;  %v8202_v0 = vadd.f32 1e-05, %v1016_v35  ;;  %v10460_v39 = vld [vmem:[#allocation94_spill] sm:$0xff] }
 0x2b0   :  { %v2197_v26 = vmul.f32 %v1844_v46, %v1093_v12  ;;  %vm1902_vm11 = vweird.f32 %v8025_v45  ;;  %vm1891_vm10 = vweird.f32 %v7950_v61  ;;  %vm1892_vm8 = vweird.f32 %v8049_v27  ;;  %2559 = vperm.xlu0 %4447, %v2201_v20   ;;  %v8240_v40 = vpop.permute.xlu2 %2369  ;;  %v1100_v12 = vld [vmem:[%s9869_s1 + $0x228] sm:$0xff] }
 0x2b1   :  { %v1927_v50 = vmul.f32 %v8124_v23, %v1926_v43  ;;  %v8210_v29 = vadd.f32 1e-05, %v1020_v9  ;;  %2534 = vperm.xlu2 %4446, %v2196_v55   ;;  %v8212_v56 = vpop.eup %4598  ;;  %v1899_v49 = vsub.f32 1.5, %v8191_v22  ;;  %v1889_v1 = vsub.f32 1.5, %v1888_v54  ;;  %10454 = vst [vmem:[#allocation120_spill] sm:$0xff] %v8240_v40  ;;  %v10457_v43 = vld [vmem:[#allocation53_spill] sm:$0xff]  ;;  %vm8301_vm6 = vmor %vm1891_vm10, %vm1892_vm8 }
 0x2b2   :  { %vm1941_vm14 = vweird.f32 %v7964_v24  ;;  %v1918_v35 = vmul.f32 0.5, %v1917_v19  ;;  %v1967_v10 = vmul.f32 %v8140_v51, %v1966_v16  ;;  %2539 = vperm.xlu1 %4445, %v2197_v26   ;;  %v8225_v55 = vpop.eup %4600  ;;  %vm1901_vm12 = vweird.f32 %v7935_v60  ;;  %v10458_v19 = vld [vmem:[#allocation57_spill] sm:$0xff]  ;;  %v8279_v26 = vpop.permute.xlu0 %2364 }
 0x2b3   :  { %v1939_v63 = vsub.f32 1.5, %v1938_v31  ;;  %vm1942_vm1 = vweird.f32 %v8063_v30  ;;  %v1946_v41 = vmul.f32 %v8198_v37, %v8103_v17  ;;  %4602 = vrsqrt.f32 %v8196_v2  ;;  %v1096_v31 = vld [vmem:[%s9869_s1 + $0x208] sm:$0xff]  ;;  %10459 = vst [vmem:[#allocation121_spill] sm:$0xff] %v8279_v26  ;;  %v1098_v60 = vld [vmem:[%s9869_s1 + $0x218] sm:$0xff] }
 0x2b4   :  { %4604 = vrsqrt.f32 %v8202_v0  ;;  %v1018_v9 = vmul.f32 0.020408163, %v10457_v43  ;;  %v1914_v46 = vsel %vm8232_vm13, %v7980_v11, %v1910_v58  ;;  %v1864_v22 = vsel %vm8218_vm15, %v7942_v53, %v1860_v5  ;;  %vm8318_vm10 = vmor %vm1941_vm14, %vm1942_vm1 }
 0x2b5   :  { %v8264_v54 = vmul.f32 0.5, %v1927_v50  ;;  %4606 = vrsqrt.f32 %v8210_v29  ;;  %v1023_v16 = vmul.f32 0.020408163, %v10458_v19  ;;  %v1874_v11 = vsel %vm8246_vm3, %v7876_v4, %v8116_v36  ;;  %vm8334_vm15 = vmor %vm1901_vm12, %vm1902_vm11 }
 0x2b6   :  { %v1919_v20 = vsub.f32 1.5, %v1918_v35  ;;  %v1956_v58 = vmul.f32 %v8212_v56, %v8113_v52  ;;  %v1968_v53 = vmul.f32 0.5, %v1967_v10  ;;  %v1996_v5 = vmul.f32 %v8225_v55, %v8122_v57 }
 0x2b7   :  { %v1947_v50 = vmul.f32 %v8198_v37, %v1946_v41  ;;  %v1019_v8 = vmul.f32 0.020408163, %v10460_v39  ;;  %v2204_v43 = vmul.f32 %v1914_v46, %v1100_v12  ;;  %v2199_v19 = vmul.f32 %v1864_v22, %v1095_v14  ;;  %v8309_v14 = vpop.permute.xlu1 %2344  ;;  %v10468_v39 = vld [vmem:[#allocation98_spill] sm:$0xff] }
 0x2b8   :  { %v1890_v6 = vmul.f32 %v8049_v27, %v1889_v1  ;;  %v1940_v4 = vmul.f32 %v8063_v30, %v1939_v63  ;;  %v8285_v36 = vadd.f32 1e-05, %v1018_v9  ;;  %v2200_v35 = vmul.f32 %v1874_v11, %v1096_v31  ;;  %10463 = vst [vmem:[#allocation122_spill] sm:$0xff] %v8309_v14  ;;  %v8328_v11 = vpop.permute.xlu2 %2384  ;;  %v10469_v63 = vld [vmem:[#allocation99_spill] sm:$0xff] }
 0x2b9   :  { %v8287_v3 = vpop.eup %4602  ;;  %v1900_v10 = vmul.f32 %v8025_v45, %v1899_v49  ;;  %vm1932_vm2 = vweird.f32 %v8124_v23  ;;  %vm1921_vm4 = vweird.f32 %v8008_v59  ;;  %vm1922_vm5 = vweird.f32 %v8107_v13  ;;  %2574 = vperm.xlu0 %4447, %v2204_v43   ;;  %2549 = vperm.xlu2 %4446, %v2199_v19   ;;  %v1099_v43 = vld [vmem:[%s9869_s1 + $0x220] sm:$0xff] }
 0x2ba   :  { %v8293_v41 = vadd.f32 1e-05, %v1023_v16  ;;  %v8295_v1 = vpop.eup %4604  ;;  %v1929_v49 = vsub.f32 1.5, %v8264_v54  ;;  %v1957_v9 = vmul.f32 %v8212_v56, %v1956_v58  ;;  %v1969_v12 = vsub.f32 1.5, %v1968_v53  ;;  %2554 = vperm.xlu1 %4445, %v2200_v35   ;;  %v8370_v24 = vpop.permute.xlu0 %2379  ;;  %vm8383_vm14 = vmor %vm1921_vm4, %vm1922_vm5 }
 0x2bb   :  { %vm1971_vm7 = vweird.f32 %v8031_v42  ;;  %v1997_v46 = vmul.f32 %v8225_v55, %v1996_v5  ;;  %v8311_v22 = vpop.eup %4606  ;;  %vm1931_vm9 = vweird.f32 %v8023_v28  ;;  %v8323_v54 = vmul.f32 %v8107_v13, %v1919_v20  ;;  %v1103_v20 = vld [vmem:[%s9869_s1 + $0x240] sm:$0xff]  ;;  %v1101_v28 = vld [vmem:[%s9869_s1 + $0x230] sm:$0xff] }
 0x2bc   :  { %vm1972_vm8 = vweird.f32 %v8140_v51  ;;  %v1948_v16 = vmul.f32 0.5, %v1947_v50  ;;  %v8326_v31 = vadd.f32 1e-05, %v1019_v8  ;;  %v1976_v58 = vmul.f32 %v8287_v3, %v8196_v2  ;;  %vm8413_vm5 = vmor %vm1931_vm9, %vm1932_vm2 }
 0x2bd   :  { %4608 = vrsqrt.f32 %v8285_v36  ;;  %v1944_v53 = vsel %vm8318_vm10, %v8063_v30, %v1940_v4  ;;  %v1894_v5 = vsel %vm8301_vm6, %v8049_v27, %v1890_v6  ;;  %v1986_v50 = vmul.f32 %v8295_v1, %v8202_v0  ;;  %vm8397_vm3 = vmor %vm1971_vm7, %vm1972_vm8 }
 0x2be   :  { %4610 = vrsqrt.f32 %v8293_v41  ;;  %v1021_v8 = vmul.f32 0.020408163, %v10468_v39  ;;  %v1904_v30 = vsel %vm8334_vm15, %v8025_v45, %v1900_v10  ;;  %v1958_v19 = vmul.f32 0.5, %v1957_v9 }
 0x2bf   :  { %v1970_v4 = vmul.f32 %v8140_v51, %v1969_v12  ;;  %v1998_v35 = vmul.f32 0.5, %v1997_v46  ;;  %v2026_v27 = vmul.f32 %v8311_v22, %v8210_v29  ;;  %v1949_v6 = vsub.f32 1.5, %v1948_v16 }
 0x2c0   :  { %v1026_v61 = vmul.f32 0.020408163, %v10469_v63  ;;  %v2207_v14 = vmul.f32 %v1944_v53, %v1103_v20  ;;  %v2202_v39 = vmul.f32 %v1894_v5, %v1098_v60  ;;  %v1977_v26 = vmul.f32 %v8287_v3, %v1976_v58  ;;  %v8407_v60 = vpop.permute.xlu2 %2399 }
 0x2c1   :  { %4612 = vrsqrt.f32 %v8326_v31  ;;  %v1022_v40 = vmul.f32 0.020408163, %v7234_v34  ;;  %v2203_v45 = vmul.f32 %v1904_v30, %v1099_v43  ;;  %v1930_v10 = vmul.f32 %v8124_v23, %v1929_v49  ;;  %10474 = vst [vmem:[#allocation123_spill] sm:$0xff] %v8407_v60  ;;  %v1106_v43 = vld [vmem:[%s9869_s1 + $0x258] sm:$0xff]  ;;  %v10557_v60 = vld [vmem:[#allocation80_spill] sm:$0xff] }
 0x2c2   :  { %vm1951_vm11 = vweird.f32 %v8103_v17  ;;  %v1987_v9 = vmul.f32 %v8295_v1, %v1986_v50  ;;  %v8375_v12 = vadd.f32 1e-05, %v1021_v8  ;;  %2589 = vperm.xlu0 %4447, %v2207_v14   ;;  %2564 = vperm.xlu2 %4446, %v2202_v39   ;;  %vm1962_vm12 = vweird.f32 %v8212_v56  ;;  %v8419_v8 = vpop.permute.xlu1 %2359 }
 0x2c3   :  { %v8377_v46 = vpop.eup %4608  ;;  %vm1952_vm13 = vweird.f32 %v8198_v37  ;;  %v1999_v49 = vsub.f32 1.5, %v1998_v35  ;;  %v2027_v16 = vmul.f32 %v8311_v22, %v2026_v27  ;;  %2569 = vperm.xlu1 %4445, %v2203_v45   ;;  %v1959_v58 = vsub.f32 1.5, %v1958_v19 }
 0x2c4   :  { %v8390_v14 = vpop.eup %4610  ;;  %vm1961_vm1 = vweird.f32 %v8113_v52  ;;  %v8402_v20 = vmul.f32 %v8198_v37, %v1949_v6  ;;  %vm2002_vm4 = vweird.f32 %v8225_v55  ;;  %v8405_v53 = vadd.f32 1e-05, %v1026_v61  ;;  %v10477_v6 = vld [vmem:[#allocation100_spill] sm:$0xff]  ;;  %v10478_v61 = vld [vmem:[#allocation103_spill] sm:$0xff]  ;;  %vm8464_vm6 = vmor %vm1951_vm11, %vm1952_vm13 }
 0x2c5   :  { %v1978_v42 = vmul.f32 0.5, %v1977_v26  ;;  %v8417_v50 = vadd.f32 1e-05, %v1022_v40  ;;  %v1974_v30 = vsel %vm8397_vm3, %v8140_v51, %v1970_v4  ;;  %v1924_v40 = vsel %vm8383_vm14, %v8107_v13, %v8323_v54  ;;  %v1102_v51 = vld [vmem:[%s9869_s1 + $0x238] sm:$0xff]  ;;  %vm8493_vm15 = vmor %vm1961_vm1, %vm1962_vm12  ;;  %v1104_v52 = vld [vmem:[%s9869_s1 + $0x248] sm:$0xff] }
 0x2c6   :  { %v8434_v26 = vmul.f32 0.5, %v1987_v9  ;;  %v2006_v19 = vmul.f32 %v8377_v46, %v8285_v36  ;;  %4614 = vrsqrt.f32 %v8375_v12  ;;  %v1934_v4 = vsel %vm8413_vm5, %v8124_v23, %v1930_v10  ;;  %v10479_v23 = vld [vmem:[#allocation102_spill] sm:$0xff] }
 0x2c7   :  { %v8445_v35 = vpop.eup %4612  ;;  %v2000_v27 = vmul.f32 %v8225_v55, %v1999_v49  ;;  %v2028_v13 = vmul.f32 0.5, %v2027_v16  ;;  %v2056_v54 = vmul.f32 %v8390_v14, %v8293_v41  ;;  %v1024_v63 = vmul.f32 0.020408163, %v10477_v6 }
 0x2c8   :  { %4616 = vrsqrt.f32 %v8405_v53  ;;  %v1029_v39 = vmul.f32 0.020408163, %v10478_v61  ;;  %v2210_v45 = vmul.f32 %v1974_v30, %v1106_v43  ;;  %v2205_v9 = vmul.f32 %v1924_v40, %v1101_v28  ;;  %v8473_v43 = vpop.permute.xlu0 %2394 }
 0x2c9   :  { %v1979_v34 = vsub.f32 1.5, %v1978_v42  ;;  %4618 = vrsqrt.f32 %v8417_v50  ;;  %v1025_v10 = vmul.f32 0.020408163, %v10479_v23  ;;  %v2206_v59 = vmul.f32 %v1934_v4, %v1102_v51  ;;  %10482 = vst [vmem:[#allocation124_spill] sm:$0xff] %v8473_v43  ;;  %v8487_v51 = vpop.permute.xlu2 %2414 }
 0x2ca   :  { %v1960_v49 = vmul.f32 %v8212_v56, %v1959_v58  ;;  %vm2001_vm2 = vweird.f32 %v8122_v57  ;;  %v2016_v16 = vmul.f32 %v8445_v35, %v8326_v31  ;;  %v2007_v5 = vmul.f32 %v8377_v46, %v2006_v19  ;;  %2604 = vperm.xlu0 %4447, %v2210_v45   ;;  %2579 = vperm.xlu2 %4446, %v2205_v9   ;;  %v8502_v6 = vpop.permute.xlu1 %2374 }
 0x2cb   :  { %vm1992_vm7 = vweird.f32 %v8295_v1  ;;  %vm1981_vm9 = vweird.f32 %v8196_v2  ;;  %v2057_v57 = vmul.f32 %v8390_v14, %v2056_v54  ;;  %v8471_v58 = vadd.f32 1e-05, %v1024_v63  ;;  %2584 = vperm.xlu1 %4445, %v2206_v59   ;;  %vm8480_vm10 = vmor %vm2001_vm2, %vm2002_vm4  ;;  %10485 = vst [vmem:[#allocation43_spill] sm:$0xff] %v8487_v51  ;;  %v2819_v51 = vld [vmem:[%s9870_s2 + $0x140] sm:$0xff] }
 0x2cc   :  { %v8475_v30 = vpop.eup %4614  ;;  %v1989_v28 = vsub.f32 1.5, %v8434_v26  ;;  %vm1982_vm8 = vweird.f32 %v8287_v3  ;;  %v2029_v40 = vsub.f32 1.5, %v2028_v13  ;;  %v8485_v19 = vadd.f32 1e-05, %v1029_v39  ;;  %v1109_v13 = vld [vmem:[%s9869_s1 + $0x270] sm:$0xff] }
 0x2cd   :  { %v8498_v26 = vmul.f32 %v8287_v3, %v1979_v34  ;;  %v8500_v54 = vadd.f32 1e-05, %v1025_v10  ;;  %v2004_v63 = vsel %vm8480_vm10, %v8225_v55, %v2000_v27  ;;  %v1954_v61 = vsel %vm8464_vm6, %v8198_v37, %v8402_v20  ;;  %v1105_v55 = vld [vmem:[%s9869_s1 + $0x250] sm:$0xff]  ;;  %v10488_v20 = vld [vmem:[#allocation105_spill] sm:$0xff]  ;;  %vm8547_vm12 = vmor %vm1981_vm9, %vm1982_vm8 }
 0x2ce   :  { %v8517_v39 = vpop.eup %4616  ;;  %v2017_v45 = vmul.f32 %v8445_v35, %v2016_v16  ;;  %vm2032_vm11 = vweird.f32 %v8311_v22  ;;  %v2008_v9 = vmul.f32 0.5, %v2007_v5  ;;  %v1964_v27 = vsel %vm8493_vm15, %v8212_v56, %v1960_v49 }
 0x2cf   :  { %v8527_v34 = vpop.eup %4618  ;;  %v2058_v23 = vmul.f32 0.5, %v2057_v57  ;;  %v2036_v37 = vmul.f32 %v8475_v30, %v8375_v12  ;;  %4620 = vrsqrt.f32 %v8471_v58  ;;  %v1027_v10 = vmul.f32 0.020408163, %v10488_v20 }
 0x2d0   :  { %v2030_v59 = vmul.f32 %v8311_v22, %v2029_v40  ;;  %4622 = vrsqrt.f32 %v8485_v19  ;;  %v2213_v16 = vmul.f32 %v2004_v63, %v1109_v13  ;;  %v2208_v5 = vmul.f32 %v1954_v61, %v1104_v52 }
 0x2d1   :  { %4624 = vrsqrt.f32 %v8500_v54  ;;  %v2086_v56 = vmul.f32 %v8517_v39, %v8405_v53  ;;  %v1028_v49 = vmul.f32 0.020408163, %v7439_v47  ;;  %v2209_v42 = vmul.f32 %v1964_v27, %v1105_v55  ;;  %v8565_v2 = vpop.permute.xlu2 %2429  ;;  %v1112_v27 = vld [vmem:[%s9869_s1 + $0x288] sm:$0xff] }
 0x2d2   :  { %v1990_v57 = vmul.f32 %v8295_v1, %v1989_v28  ;;  %v2018_v17 = vmul.f32 0.5, %v2017_v45  ;;  %vm2031_vm14 = vweird.f32 %v8210_v29  ;;  %v2046_v40 = vmul.f32 %v8527_v34, %v8417_v50  ;;  %2619 = vperm.xlu0 %4447, %v2213_v16   ;;  %2594 = vperm.xlu2 %4446, %v2208_v5   ;;  %v8554_v29 = vpop.permute.xlu0 %2409  ;;  %10494 = vst [vmem:[#allocation53_spill] sm:$0xff] %v8565_v2  ;;  %v8578_v55 = vpop.permute.xlu1 %2389 }
 0x2d3   :  { %v2009_v47 = vsub.f32 1.5, %v2008_v9  ;;  %v2059_v13 = vsub.f32 1.5, %v2058_v23  ;;  %v2037_v28 = vmul.f32 %v8475_v30, %v2036_v37  ;;  %v8552_v63 = vadd.f32 1e-05, %v1027_v10  ;;  %10491 = vst [vmem:[#allocation47_spill] sm:$0xff] %v8554_v29  ;;  %2599 = vperm.xlu1 %4445, %v2209_v42   ;;  %vm8559_vm1 = vmor %vm2031_vm14, %vm2032_vm11  ;;  %v1107_v37 = vld [vmem:[%s9869_s1 + $0x260] sm:$0xff] }
 0x2d4   :  { %vm1991_vm13 = vweird.f32 %v8202_v0  ;;  %vm2011_vm3 = vweird.f32 %v8285_v36  ;;  %vm2012_vm4 = vweird.f32 %v8377_v46  ;;  %v2087_v0 = vmul.f32 %v8517_v39, %v2086_v56  ;;  %10497 = vst [vmem:[#allocation57_spill] sm:$0xff] %v8578_v55  ;;  %v2820_v29 = vld [vmem:[%s9870_s2 + $0x148] sm:$0xff] }
 0x2d5   :  { %v8567_v61 = vpop.eup %4620  ;;  %vm8571_vm5 = vmor %vm1991_vm13, %vm1992_vm7  ;;  %v8576_v9 = vadd.f32 1e-05, %v1028_v49  ;;  %v2034_v23 = vsel %vm8559_vm1, %v8311_v22, %v2030_v59  ;;  %v1984_v20 = vsel %vm8547_vm12, %v8287_v3, %v8498_v26  ;;  %v2019_v16 = vsub.f32 1.5, %v2018_v17  ;;  %v1108_v22 = vld [vmem:[%s9869_s1 + $0x268] sm:$0xff] }
 0x2d6   :  { %v8593_v10 = vpop.eup %4622  ;;  %v2047_v5 = vmul.f32 %v8527_v34, %v2046_v40  ;;  %vm2062_vm2 = vweird.f32 %v8390_v14  ;;  %v1994_v59 = vsel %vm8571_vm5, %v8295_v1, %v1990_v57  ;;  %v2010_v49 = vmul.f32 %v8377_v46, %v2009_v47  ;;  %vm8622_vm7 = vmor %vm2011_vm3, %vm2012_vm4 }
 0x2d7   :  { %v8603_v56 = vpop.eup %4624  ;;  %v2060_v3 = vmul.f32 %v8390_v14, %v2059_v13  ;;  %v2038_v26 = vmul.f32 0.5, %v2037_v28  ;;  %4626 = vrsqrt.f32 %v8552_v63  ;;  %v2066_v42 = vmul.f32 %v8567_v61, %v8471_v58 }
 0x2d8   :  { %v1030_v17 = vmul.f32 0.020408163, %v7489_v7  ;;  %v2216_v40 = vmul.f32 %v2034_v23, %v1112_v27  ;;  %v2211_v4 = vmul.f32 %v1984_v20, %v1107_v37  ;;  %v2088_v52 = vmul.f32 0.5, %v2087_v0 }
 0x2d9   :  { %4628 = vrsqrt.f32 %v8576_v9  ;;  %v2116_v1 = vmul.f32 %v8593_v10, %v8485_v19  ;;  %v2212_v57 = vmul.f32 %v1994_v59, %v1108_v22  ;;  %v2020_v47 = vmul.f32 %v8445_v35, %v2019_v16  ;;  %v8639_v37 = vpop.permute.xlu2 %2444  ;;  %v1115_v22 = vld [vmem:[%s9869_s1 + $0x2a0] sm:$0xff] }
 0x2da   :  { %vm2022_vm6 = vweird.f32 %v8445_v35  ;;  %v2048_v13 = vmul.f32 0.5, %v2047_v5  ;;  %v2076_v28 = vmul.f32 %v8603_v56, %v8500_v54  ;;  %2634 = vperm.xlu0 %4447, %v2216_v40   ;;  %2609 = vperm.xlu2 %4446, %v2211_v4   ;;  %vm2061_vm9 = vweird.f32 %v8293_v41  ;;  %v8637_v36 = vpop.permute.xlu0 %2424  ;;  %v8650_v5 = vpop.permute.xlu1 %2404  ;;  %v1111_v4 = vld [vmem:[%s9869_s1 + $0x280] sm:$0xff] }
 0x2db   :  { %v2039_v45 = vsub.f32 1.5, %v2038_v26  ;;  %2614 = vperm.xlu1 %4445, %v2212_v57   ;;  %vm2021_vm10 = vweird.f32 %v8326_v31  ;;  %vm8630_vm8 = vmor %vm2061_vm9, %vm2062_vm2  ;;  %v2067_v27 = vmul.f32 %v8567_v61, %v2066_v42  ;;  %v8635_v23 = vadd.f32 1e-05, %v1030_v17  ;;  %10502 = vst [vmem:[#allocation94_spill] sm:$0xff] %v8637_v36  ;;  %v1110_v26 = vld [vmem:[%s9869_s1 + $0x278] sm:$0xff]  ;;  %v2817_v36 = vld [vmem:[%s9870_s2 + $0x130] sm:$0xff] }
 0x2dc   :  { %vm8645_vm15 = vmor %vm2021_vm10, %vm2022_vm6  ;;  %v2089_v31 = vsub.f32 1.5, %v2088_v52  ;;  %v2117_v16 = vmul.f32 %v8593_v10, %v2116_v1  ;;  %10505 = vst [vmem:[#allocation98_spill] sm:$0xff] %v8650_v5  ;;  %v2064_v59 = vsel %vm8630_vm8, %v8390_v14, %v2060_v3  ;;  %v2014_v42 = vsel %vm8622_vm7, %v8377_v46, %v2010_v49  ;;  %v10558_v5 = vld [vmem:[#allocation83_spill] sm:$0xff] }
 0x2dd   :  { %v8641_v20 = vpop.eup %4626  ;;  %v2049_v17 = vsub.f32 1.5, %v2048_v13  ;;  %v2077_v40 = vmul.f32 %v8603_v56, %v2076_v28  ;;  %v2024_v52 = vsel %vm8645_vm15, %v8445_v35, %v2020_v47  ;;  %v2040_v3 = vmul.f32 %v8475_v30, %v2039_v45 }
 0x2de   :  { %vm2041_vm11 = vweird.f32 %v8375_v12  ;;  %vm2042_vm14 = vweird.f32 %v8475_v30  ;;  %vm2092_vm12 = vweird.f32 %v8517_v39  ;;  %v2068_v46 = vmul.f32 0.5, %v2067_v27  ;;  %v1116_v12 = vld [vmem:[%s9869_s1 + $0x2a8] sm:$0xff] }
 0x2df   :  { %v8671_v14 = vpop.eup %4628  ;;  %4630 = vrsqrt.f32 %v8635_v23  ;;  %v2219_v49 = vmul.f32 %v2064_v59, %v1115_v22  ;;  %v2214_v1 = vmul.f32 %v2014_v42, %v1110_v26  ;;  %v2090_v57 = vmul.f32 %v8517_v39, %v2089_v31  ;;  %vm8689_vm1 = vmor %vm2041_vm11, %vm2042_vm14  ;;  %v1113_v42 = vld [vmem:[%s9869_s1 + $0x290] sm:$0xff] }
 0x2e0   :  { %v2118_v13 = vmul.f32 0.5, %v2117_v16  ;;  %v2096_v35 = vmul.f32 %v8641_v20, %v8552_v63  ;;  %v2215_v47 = vmul.f32 %v2024_v52, %v1111_v4  ;;  %v2050_v28 = vmul.f32 %v8527_v34, %v2049_v17 }
 0x2e1   :  { %vm2052_vm13 = vweird.f32 %v8527_v34  ;;  %v2078_v7 = vmul.f32 0.5, %v2077_v40  ;;  %v2106_v45 = vmul.f32 %v8671_v14, %v8576_v9  ;;  %vm2091_vm3 = vweird.f32 %v8405_v53  ;;  %v8703_v16 = vpop.permute.xlu2 %2459 }
 0x2e2   :  { %2649 = vperm.xlu0 %4447, %v2219_v49   ;;  %2624 = vperm.xlu2 %4446, %v2214_v1   ;;  %vm2051_vm4 = vweird.f32 %v8417_v50  ;;  %vm8697_vm5 = vmor %vm2091_vm3, %vm2092_vm12  ;;  %v2069_v41 = vsub.f32 1.5, %v2068_v46  ;;  %v8701_v31 = vpop.permute.xlu0 %2439  ;;  %v2119_v22 = vsub.f32 1.5, %v2118_v13  ;;  %v2097_v53 = vmul.f32 %v8641_v20, %v2096_v35  ;;  %v8710_v59 = vpop.permute.xlu1 %2419  ;;  %v1118_v50 = vld [vmem:[%s9869_s1 + $0x2b8] sm:$0xff] }
 0x2e3   :  { %2629 = vperm.xlu1 %4445, %v2215_v47   ;;  %vm8705_vm2 = vmor %vm2051_vm4, %vm2052_vm13  ;;  %10512 = vst [vmem:[#allocation99_spill] sm:$0xff] %v8710_v59  ;;  %v2094_v26 = vsel %vm8697_vm5, %v8517_v39, %v2090_v57  ;;  %v2044_v17 = vsel %vm8689_vm1, %v8475_v30, %v2040_v3  ;;  %v2079_v4 = vsub.f32 1.5, %v2078_v7  ;;  %v2107_v52 = vmul.f32 %v8671_v14, %v2106_v45  ;;  %v1114_v46 = vld [vmem:[%s9869_s1 + $0x298] sm:$0xff]  ;;  %v2783_v45 = vld [vmem:[%s9870_s2 + $0x20] sm:$0xff] }
 0x2e4   :  { %v2054_v39 = vsel %vm8705_vm2, %v8527_v34, %v2050_v28  ;;  %vm2072_vm6 = vweird.f32 %v8567_v61  ;;  %v2070_v49 = vmul.f32 %v8567_v61, %v2069_v41  ;;  %vm2122_vm7 = vweird.f32 %v8593_v10  ;;  %v10553_v59 = vld [vmem:[#allocation68_spill] sm:$0xff] }
 0x2e5   :  { %v8724_v40 = vpop.eup %4630  ;;  %v2222_v30 = vmul.f32 %v2094_v26, %v1118_v50  ;;  %v2217_v3 = vmul.f32 %v2044_v17, %v1113_v42  ;;  %v2120_v1 = vmul.f32 %v8593_v10, %v2119_v22  ;;  %v2098_v57 = vmul.f32 0.5, %v2097_v53  ;;  %v1117_v50 = vld [vmem:[%s9869_s1 + $0x2b0] sm:$0xff] }
 0x2e6   :  { %v2126_v13 = vmul.f32 %v8724_v40, %v8635_v23  ;;  %v2218_v35 = vmul.f32 %v2054_v39, %v1114_v46  ;;  %v2080_v47 = vmul.f32 %v8603_v56, %v2079_v4  ;;  %vm2082_vm9 = vweird.f32 %v8603_v56 }
 0x2e7   :  { %vm2071_vm10 = vweird.f32 %v8471_v58  ;;  %v2108_v34 = vmul.f32 0.5, %v2107_v52  ;;  %vm2121_vm15 = vweird.f32 %v8485_v19  ;;  %vm2081_vm11 = vweird.f32 %v8500_v54  ;;  %v1121_v19 = vld [vmem:[%s9869_s1 + $0x2d0] sm:$0xff] }
 0x2e8   :  { %vm8744_vm8 = vmor %vm2071_vm10, %vm2072_vm6  ;;  %v2099_v0 = vsub.f32 1.5, %v2098_v57  ;;  %v2127_v27 = vmul.f32 %v8724_v40, %v2126_v13  ;;  %vm2102_vm13 = vweird.f32 %v8641_v20  ;;  %vm2112_vm1 = vweird.f32 %v8671_v14 }
 0x2e9   :  { %vm2123_vm14 = vmor %vm2121_vm15, %vm2122_vm7  ;;  %v8754_v58 = vpop.permute.xlu2 %2474  ;;  %v2074_v22 = vsel %vm8744_vm8, %v8567_v61, %v2070_v49  ;;  %v2109_v53 = vsub.f32 1.5, %v2108_v34  ;;  %vm2101_vm3 = vweird.f32 %v8552_v63  ;;  %vm2111_vm4 = vweird.f32 %v8576_v9  ;;  %v1120_v63 = vld [vmem:[%s9869_s1 + $0x2c8] sm:$0xff]  ;;  %v1122_v34 = vld [vmem:[%s9869_s1 + $0x2d8] sm:$0xff] }
 0x2ea   :  { %2664 = vperm.xlu0 %4447, %v2222_v30   ;;  %2639 = vperm.xlu2 %4446, %v2217_v3   ;;  %v8752_v7 = vpop.permute.xlu0 %2454  ;;  %10515 = vst [vmem:[#allocation100_spill] sm:$0xff] %v8754_v58  ;;  %vm8756_vm12 = vmor %vm2081_vm11, %vm2082_vm9  ;;  %v8761_v41 = vpop.permute.xlu1 %2434  ;;  %v2124_v54 = vsel %vm2123_vm14, %v8593_v10, %v2120_v1  ;;  %v2220_v17 = vmul.f32 %v2074_v22, %v1116_v12  ;;  %v2128_v4 = vmul.f32 0.5, %v2127_v27  ;;  %v1119_v30 = vld [vmem:[%s9869_s1 + $0x2c0] sm:$0xff]  ;;  %v2780_v1 = vld [vmem:[%s9870_s2 + $0x8] sm:$0xff]  ;;  %vm2132_vm6 = vweird.f32 %v8724_v40 }
 0x2eb   :  { %2644 = vperm.xlu1 %4445, %v2218_v35   ;;  %10518 = vst [vmem:[#allocation103_spill] sm:$0xff] %v8761_v41  ;;  %v2084_v26 = vsel %vm8756_vm12, %v8603_v56, %v2080_v47  ;;  %v2225_v42 = vmul.f32 %v2124_v54, %v1121_v19  ;;  %v2100_v10 = vmul.f32 %v8641_v20, %v2099_v0  ;;  %vm2103_vm5 = vmor %vm2101_vm3, %vm2102_vm13  ;;  %vm2131_vm7 = vweird.f32 %v8635_v23  ;;  %v2779_v23 = vld [vmem:[%s9870_s2] sm:$0xff]  ;;  %v2781_v12 = vld [vmem:[%s9870_s2 + $0x10] sm:$0xff] }
 0x2ec   :  { %v2221_v52 = vmul.f32 %v2084_v26, %v1117_v50  ;;  %v2110_v46 = vmul.f32 %v8671_v14, %v2109_v53  ;;  %vm2113_vm2 = vmor %vm2111_vm4, %vm2112_vm1  ;;  %v2129_v39 = vsub.f32 1.5, %v2128_v4  ;;  %v2782_v22 = vld [vmem:[%s9870_s2 + $0x18] sm:$0xff]  ;;  %v2687_v55 = vmul.f32 %v7532_v25, %v10553_v59 }
 0x2ed   :  { %v2104_v3 = vsel %vm2103_vm5, %v8641_v20, %v2100_v10  ;;  %vm2133_vm9 = vmor %vm2131_vm7, %vm2132_vm6  ;;  %v2785_v10 = vld [vmem:[%s9870_s2 + $0x30] sm:$0xff]  ;;  %v2814_v58 = vld [vmem:[%s9870_s2 + $0x118] sm:$0xff]  ;;  %v2702_v25 = vmul.f32 %v7849_v33, %v10558_v5  ;;  %vm3841_vm10 = vcmask 785408  }
 0x2ee   :  { %v2114_v9 = vsel %vm2113_vm2, %v8671_v14, %v2110_v46  ;;  %v2223_v57 = vmul.f32 %v2104_v3, %v1119_v30  ;;  %v2130_v13 = vmul.f32 %v8724_v40, %v2129_v39  ;;  %v2792_v39 = vld [vmem:[%s9870_s2 + $0x68] sm:$0xff]  ;;  %v2787_v30 = vld [vmem:[%s9870_s2 + $0x40] sm:$0xff]  ;;  %v2869_v33 = vld [vmem:[%s9870_s2 + $0x2d0] sm:$0xff] }
 0x2ef   :  { %v2224_v35 = vmul.f32 %v2114_v9, %v1120_v63  ;;  %v2788_v3 = vld [vmem:[%s9870_s2 + $0x48] sm:$0xff] }
 0x2f0   :  { %v2134_v28 = vsel %vm2133_vm9, %v8724_v40, %v2130_v13  ;;  %v2786_v40 = vld [vmem:[%s9870_s2 + $0x38] sm:$0xff] }
 0x2f1   :  { %v8787_v56 = vpop.permute.xlu2 %2489  ;;  %v2226_v0 = vmul.f32 %v2134_v28, %v1122_v34  ;;  %v2790_v13 = vld [vmem:[%s9870_s2 + $0x58] sm:$0xff] }
 0x2f2   :  { %2679 = vperm.xlu0 %4447, %v2225_v42   ;;  %2654 = vperm.xlu2 %4446, %v2220_v17   ;;  %v8785_v61 = vpop.permute.xlu0 %2469  ;;  %10520 = vst [vmem:[#allocation105_spill] sm:$0xff] %v8787_v56  ;;  %v8789_v49 = vpop.permute.xlu1 %2449  ;;  %v2789_v42 = vld [vmem:[%s9870_s2 + $0x50] sm:$0xff]  ;;  %v2784_v17 = vld [vmem:[%s9870_s2 + $0x28] sm:$0xff]  ;;  %v2835_v56 = vld [vmem:[%s9870_s2 + $0x1c0] sm:$0xff] }
 0x2f3   :  { %2659 = vperm.xlu1 %4445, %v2221_v52   ;;  %10519 = vst [vmem:[#allocation102_spill] sm:$0xff] %v8785_v61  ;;  %v2811_v61 = vld [vmem:[%s9870_s2 + $0x100] sm:$0xff] }
 0x2f9   :  { %v8807_v47 = vpop.permute.xlu2 %2504 }
 0x2fa   :  { %2878 = vperm.xlu0 %4447, %v2780_v1   ;;  %2669 = vperm.xlu2 %4446, %v2223_v57   ;;  %v8805_v20 = vpop.permute.xlu0 %2484  ;;  %10522 = vst [vmem:[#allocation126_spill] sm:$0xff] %v8807_v47  ;;  %v8809_v14 = vpop.permute.xlu1 %2464  ;;  %v2795_v57 = vld [vmem:[%s9870_s2 + $0x80] sm:$0xff]  ;;  %v2699_v47 = vmul.f32 %v7760_v21, %v10557_v60  ;;  %v2834_v21 = vld [vmem:[%s9870_s2 + $0x1b8] sm:$0xff] }
 0x2fb   :  { %2674 = vperm.xlu1 %4445, %v2224_v35   ;;  %10521 = vst [vmem:[#allocation125_spill] sm:$0xff] %v8805_v20  ;;  %v2791_v35 = vld [vmem:[%s9870_s2 + $0x60] sm:$0xff] }
 0x2fc   :  { %v2839_v20 = vld [vmem:[%s9870_s2 + $0x1e0] sm:$0xff] }
 0x302   :  { %2893 = vperm.xlu0 %4447, %v2783_v45   ;;  %2684 = vperm.xlu2 %4446, %v2226_v0   ;;  %v8821_v27 = vpop.permute.xlu0 %2499  ;;  %v8823_v19 = vpop.permute.xlu2 %2519  ;;  %v2798_v0 = vld [vmem:[%s9870_s2 + $0x98] sm:$0xff] }
 0x303   :  { %2873 = vperm.xlu1 %4445, %v2779_v23   ;;  %10523 = vst [vmem:[#allocation127_spill] sm:$0xff] %v8821_v27  ;;  %v8825_v54 = vpop.permute.xlu1 %2479  ;;  %v2793_v23 = vld [vmem:[%s9870_s2 + $0x70] sm:$0xff] }
 0x304   :  { %10524 = vst [vmem:[#allocation128_spill] sm:$0xff] %v8825_v54  ;;  %v2837_v54 = vld [vmem:[%s9870_s2 + $0x1d0] sm:$0xff] }
 0x30a   :  { %2908 = vperm.xlu0 %4447, %v2786_v40   ;;  %2883 = vperm.xlu2 %4446, %v2781_v12   ;;  %v8836_v53 = vpop.permute.xlu0 %2514  ;;  %v2794_v40 = vld [vmem:[%s9870_s2 + $0x78] sm:$0xff] }
 0x30b   :  { %2888 = vperm.xlu1 %4445, %v2782_v22   ;;  %v8838_v50 = vpop.permute.xlu2 %2534  ;;  %v8840_v26 = vpop.permute.xlu1 %2494 }
 0x30c   :  { %10525 = vst [vmem:[#allocation129_spill] sm:$0xff] %v8840_v26  ;;  %v2857_v26 = vld [vmem:[%s9870_s2 + $0x270] sm:$0xff] }
 0x312   :  { %2923 = vperm.xlu0 %4447, %v2789_v42   ;;  %2898 = vperm.xlu2 %4446, %v2784_v17   ;;  %v8851_v4 = vpop.permute.xlu0 %2529  ;;  %v2801_v17 = vld [vmem:[%s9870_s2 + $0xb0] sm:$0xff] }
 0x313   :  { %2903 = vperm.xlu1 %4445, %v2785_v10   ;;  %v8853_v52 = vpop.permute.xlu2 %2549  ;;  %v8855_v46 = vpop.permute.xlu1 %2509  ;;  %v2796_v10 = vld [vmem:[%s9870_s2 + $0x88] sm:$0xff] }
 0x314   :  { %10526 = vst [vmem:[#allocation130_spill] sm:$0xff] %v8853_v52  ;;  %v2806_v52 = vld [vmem:[%s9870_s2 + $0xd8] sm:$0xff] }
 0x31a   :  { %2938 = vperm.xlu0 %4447, %v2792_v39   ;;  %2913 = vperm.xlu2 %4446, %v2787_v30   ;;  %v8866_v63 = vpop.permute.xlu0 %2544  ;;  %v2797_v39 = vld [vmem:[%s9870_s2 + $0x90] sm:$0xff] }
 0x31b   :  { %2918 = vperm.xlu1 %4445, %v2788_v3   ;;  %v8870_v1 = vpop.permute.xlu1 %2524 }
 0x31c   :  { %v8868_v9 = vpop.permute.xlu2 %2564 }
 0x31d   :  { %10527 = vst [vmem:[#allocation131_spill] sm:$0xff] %v8868_v9  ;;  %v2809_v9 = vld [vmem:[%s9870_s2 + $0xf0] sm:$0xff] }
 0x322   :  { %2953 = vperm.xlu0 %4447, %v2795_v57   ;;  %2928 = vperm.xlu2 %4446, %v2790_v13   ;;  %v8881_v34 = vpop.permute.xlu0 %2559  ;;  %v2804_v13 = vld [vmem:[%s9870_s2 + $0xc8] sm:$0xff] }
 0x323   :  { %2933 = vperm.xlu1 %4445, %v2791_v35   ;;  %10528 = vst [vmem:[#allocation132_spill] sm:$0xff] %v8881_v34  ;;  %v2799_v35 = vld [vmem:[%s9870_s2 + $0xa0] sm:$0xff] }
 0x324   :  { %v8883_v28 = vpop.permute.xlu2 %2579  ;;  %v8885_v45 = vpop.permute.xlu1 %2539 }
 0x325   :  { %10529 = vst [vmem:[#allocation133_spill] sm:$0xff] %v8883_v28 }
 0x32a   :  { %2968 = vperm.xlu0 %4447, %v2798_v0   ;;  %2943 = vperm.xlu2 %4446, %v2793_v23   ;;  %v2800_v0 = vld [vmem:[%s9870_s2 + $0xa8] sm:$0xff] }
 0x32b   :  { %2948 = vperm.xlu1 %4445, %v2794_v40   ;;  %v8896_v12 = vpop.permute.xlu0 %2574 }
 0x32c   :  { %10530 = vst [vmem:[#allocation134_spill] sm:$0xff] %v8896_v12  ;;  %v8898_v22 = vpop.permute.xlu2 %2594  ;;  %v8900_v42 = vpop.permute.xlu1 %2554  ;;  %v2808_v12 = vld [vmem:[%s9870_s2 + $0xe8] sm:$0xff] }
 0x32d   :  { %10531 = vst [vmem:[#allocation135_spill] sm:$0xff] %v8898_v22  ;;  %v2821_v22 = vld [vmem:[%s9870_s2 + $0x150] sm:$0xff] }
 0x32e   :  { %10532 = vst [vmem:[#allocation136_spill] sm:$0xff] %v8900_v42  ;;  %v2813_v42 = vld [vmem:[%s9870_s2 + $0x110] sm:$0xff] }
 0x332   :  { %2983 = vperm.xlu0 %4447, %v2801_v17   ;;  %2958 = vperm.xlu2 %4446, %v2796_v10   ;;  %v2807_v10 = vld [vmem:[%s9870_s2 + $0xe0] sm:$0xff] }
 0x333   :  { %2963 = vperm.xlu1 %4445, %v2797_v39   ;;  %v2802_v39 = vld [vmem:[%s9870_s2 + $0xb8] sm:$0xff] }
 0x334   :  { %v8911_v30 = vpop.permute.xlu0 %2589  ;;  %v8913_v3 = vpop.permute.xlu2 %2609 }
 0x335   :  { %10533 = vst [vmem:[#allocation137_spill] sm:$0xff] %v8911_v30  ;;  %v8915_v57 = vpop.permute.xlu1 %2569  ;;  %v2822_v30 = vld [vmem:[%s9870_s2 + $0x158] sm:$0xff] }
 0x336   :  { %10534 = vst [vmem:[#allocation138_spill] sm:$0xff] %v8913_v3  ;;  %v10556_v3 = vld [vmem:[#allocation82_spill] sm:$0xff] }
 0x337   :  { %10535 = vst [vmem:[#allocation139_spill] sm:$0xff] %v8915_v57  ;;  %v2826_v57 = vld [vmem:[%s9870_s2 + $0x178] sm:$0xff]  ;;  %v2701_v27 = vmul.f32 %v8005_v48, %v10556_v3 }
 0x33a   :  { %2998 = vperm.xlu0 %4447, %v2804_v13   ;;  %2973 = vperm.xlu2 %4446, %v2799_v35   ;;  %v2803_v13 = vld [vmem:[%s9870_s2 + $0xc0] sm:$0xff] }
 0x33b   :  { %2978 = vperm.xlu1 %4445, %v2800_v0  }
 0x33c   :  { %v8926_v23 = vpop.permute.xlu0 %2604  ;;  %v8928_v40 = vpop.permute.xlu2 %2624 }
 0x33d   :  { %10536 = vst [vmem:[#allocation140_spill] sm:$0xff] %v8926_v23  ;;  %v8930_v17 = vpop.permute.xlu1 %2584  ;;  %v2855_v23 = vld [vmem:[%s9870_s2 + $0x260] sm:$0xff] }
 0x33e   :  { %10537 = vst [vmem:[#allocation141_spill] sm:$0xff] %v8930_v17  ;;  %v2841_v17 = vld [vmem:[%s9870_s2 + $0x1f0] sm:$0xff] }
 0x342   :  { %3013 = vperm.xlu0 %4447, %v2807_v10   ;;  %2988 = vperm.xlu2 %4446, %v2802_v39   ;;  %v2810_v10 = vld [vmem:[%s9870_s2 + $0xf8] sm:$0xff] }
 0x343   :  { %2993 = vperm.xlu1 %4445, %v2803_v13  }
 0x344   :  { %v8941_v35 = vpop.permute.xlu0 %2619  ;;  %v8943_v0 = vpop.permute.xlu2 %2639 }
 0x345   :  { %10538 = vst [vmem:[#allocation142_spill] sm:$0xff] %v8941_v35  ;;  %v8945_v34 = vpop.permute.xlu1 %2599 }
 0x346   :  { %10539 = vst [vmem:[#allocation143_spill] sm:$0xff] %v8943_v0 }
 0x347   :  { %10540 = vst [vmem:[#allocation144_spill] sm:$0xff] %v8945_v34  ;;  %v2833_v34 = vld [vmem:[%s9870_s2 + $0x1b0] sm:$0xff] }
 0x34a   :  { %3008 = vperm.xlu0 %4447, %v2806_v52   ;;  %3023 = vperm.xlu2 %4446, %v2809_v9   ;;  %v2805_v52 = vld [vmem:[%s9870_s2 + $0xd0] sm:$0xff] }
 0x34b   :  { %3028 = vperm.xlu1 %4445, %v2810_v10  }
 0x34c   :  { %v8956_v39 = vpop.permute.xlu0 %2634  ;;  %v8958_v13 = vpop.permute.xlu2 %2654 }
 0x34d   :  { %10541 = vst [vmem:[#allocation145_spill] sm:$0xff] %v8956_v39  ;;  %v8960_v0 = vpop.permute.xlu1 %2614 }
 0x34e   :  { %10542 = vst [vmem:[#allocation146_spill] sm:$0xff] %v8958_v13  ;;  %v2840_v13 = vld [vmem:[%s9870_s2 + $0x1e8] sm:$0xff] }
 0x34f   :  { %10543 = vst [vmem:[#allocation147_spill] sm:$0xff] %v8960_v0 }
 0x352   :  { %3043 = vperm.xlu0 %4447, %v2813_v42   ;;  %3018 = vperm.xlu2 %4446, %v2808_v12   ;;  %v2812_v42 = vld [vmem:[%s9870_s2 + $0x108] sm:$0xff] }
 0x353   :  { %3003 = vperm.xlu1 %4445, %v2805_v52  }
 0x354   :  { %v8971_v9 = vpop.permute.xlu0 %2649  ;;  %v8973_v10 = vpop.permute.xlu2 %2669 }
 0x355   :  { %10544 = vst [vmem:[#allocation148_spill] sm:$0xff] %v8971_v9  ;;  %v8975_v39 = vpop.permute.xlu1 %2629  ;;  %v2823_v9 = vld [vmem:[%s9870_s2 + $0x160] sm:$0xff] }
 0x356   :  { %10545 = vst [vmem:[#allocation149_spill] sm:$0xff] %v8973_v10  ;;  %v2838_v10 = vld [vmem:[%s9870_s2 + $0x1d8] sm:$0xff] }
 0x357   :  { %10546 = vst [vmem:[#allocation150_spill] sm:$0xff] %v8975_v39 }
 0x35a   :  { %3108 = vperm.xlu0 %4447, %v2826_v57   ;;  %3033 = vperm.xlu2 %4446, %v2811_v61   ;;  %v2825_v57 = vld [vmem:[%s9870_s2 + $0x170] sm:$0xff] }
 0x35b   :  { %3038 = vperm.xlu1 %4445, %v2812_v42  }
 0x35c   :  { %v8986_v12 = vpop.permute.xlu0 %2664  ;;  %v8988_v52 = vpop.permute.xlu2 %2684 }
 0x35d   :  { %10547 = vst [vmem:[#allocation151_spill] sm:$0xff] %v8986_v12  ;;  %v8990_v39 = vpop.permute.xlu1 %2644  ;;  %v2858_v12 = vld [vmem:[%s9870_s2 + $0x278] sm:$0xff] }
 0x35e   :  { %10548 = vst [vmem:[#allocation152_spill] sm:$0xff] %v8988_v52  ;;  %v2854_v52 = vld [vmem:[%s9870_s2 + $0x258] sm:$0xff] }
 0x35f   :  { %10549 = vst [vmem:[#allocation153_spill] sm:$0xff] %v8990_v39 }
 0x362   :  { %3093 = vperm.xlu0 %4447, %v2823_v9   ;;  %3048 = vperm.xlu2 %4446, %v2814_v58   ;;  %v2842_v9 = vld [vmem:[%s9870_s2 + $0x1f8] sm:$0xff] }
 0x363   :  { %3103 = vperm.xlu1 %4445, %v2825_v57  }
 0x364   :  { %v9001_v61 = vpop.permute.xlu0 %2679  ;;  %v9003_v42 = vpop.permute.xlu2 %2883 }
 0x365   :  { %10550 = vst [vmem:[#allocation154_spill] sm:$0xff] %v9001_v61  ;;  %v9005_v39 = vpop.permute.xlu1 %2659  ;;  %v2836_v61 = vld [vmem:[%s9870_s2 + $0x1c8] sm:$0xff] }
 0x366   :  { %10551 = vst [vmem:[#allocation155_spill] sm:$0xff] %v9005_v39  ;;  %v2824_v39 = vld [vmem:[%s9870_s2 + $0x168] sm:$0xff] }
 0x36a   :  { %3178 = vperm.xlu0 %4447, %v2840_v13   ;;  %3183 = vperm.xlu2 %4446, %v2841_v17  }
 0x36b   :  { %3188 = vperm.xlu1 %4445, %v2842_v9  }
 0x36c   :  { %v2879_v58 = vpop.permute.xlu0 %2878  ;;  %v9016_v57 = vpop.permute.xlu2 %2898 }
 0x36d   :  { %v9018_v28 = vpop.permute.xlu1 %2674 }
 0x36e   :  { %10552 = vst [vmem:[#allocation156_spill] sm:$0xff] %v9018_v28  ;;  %v2856_v28 = vld [vmem:[%s9870_s2 + $0x268] sm:$0xff] }
 0x372   :  { %3163 = vperm.xlu0 %4447, %v2837_v54   ;;  %3098 = vperm.xlu2 %4446, %v2824_v39  }
 0x373   :  { %3173 = vperm.xlu1 %4445, %v2839_v20  }
 0x374   :  { %v9029_v17 = vpop.permute.xlu0 %2893  ;;  %v9031_v13 = vpop.permute.xlu2 %2913 }
 0x375   :  { %v2874_v9 = vpop.permute.xlu1 %2873 }
 0x376   :  { %v3331_v0 = vadd.f32 %v2874_v9, %v2687_v55 }
 0x378   :  { %v3423_v55 = vmax.f32 %v3331_v0, 0.0 }
 0x37a   :  { %3268 = vperm.xlu0 %4447, %v2858_v12   ;;  %3083 = vperm.xlu2 %4446, %v2821_v22  }
 0x37b   :  { %3088 = vperm.xlu1 %4445, %v2822_v30  }
 0x37c   :  { %v9042_v20 = vpop.permute.xlu0 %2908  ;;  %v2929_v54 = vpop.permute.xlu2 %2928 }
 0x37d   :  { %v9044_v39 = vpop.permute.xlu1 %2888 }
 0x382   :  { %3153 = vperm.xlu0 %4447, %v2835_v56   ;;  %3168 = vperm.xlu2 %4446, %v2838_v10  }
 0x383   :  { %3263 = vperm.xlu1 %4445, %v2857_v26  }
 0x384   :  { %v2924_v22 = vpop.permute.xlu0 %2923  ;;  %v2944_v30 = vpop.permute.xlu2 %2943 }
 0x385   :  { %v9055_v12 = vpop.permute.xlu1 %2903  ;;  %v3345_v41 = vadd.f32 %v2944_v30, %v2701_v27 }
 0x387   :  { %v3437_v5 = vmax.f32 %v3345_v41, 0.0 }
 0x38a   :  { %3258 = vperm.xlu0 %4447, %v2856_v28   ;;  %3073 = vperm.xlu2 %4446, %v2819_v51  }
 0x38b   :  { %3078 = vperm.xlu1 %4445, %v2820_v29  }
 0x38c   :  { %v2939_v56 = vpop.permute.xlu0 %2938  ;;  %v9066_v26 = vpop.permute.xlu2 %2958 }
 0x38d   :  { %v2919_v10 = vpop.permute.xlu1 %2918 }
 0x392   :  { %3143 = vperm.xlu0 %4447, %v2833_v34   ;;  %3158 = vperm.xlu2 %4446, %v2836_v61   ;;  %v2818_v34 = vld [vmem:[%s9870_s2 + $0x138] sm:$0xff]  ;;  %v10555_v61 = vld [vmem:[#allocation104_spill] sm:$0xff] }
 0x393   :  { %3253 = vperm.xlu1 %4445, %v2855_v23   ;;  %v10554_v23 = vld [vmem:[#allocation72_spill] sm:$0xff] }
 0x394   :  { %v9077_v51 = vpop.permute.xlu0 %2953  ;;  %v9079_v29 = vpop.permute.xlu2 %2973  ;;  %v2688_v43 = vmul.f32 %v10555_v61, %v10554_v23  ;;  %v10559_v61 = vld [vmem:[#allocation84_spill] sm:$0xff] }
 0x395   :  { %v2934_v28 = vpop.permute.xlu1 %2933  ;;  %v2700_v48 = vmul.f32 %v7804_v62, %v10559_v61  ;;  %v2853_v62 = vld [vmem:[%s9870_s2 + $0x250] sm:$0xff] }
 0x396   :  { %v3332_v59 = vadd.f32 %v2879_v58, %v2688_v43  ;;  %v3343_v3 = vadd.f32 %v2934_v28, %v2699_v47  ;;  %v10561_v47 = vld [vmem:[#allocation81_spill] sm:$0xff] }
 0x397   :  { %v3344_v43 = vadd.f32 %v2939_v56, %v2700_v48  ;;  %v2697_v0 = vmul.f32 %v7714_v38, %v10561_v47  ;;  %v10568_v47 = vld [vmem:[#allocation73_spill] sm:$0xff] }
 0x398   :  { %v3424_v60 = vmax.f32 %v3332_v59, 0.0  ;;  %v3435_v58 = vmax.f32 %v3343_v3, 0.0 }
 0x399   :  { %v3341_v41 = vadd.f32 %v2924_v22, %v2697_v0  ;;  %v2815_v22 = vld [vmem:[%s9870_s2 + $0x120] sm:$0xff]  ;;  %v10569_v0 = vld [vmem:[#allocation107_spill] sm:$0xff] }
 0x39a   :  { %3248 = vperm.xlu0 %4447, %v2854_v52   ;;  %3063 = vperm.xlu2 %4446, %v2817_v36   ;;  %v10560_v52 = vld [vmem:[#allocation79_spill] sm:$0xff]  ;;  %v9119_v28 = vpack.c.bf16 %v3424_v60, %v3423_v55  ;;  %v10567_v60 = vld [vmem:[#allocation110_spill] sm:$0xff] }
 0x39b   :  { %3068 = vperm.xlu1 %4445, %v2818_v34   ;;  %v2698_v9 = vmul.f32 %v7890_v44, %v10560_v52  ;;  %v10562_v34 = vld [vmem:[#allocation77_spill] sm:$0xff]  ;;  %v10565_v52 = vld [vmem:[#allocation111_spill] sm:$0xff] }
 0x39c   :  { %v9100_v2 = vpop.permute.xlu0 %2968  ;;  %v9102_v35 = vpop.permute.xlu2 %2988  ;;  %v2696_v56 = vmul.f32 %v7666_v15, %v10562_v34  ;;  %v2832_v15 = vld [vmem:[%s9870_s2 + $0x1a8] sm:$0xff] }
 0x39d   :  { %v2949_v23 = vpop.permute.xlu1 %2948  ;;  %v3342_v44 = vadd.f32 %v2929_v54, %v2698_v9  ;;  %v10563_v54 = vld [vmem:[#allocation76_spill] sm:$0xff] }
 0x39e   :  { %v3346_v36 = vadd.f32 %v2949_v23, %v2702_v25  ;;  %v3436_v25 = vmax.f32 %v3344_v43, 0.0  ;;  %v2695_v61 = vmul.f32 %v7802_v18, %v10563_v54  ;;  %v3340_v55 = vadd.f32 %v2919_v10, %v2696_v56  ;;  %v2816_v18 = vld [vmem:[%s9870_s2 + $0x128] sm:$0xff]  ;;  %v10566_v10 = vld [vmem:[#allocation78_spill] sm:$0xff] }
 0x39f   :  { %v3434_v48 = vmax.f32 %v3342_v44, 0.0  ;;  %v2694_v43 = vmul.f32 %v10567_v60, %v10566_v10 }
 0x3a0   :  { %v3438_v27 = vmax.f32 %v3346_v36, 0.0  ;;  %v3569_v3 = vpack.c.bf16 %v3436_v25, %v3435_v58  ;;  %v10564_v36 = vld [vmem:[#allocation74_spill] sm:$0xff] }
 0x3a1   :  { %v2693_v9 = vmul.f32 %v10565_v52, %v10564_v36  ;;  %v3338_v44 = vadd.f32 %v9042_v20, %v2694_v43  ;;  %v2870_v20 = vld [vmem:[%s9870_s2 + $0x2d8] sm:$0xff] }
 0x3a2   :  { %3323 = vperm.xlu0 %4447, %v2869_v33   ;;  %3148 = vperm.xlu2 %4446, %v2834_v21   ;;  %v3570_v30 = vpack.c.bf16 %v3438_v27, %v3437_v5  ;;  %v3339_v33 = vadd.f32 %v9031_v13, %v2695_v61  ;;  %v3433_v21 = vmax.f32 %v3341_v41, 0.0  ;;  %v3432_v27 = vmax.f32 %v3340_v55, 0.0  ;;  %v10570_v41 = vld [vmem:[#allocation75_spill] sm:$0xff]  ;;  %v2867_v55 = vld [vmem:[%s9870_s2 + $0x2c0] sm:$0xff] }
 0x3a3   :  { %3243 = vperm.xlu1 %4445, %v2853_v62   ;;  %v3337_v5 = vadd.f32 %v9055_v12, %v2693_v9  ;;  %v2692_v13 = vmul.f32 %v10569_v0, %v10568_v47  ;;  %v10571_v12 = vld [vmem:[#allocation108_spill] sm:$0xff]  ;;  %v3430_v52 = vmax.f32 %v3338_v44, 0.0  ;;  %v10574_v9 = vld [vmem:[#allocation70_spill] sm:$0xff]  ;;  %v10576_v44 = vld [vmem:[#allocation85_spill] sm:$0xff] }
 0x3a4   :  { %v9123_v59 = vpop.permute.xlu0 %2983  ;;  %3866 = vmatpush.bf16.msra.mxu0 %v3570_v30  ;;  %4428 = vmatpush.bf16.msra.mxu2 %v3570_v30  ;;  %v9125_v23 = vpop.permute.xlu2 %3023  ;;  %v3568_v62 = vpack.c.bf16 %v3434_v48, %v3433_v21  ;;  %v3431_v58 = vmax.f32 %v3339_v33, 0.0  ;;  %v2691_v25 = vmul.f32 %v10571_v12, %v10570_v41  ;;  %v10575_v33 = vld [vmem:[#allocation109_spill] sm:$0xff]  ;;  %v2852_v41 = vld [vmem:[%s9870_s2 + $0x248] sm:$0xff] }
 0x3a5   :  { %v9127_v38 = vpop.permute.xlu1 %2963  ;;  %v3336_v54 = vadd.f32 %v9016_v57, %v2692_v13  ;;  %v3429_v61 = vmax.f32 %v3337_v5, 0.0  ;;  %v2831_v57 = vld [vmem:[%s9870_s2 + $0x1a0] sm:$0xff]  ;;  %v2689_v21 = vmul.f32 %v10575_v33, %v10574_v9  ;;  %v2830_v13 = vld [vmem:[%s9870_s2 + $0x198] sm:$0xff]  ;;  %v10577_v12 = vld [vmem:[#allocation87_spill] sm:$0xff] }
 0x3a6   :  { %v3567_v48 = vpack.c.bf16 %v3432_v27, %v3431_v58  ;;  %v3335_v36 = vadd.f32 %v9029_v17, %v2691_v25  ;;  %v10578_v25 = vld [vmem:[#allocation112_spill] sm:$0xff]  ;;  %v10582_v9 = vld [vmem:[#allocation49_spill] sm:$0xff] }
 0x3a7   :  { %v3566_v60 = vpack.c.bf16 %v3430_v52, %v3429_v61  ;;  %v3333_v43 = vadd.f32 %v9003_v42, %v2689_v21  ;;  %v2704_v42 = vmul.f32 %v8105_v32, %v10576_v44  ;;  %v10579_v61 = vld [vmem:[#allocation54_spill] sm:$0xff]  ;;  %v10583_v33 = vld [vmem:[#allocation120_spill] sm:$0xff] }
 0x3a8   :  { %3867 = vmatpush.bf16.msra.mxu0 %v3569_v3  ;;  %4429 = vmatpush.bf16.msra.mxu2 %v3569_v3  ;;  %v10572_v3 = vld [vmem:[#allocation71_spill] sm:$0xff]  ;;  %v3427_v17 = vmax.f32 %v3335_v36, 0.0  ;;  %v2715_v21 = vmul.f32 %v10583_v33, %v10582_v9 }
 0x3a9   :  { %v3425_v58 = vmax.f32 %v3333_v43, 0.0 }
 0x3aa   :  { %3138 = vperm.xlu0 %4447, %v2832_v15   ;;  %3053 = vperm.xlu2 %4446, %v2815_v22   ;;  %v10573_v15 = vld [vmem:[#allocation106_spill] sm:$0xff] }
 0x3ab   :  { %3058 = vperm.xlu1 %4445, %v2816_v18   ;;  %v2690_v22 = vmul.f32 %v10573_v15, %v10572_v3  ;;  %v3428_v18 = vmax.f32 %v3336_v54, 0.0  ;;  %v2703_v54 = vmul.f32 %v10578_v25, %v10577_v12  ;;  %v10580_v3 = vld [vmem:[#allocation5_spill] sm:$0xff]  ;;  %v10581_v15 = vld [vmem:[#allocation48_spill] sm:$0xff]  ;;  %v10588_v12 = vld [vmem:[#allocation2_spill] sm:$0xff] }
 0x3ac   :  { %v9149_v30 = vpop.permute.xlu0 %2998  ;;  %3868 = vmatpush.bf16.msra.mxu0 %v3568_v62  ;;  %4430 = vmatpush.bf16.msra.mxu2 %v3568_v62  ;;  %v3019_v34 = vpop.permute.xlu2 %3018  ;;  %v2718_v32 = vmul.f32 %v8328_v11, %v10580_v3  ;;  %v10590_v3 = vld [vmem:[#allocation117_spill] sm:$0xff] }
 0x3ad   :  { %v9151_v56 = vpop.permute.xlu1 %2978  ;;  %v3334_v10 = vadd.f32 %v9044_v39, %v2690_v22  ;;  %v3565_v0 = vpack.c.bf16 %v3428_v18, %v3427_v17  ;;  %v2851_v39 = vld [vmem:[%s9870_s2 + $0x240] sm:$0xff]  ;;  %v2716_v22 = vmul.f32 %v8502_v6, %v10581_v15  ;;  %v3347_v36 = vadd.f32 %v9077_v51, %v2703_v54  ;;  %v2865_v6 = vld [vmem:[%s9870_s2 + $0x2b0] sm:$0xff]  ;;  %v2868_v51 = vld [vmem:[%s9870_s2 + $0x2c8] sm:$0xff] }
 0x3af   :  { %v3426_v47 = vmax.f32 %v3334_v10, 0.0  ;;  %v3360_v10 = vadd.f32 %v3019_v34, %v2716_v22  ;;  %v2829_v34 = vld [vmem:[%s9870_s2 + $0x190] sm:$0xff] }
 0x3b0   :  { %3869 = vmatpush.bf16.msra.mxu0 %v3567_v48  ;;  %4431 = vmatpush.bf16.msra.mxu2 %v3567_v48  ;;  %v2717_v48 = vmul.f32 %v8370_v24, %v10579_v61 }
 0x3b2   :  { %3313 = vperm.xlu0 %4447, %v2867_v55   ;;  %3328 = vperm.xlu2 %4446, %v2870_v20   ;;  %v3348_v55 = vadd.f32 %v9066_v26, %v2704_v42  ;;  %v3564_v20 = vpack.c.bf16 %v3426_v47, %v3425_v58  ;;  %v3361_v52 = vadd.f32 %v9125_v23, %v2717_v48  ;;  %v3439_v23 = vmax.f32 %v3347_v36, 0.0  ;;  %v10584_v47 = vld [vmem:[#allocation6_spill] sm:$0xff] }
 0x3b3   :  { %3133 = vperm.xlu1 %4445, %v2831_v57   ;;  %v10587_v58 = vld [vmem:[#allocation118_spill] sm:$0xff] }
 0x3b4   :  { %v3014_v5 = vpop.permute.xlu0 %3013  ;;  %3870 = vmatpush.bf16.msra.mxu0 %v3566_v60  ;;  %4432 = vmatpush.bf16.msra.mxu2 %v3566_v60  ;;  %v9172_v27 = vpop.permute.xlu2 %3033  ;;  %v3440_v18 = vmax.f32 %v3348_v55, 0.0  ;;  %v3453_v60 = vmax.f32 %v3361_v52, 0.0  ;;  %v2828_v52 = vld [vmem:[%s9870_s2 + $0x188] sm:$0xff] }
 0x3b5   :  { %v2994_v62 = vpop.permute.xlu1 %2993  ;;  %v3359_v43 = vadd.f32 %v3014_v5, %v2715_v21  ;;  %v10586_v5 = vld [vmem:[#allocation92_spill] sm:$0xff] }
 0x3b6   :  { %v9213_v42 = vpack.c.bf16 %v3440_v18, %v3439_v23 }
 0x3b7   :  { %v3451_v25 = vmax.f32 %v3359_v43, 0.0  ;;  %v10595_v43 = vld [vmem:[#allocation89_spill] sm:$0xff] }
 0x3b8   :  { %3871 = vmatpush.bf16.msra.mxu0 %v3565_v0  ;;  %4433 = vmatpush.bf16.msra.mxu2 %v3565_v0  ;;  %v10585_v0 = vld [vmem:[#allocation121_spill] sm:$0xff] }
 0x3ba   :  { %3128 = vperm.xlu0 %4447, %v2830_v13   ;;  %3233 = vperm.xlu2 %4446, %v2851_v39   ;;  %v2714_v13 = vmul.f32 %v10585_v0, %v10584_v47  ;;  %v3452_v39 = vmax.f32 %v3360_v10, 0.0  ;;  %v10593_v10 = vld [vmem:[#allocation93_spill] sm:$0xff] }
 0x3bb   :  { %3238 = vperm.xlu1 %4445, %v2852_v41   ;;  %v2711_v41 = vmul.f32 %v10587_v58, %v10586_v5  ;;  %v10598_v5 = vld [vmem:[#allocation119_spill] sm:$0xff] }
 0x3bc   :  { %v3009_v57 = vpop.permute.xlu0 %3008  ;;  %3872 = vmatpush.bf16.msra.mxu0 %v3564_v20  ;;  %4434 = vmatpush.bf16.msra.mxu2 %v3564_v20  ;;  %v9196_v24 = vpop.permute.xlu2 %3048  ;;  %v10589_v20 = vld [vmem:[#allocation3_spill] sm:$0xff]  ;;  %v3577_v36 = vpack.c.bf16 %v3452_v39, %v3451_v25 }
 0x3bd   :  { %v3029_v26 = vpop.permute.xlu1 %3028  ;;  %v3358_v54 = vadd.f32 %v3009_v57, %v2714_v13  ;;  %v3355_v15 = vadd.f32 %v2994_v62, %v2711_v41  ;;  %v10591_v57 = vld [vmem:[#allocation91_spill] sm:$0xff]  ;;  %v2850_v62 = vld [vmem:[%s9870_s2 + $0x238] sm:$0xff] }
 0x3be   :  { %v3362_v11 = vadd.f32 %v3029_v26, %v2718_v32  ;;  %v2712_v32 = vmul.f32 %v10590_v3, %v10589_v20  ;;  %v10592_v26 = vld [vmem:[#allocation122_spill] sm:$0xff]  ;;  %v10601_v20 = vld [vmem:[#allocation113_spill] sm:$0xff] }
 0x3bf   :  { %v2710_v9 = vmul.f32 %v10592_v26, %v10591_v57  ;;  %v3450_v21 = vmax.f32 %v3358_v54, 0.0  ;;  %v3447_v23 = vmax.f32 %v3355_v15, 0.0  ;;  %v2866_v54 = vld [vmem:[%s9870_s2 + $0x2b8] sm:$0xff]  ;;  %v10604_v26 = vld [vmem:[#allocation59_spill] sm:$0xff] }
 0x3c0   :  { %v3454_v17 = vmax.f32 %v3362_v11, 0.0  ;;  %3873 = vmatpush.bf16.msra.mxu0 %v9119_v28  ;;  %4435 = vmatpush.bf16.msra.mxu2 %v9119_v28  ;;  %v2713_v28 = vmul.f32 %v8419_v8, %v10588_v12  ;;  %v2849_v8 = vld [vmem:[%s9870_s2 + $0x230] sm:$0xff]  ;;  %v3356_v33 = vadd.f32 %v9149_v30, %v2712_v32  ;;  %v10594_v11 = vld [vmem:[#allocation115_spill] sm:$0xff] }
 0x3c1   :  { %v10596_v30 = vld [vmem:[#allocation116_spill] sm:$0xff] }
 0x3c2   :  { %3303 = vperm.xlu0 %4447, %v2865_v6   ;;  %3318 = vperm.xlu2 %4446, %v2868_v51   ;;  %v3578_v44 = vpack.c.bf16 %v3454_v17, %v3453_v60  ;;  %v2709_v6 = vmul.f32 %v10594_v11, %v10593_v10  ;;  %v3354_v51 = vadd.f32 %v9102_v35, %v2710_v9  ;;  %v3448_v47 = vmax.f32 %v3356_v33, 0.0  ;;  %v10606_v11 = vld [vmem:[#allocation60_spill] sm:$0xff] }
 0x3c3   :  { %3123 = vperm.xlu1 %4445, %v2829_v34   ;;  %v2708_v17 = vmul.f32 %v10596_v30, %v10595_v43  ;;  %v2734_v9 = vmul.f32 %v8809_v14, %v10604_v26 }
 0x3c4   :  { %v9219_v61 = vpop.permute.xlu0 %3043  ;;  %3915 = vmatpush.bf16.msra.mxu1 %v3578_v44  ;;  %4436 = vmatpush.bf16.msra.mxu3 %v3578_v44  ;;  %v9221_v48 = vpop.permute.xlu2 %3183  ;;  %v3353_v34 = vadd.f32 %v9123_v59, %v2709_v6  ;;  %v10597_v44 = vld [vmem:[#allocation88_spill] sm:$0xff]  ;;  %v3446_v58 = vmax.f32 %v3354_v51, 0.0  ;;  %v3575_v12 = vpack.c.bf16 %v3448_v47, %v3447_v23  ;;  %v2863_v59 = vld [vmem:[%s9870_s2 + $0x2a0] sm:$0xff]  ;;  %v2733_v6 = vmul.f32 %v8703_v16, %v10606_v11  ;;  %v2846_v16 = vld [vmem:[%s9870_s2 + $0x218] sm:$0xff] }
 0x3c5   :  { %v3004_v55 = vpop.permute.xlu1 %3003  ;;  %v2707_v35 = vmul.f32 %v10598_v5, %v10597_v44  ;;  %v3352_v41 = vadd.f32 %v9151_v56, %v2708_v17  ;;  %v4278_v56 = vld [vmem:[%s9871_s3 + $0xc0] sm:$0xf] }
 0x3c6   :  { %v3357_v22 = vadd.f32 %v3004_v55, %v2713_v28  ;;  %v10599_v28 = vld [vmem:[#allocation15_spill] sm:$0xff]  ;;  %v10600_v55 = vld [vmem:[#allocation86_spill] sm:$0xff]  ;;  %v3445_v15 = vmax.f32 %v3353_v34, 0.0 }
 0x3c7   :  { %v2732_v25 = vmul.f32 %v8752_v7, %v10599_v28  ;;  %v2705_v3 = vmul.f32 %v10601_v20, %v10600_v55  ;;  %v3351_v32 = vadd.f32 %v9079_v29, %v2707_v35  ;;  %v2827_v7 = vld [vmem:[%s9870_s2 + $0x180] sm:$0xff]  ;;  %v2848_v35 = vld [vmem:[%s9870_s2 + $0x228] sm:$0xff] }
 0x3c8   :  { %v3449_v18 = vmax.f32 %v3357_v22, 0.0  ;;  %3916 = vmatpush.bf16.msra.mxu1 %v3577_v36  ;;  %4437 = vmatpush.bf16.msra.mxu3 %v3577_v36  ;;  %v4407_v22 = vld [vmem:[%s9871_s3 + $0xd4] sm:$0xf0]  ;;  %v10602_v36 = vld [vmem:[#allocation90_spill] sm:$0xff] }
 0x3c9   :  { %v4279_v29 = vor.u32 %v4407_v22, %v4278_v56  ;;  %v3349_v33 = vadd.f32 %v9127_v38, %v2705_v3  ;;  %v3443_v23 = vmax.f32 %v3351_v32, 0.0  ;;  %v2843_v22 = vld [vmem:[%s9870_s2 + $0x200] sm:$0xff] }
 0x3ca   :  { %3118 = vperm.xlu0 %4447, %v2828_v52   ;;  %3223 = vperm.xlu2 %4446, %v2849_v8   ;;  %v3576_v60 = vpack.c.bf16 %v3450_v21, %v3449_v18  ;;  %v10603_v52 = vld [vmem:[#allocation114_spill] sm:$0xff]  ;;  %v3444_v21 = vmax.f32 %v3352_v41, 0.0  ;;  %v3574_v18 = vpack.c.bf16 %v3446_v58, %v3445_v15  ;;  %v10607_v58 = vld [vmem:[#allocation24_spill] sm:$0xff] }
 0x3cb   :  { %3228 = vperm.xlu1 %4445, %v2850_v62   ;;  %v2706_v8 = vmul.f32 %v10603_v52, %v10602_v36  ;;  %v10605_v62 = vld [vmem:[#allocation10_spill] sm:$0xff]  ;;  %3894 = vmatmul.bf16.vlgmr.msra.gmra.mxu2 %v4279_v29  ;;  %v3441_v34 = vmax.f32 %v3349_v33, 0.0  ;;  %v2749_v41 = vmul.f32 %v8885_v45, %v10607_v58  ;;  %v2845_v36 = vld [vmem:[%s9870_s2 + $0x210] sm:$0xff]  ;;  %v4413_v52 = vld [vmem:[%s9871_s3 + $0x104] sm:$0xf0] }
 0x3cc   :  { %v3109_v0 = vpop.permute.xlu0 %3108  ;;  %3917 = vmatpush.bf16.msra.mxu1 %v3576_v60  ;;  %4438 = vmatpush.bf16.msra.mxu3 %v3576_v60  ;;  %v3099_v13 = vpop.permute.xlu2 %3098  ;;  %v2731_v10 = vmul.f32 %v8789_v49, %v10605_v62  ;;  %v3573_v49 = vpack.c.bf16 %v3444_v21, %v3443_v23  ;;  %v10610_v29 = vld [vmem:[#allocation69_spill] sm:$0xff]  ;;  %v10612_v21 = vld [vmem:[#allocation66_spill] sm:$0xff] }
 0x3cd   :  { %v9243_v39 = vpop.permute.xlu1 %3038  ;;  %v3376_v57 = vadd.f32 %v3099_v13, %v2732_v25  ;;  %v3350_v51 = vadd.f32 %v9100_v2, %v2706_v8  ;;  %v3378_v60 = vadd.f32 %v3109_v0, %v2734_v9  ;;  %v2847_v2 = vld [vmem:[%s9870_s2 + $0x220] sm:$0xff]  ;;  %v2748_v26 = vmul.f32 %v8838_v50, %v10610_v29  ;;  %v10611_v9 = vld [vmem:[#allocation19_spill] sm:$0xff]  ;;  %v10615_v58 = vld [vmem:[#allocation21_spill] sm:$0xff] }
 0x3ce   :  { %v2745_v33 = vmul.f32 %v8823_v19, %v10611_v9  ;;  %v2861_v19 = vld [vmem:[%s9870_s2 + $0x290] sm:$0xff] }
 0x3cf   :  { %v3468_v17 = vmax.f32 %v3376_v57, 0.0  ;;  %v3442_v0 = vmax.f32 %v3350_v51, 0.0  ;;  %v3470_v44 = vmax.f32 %v3378_v60, 0.0 }
 0x3d0   :  { %3918 = vmatpush.bf16.msra.mxu1 %v3575_v12  ;;  %4439 = vmatpush.bf16.msra.mxu3 %v3575_v12 }
 0x3d1   :  { %v3572_v28 = vpack.c.bf16 %v3442_v0, %v3441_v34 }
 0x3d2   :  { %3293 = vperm.xlu0 %4447, %v2863_v59   ;;  %3308 = vperm.xlu2 %4446, %v2866_v54   ;;  %v3393_v59 = vadd.f32 %v9221_v48, %v2749_v41  ;;  %v10608_v54 = vld [vmem:[#allocation20_spill] sm:$0xff]  ;;  %v2864_v48 = vld [vmem:[%s9870_s2 + $0x2a8] sm:$0xff]  ;;  %v2744_v41 = vmul.f32 %v8836_v53, %v10615_v58 }
 0x3d3   :  { %3113 = vperm.xlu1 %4445, %v2827_v7   ;;  %v2750_v55 = vmul.f32 %v8866_v63, %v10608_v54  ;;  %v10609_v7 = vld [vmem:[#allocation65_spill] sm:$0xff]  ;;  %v4404_v54 = vld [vmem:[%s9871_s3 + $0xc4] sm:$0xf]  ;;  %v4410_v58 = vld [vmem:[%s9871_s3 + $0xf4] sm:$0xf] }
 0x3d4   :  { %v3094_v43 = vpop.permute.xlu0 %3093  ;;  %3919 = vmatpush.bf16.msra.mxu1 %v3574_v18  ;;  %4440 = vmatpush.bf16.msra.mxu3 %v3574_v18  ;;  %v9278_v14 = vpop.permute.xlu2 %3083  ;;  %v2746_v45 = vmul.f32 %v8870_v1, %v10609_v7  ;;  %v3485_v56 = vmax.f32 %v3393_v59, 0.0  ;;  %v4302_v1 = vld [vmem:[%s9871_s3 + $0xf0] sm:$0xf]  ;;  %v2747_v18 = vmul.f32 %v8851_v4, %v10612_v21  ;;  %v2862_v4 = vld [vmem:[%s9870_s2 + $0x298] sm:$0xff] }
 0x3d5   :  { %v3375_v38 = vadd.f32 %v3094_v43, %v2731_v10  ;;  %v3104_v30 = vpop.permute.xlu1 %3103  ;;  %v4303_v57 = vor.u32 %v4413_v52, %v4302_v1  ;;  %v2860_v43 = vld [vmem:[%s9870_s2 + $0x288] sm:$0xff]  ;;  %v10617_v7 = vld [vmem:[#allocation16_spill] sm:$0xff] }
 0x3d6   :  { %v3377_v47 = vadd.f32 %v3104_v30, %v2733_v6 }
 0x3d7   :  { %v3467_v13 = vmax.f32 %v3375_v38, 0.0 }
 0x3d8   :  { %v3469_v5 = vmax.f32 %v3377_v47, 0.0  ;;  %3920 = vmatpush.bf16.msra.mxu1 %v3573_v49  ;;  %4441 = vmatpush.bf16.msra.mxu3 %v3573_v49 }
 0x3d9   :  { %v3585_v12 = vpack.c.bf16 %v3468_v17, %v3467_v13  ;;  %v10613_v17 = vld [vmem:[#allocation61_spill] sm:$0xff] }
 0x3da   :  { %3208 = vperm.xlu0 %4447, %v2846_v16   ;;  %3213 = vperm.xlu2 %4446, %v2847_v2   ;;  %v3586_v25 = vpack.c.bf16 %v3470_v44, %v3469_v5  ;;  %v2729_v34 = vmul.f32 %v8701_v31, %v10613_v17  ;;  %v10614_v16 = vld [vmem:[#allocation11_spill] sm:$0xff]  ;;  %v10627_v17 = vld [vmem:[#allocation126_spill] sm:$0xff] }
 0x3db   :  { %3218 = vperm.xlu1 %4445, %v2848_v35   ;;  %3899 = vmatmul.bf16.gmra.mxu2 %v4303_v57  ;;  %v2730_v2 = vmul.f32 %v8639_v37, %v10614_v16  ;;  %v2844_v31 = vld [vmem:[%s9870_s2 + $0x208] sm:$0xff]  ;;  %v4326_v37 = vld [vmem:[%s9871_s3 + $0x120] sm:$0xf] }
 0x3dc   :  { %v3179_v20 = vpop.permute.xlu0 %3178  ;;  %3921 = vmatpush.bf16.msra.mxu1 %v3572_v28  ;;  %4442 = vmatpush.bf16.msra.mxu3 %v3572_v28  ;;  %v3169_v3 = vpop.permute.xlu2 %3168  ;;  %v3373_v13 = vadd.f32 %v9278_v14, %v2729_v34  ;;  %v2859_v14 = vld [vmem:[%s9870_s2 + $0x280] sm:$0xff] }
 0x3dd   :  { %3964 = vmatpush.bf16.msrb.mxu2 %v3586_v25  ;;  %v3189_v32 = vpop.permute.xlu1 %3188  ;;  %v3390_v8 = vadd.f32 %v3169_v3, %v2746_v45  ;;  %v3392_v62 = vadd.f32 %v3179_v20, %v2748_v26  ;;  %v4419_v25 = vld [vmem:[%s9871_s3 + $0x134] sm:$0xf0]  ;;  %v10616_v20 = vld [vmem:[#allocation38_spill] sm:$0xff]  ;;  %v2743_v45 = vmul.f32 %v8855_v46, %v10617_v7  ;;  %v10620_v46 = vld [vmem:[#allocation56_spill] sm:$0xff] }
 0x3de   :  { %v3394_v15 = vadd.f32 %v3189_v32, %v2750_v55  ;;  %v4327_v59 = vor.u32 %v4419_v25, %v4326_v37  ;;  %v4280_v55 = vld [vmem:[%s9871_s3 + $0xd8] sm:$0xf0]  ;;  %v2766_v3 = vmul.f32 %v8928_v40, %v10616_v20  ;;  %v10632_v25 = vld [vmem:[#allocation67_spill] sm:$0xff] }
 0x3df   :  { %v3482_v23 = vmax.f32 %v3390_v8, 0.0  ;;  %v3484_v38 = vmax.f32 %v3392_v62, 0.0  ;;  %v10622_v62 = vld [vmem:[#allocation55_spill] sm:$0xff] }
 0x3e0   :  { %v3486_v63 = vmax.f32 %v3394_v15, 0.0  ;;  %3922 = vmatpush.bf16.msra.mxu1 %v9213_v42  ;;  %4443 = vmatpush.bf16.msra.mxu3 %v9213_v42  ;;  %v4283_v15 = vor.u32 %v4404_v54, %v4280_v55  ;;  %v10634_v54 = vld [vmem:[#allocation35_spill] sm:$0xff]  ;;  %v10635_v55 = vld [vmem:[#allocation138_spill] sm:$0xff] }
 0x3e1   :  { %3965 = vmatpush.bf16.msrb.mxu2 %v3585_v12  ;;  %v3465_v12 = vmax.f32 %v3373_v13, 0.0  ;;  %v2763_v20 = vmul.f32 %v10635_v55, %v10634_v54 }
 0x3e2   :  { %3193 = vperm.xlu0 %4447, %v2843_v22   ;;  %3298 = vperm.xlu2 %4446, %v2864_v48   ;;  %v3594_v42 = vpack.c.bf16 %v3486_v63, %v3485_v56  ;;  %v10618_v56 = vld [vmem:[#allocation39_spill] sm:$0xff]  ;;  %v10619_v22 = vld [vmem:[#allocation142_spill] sm:$0xff] }
 0x3e3   :  { %3203 = vperm.xlu1 %4445, %v2845_v36   ;;  %v2765_v48 = vmul.f32 %v10619_v22, %v10618_v56  ;;  %3943 = vmatmul.bf16.vlgmr.msra.gmra.mxu3 %v4283_v15  ;;  %v10637_v56 = vld [vmem:[#allocation124_spill] sm:$0xff] }
 0x3e4   :  { %v3164_v10 = vpop.permute.xlu0 %3163  ;;  %4013 = vmatpush.bf16.msrb.mxu3 %v3594_v42  ;;  %v3074_v11 = vpop.permute.xlu2 %3073 }
 0x3e5   :  { %v3389_v6 = vadd.f32 %v3164_v10, %v2745_v33  ;;  %v3174_v51 = vpop.permute.xlu1 %3173  ;;  %v10621_v33 = vld [vmem:[#allocation53_spill] sm:$0xff]  ;;  %v10623_v10 = vld [vmem:[#allocation103_spill] sm:$0xff] }
 0x3e6   :  { %v3391_v60 = vadd.f32 %v3174_v51, %v2747_v18  ;;  %v2727_v21 = vmul.f32 %v10621_v33, %v10620_v46 }
 0x3e7   :  { %v3481_v50 = vmax.f32 %v3389_v6, 0.0  ;;  %v2728_v6 = vmul.f32 %v10623_v10, %v10622_v62 }
 0x3e8   :  { %v3483_v30 = vmax.f32 %v3391_v60, 0.0  ;;  %v3371_v51 = vadd.f32 %v3074_v11, %v2727_v21  ;;  %v4350_v11 = vld [vmem:[%s9871_s3 + $0x150] sm:$0xf] }
 0x3e9   :  { %v3592_v47 = vpack.c.bf16 %v3482_v23, %v3481_v50 }
 0x3ea   :  { %3278 = vperm.xlu0 %4447, %v2860_v43   ;;  %3283 = vperm.xlu2 %4446, %v2861_v19   ;;  %v3593_v49 = vpack.c.bf16 %v3484_v38, %v3483_v30  ;;  %v10624_v43 = vld [vmem:[#allocation51_spill] sm:$0xff]  ;;  %v10625_v19 = vld [vmem:[#allocation98_spill] sm:$0xff] }
 0x3eb   :  { %3288 = vperm.xlu1 %4445, %v2862_v4   ;;  %3904 = vmatmul.bf16.gmra.mxu2 %v4327_v59  ;;  %v2722_v38 = vmul.f32 %v10625_v19, %v10624_v43  ;;  %v10626_v4 = vld [vmem:[#allocation17_spill] sm:$0xff]  ;;  %v10643_v43 = vld [vmem:[#allocation94_spill] sm:$0xff] }
 0x3ec   :  { %v3269_v0 = vpop.permute.xlu0 %3268  ;;  %4014 = vmatpush.bf16.msrb.mxu3 %v3593_v49  ;;  %v3159_v44 = vpop.permute.xlu2 %3158  ;;  %v2742_v34 = vmul.f32 %v10627_v17, %v10626_v4  ;;  %v10629_v49 = vld [vmem:[#allocation123_spill] sm:$0xff] }
 0x3ed   :  { %v3089_v5 = vpop.permute.xlu1 %3088  ;;  %v3388_v53 = vadd.f32 %v3159_v44, %v2744_v41  ;;  %v3410_v63 = vadd.f32 %v3269_v0, %v2766_v3  ;;  %v3366_v16 = vadd.f32 %v9196_v24, %v2722_v38  ;;  %v4425_v44 = vld [vmem:[%s9871_s3 + $0x164] sm:$0xf0]  ;;  %v4304_v24 = vld [vmem:[%s9871_s3 + $0x108] sm:$0xf0]  ;;  %v10630_v41 = vld [vmem:[#allocation34_spill] sm:$0xff] }
 0x3ee   :  { %v3374_v35 = vadd.f32 %v3089_v5, %v2730_v2  ;;  %v3463_v2 = vmax.f32 %v3371_v51, 0.0  ;;  %v4307_v37 = vor.u32 %v4410_v58, %v4304_v24  ;;  %v10641_v51 = vld [vmem:[#allocation99_spill] sm:$0xff]  ;;  %v4328_v58 = vld [vmem:[%s9871_s3 + $0x138] sm:$0xf0]  ;;  %v10646_v24 = vld [vmem:[#allocation36_spill] sm:$0xff] }
 0x3ef   :  { %v3480_v40 = vmax.f32 %v3388_v53, 0.0  ;;  %v3502_v26 = vmax.f32 %v3410_v63, 0.0  ;;  %v10633_v53 = vld [vmem:[#allocation127_spill] sm:$0xff]  ;;  %v3458_v3 = vmax.f32 %v3366_v16, 0.0 }
 0x3f0   :  { %v3466_v28 = vmax.f32 %v3374_v35, 0.0  ;;  %4015 = vmatpush.bf16.msrb.mxu3 %v3592_v47  ;;  %v10628_v47 = vld [vmem:[#allocation52_spill] sm:$0xff]  ;;  %v4351_v35 = vor.u32 %v4425_v44, %v4350_v11  ;;  %v2741_v59 = vmul.f32 %v10633_v53, %v10632_v25  ;;  %v4380_v11 = vld [vmem:[%s9871_s3 + $0x4] sm:$0xf]  ;;  %v10650_v53 = vld [vmem:[#allocation31_spill] sm:$0xff] }
 0x3f1   :  { %v2721_v13 = vmul.f32 %v10629_v49, %v10628_v47  ;;  %v10645_v49 = vld [vmem:[#allocation152_spill] sm:$0xff] }
 0x3f2   :  { %3198 = vperm.xlu2 %4446, %v2844_v31   ;;  %v3584_v32 = vpack.c.bf16 %v3466_v28, %v3465_v12  ;;  %v10631_v12 = vld [vmem:[#allocation147_spill] sm:$0xff] }
 0x3f3   :  { %3273 = vperm.xlu1 %4445, %v2859_v14   ;;  %v2764_v31 = vmul.f32 %v10631_v12, %v10630_v41  ;;  %v3365_v28 = vadd.f32 %v9219_v61, %v2721_v13  ;;  %3948 = vmatmul.bf16.gmra.mxu3 %v4307_v37  ;;  %v10647_v41 = vld [vmem:[#allocation140_spill] sm:$0xff]  ;;  %v10649_v37 = vld [vmem:[#allocation154_spill] sm:$0xff] }
 0x3f4   :  { %v3154_v36 = vpop.permute.xlu0 %3153  ;;  %3966 = vmatpush.bf16.msrb.mxu2 %v3584_v32  ;;  %v9359_v1 = vpop.permute.xlu2 %3063  ;;  %v2762_v12 = vmul.f32 %v10647_v41, %v10646_v24 }
 0x3f5   :  { %v3387_v52 = vadd.f32 %v3154_v36, %v2743_v45  ;;  %v3264_v8 = vpop.permute.xlu1 %3263  ;;  %v10636_v45 = vld [vmem:[#allocation9_spill] sm:$0xff]  ;;  %v3457_v36 = vmax.f32 %v3365_v28, 0.0 }
 0x3f6   :  { %v3409_v57 = vadd.f32 %v3264_v8, %v2765_v48  ;;  %v2720_v22 = vmul.f32 %v10637_v56, %v10636_v45  ;;  %v10638_v8 = vld [vmem:[#allocation4_spill] sm:$0xff] }
 0x3f7   :  { %v3479_v29 = vmax.f32 %v3387_v52, 0.0 }
 0x3f8   :  { %v3501_v42 = vmax.f32 %v3409_v57, 0.0 }
 0x3f9   :  { %v3591_v9 = vpack.c.bf16 %v3480_v40, %v3479_v29  ;;  %v10639_v40 = vld [vmem:[#allocation57_spill] sm:$0xff]  ;;  %v3364_v29 = vadd.f32 %v9243_v39, %v2720_v22 }
 0x3fa   :  { %v3602_v18 = vpack.c.bf16 %v3502_v26, %v3501_v42  ;;  %v2719_v57 = vmul.f32 %v10639_v40, %v10638_v8  ;;  %v4182_v42 = vld [vmem:[%s9871_s3] sm:$0xf] }
 0x3fb   :  { %4016 = vmatpush.bf16.msrb.mxu3 %v3591_v9  ;;  %3909 = vmatmul.bf16.gmra.mxu2 %v4351_v35  ;;  %v4383_v9 = vld [vmem:[%s9871_s3 + $0x14] sm:$0xf0]  ;;  %v4416_v35 = vld [vmem:[%s9871_s3 + $0x124] sm:$0xf] }
 0x3fc   :  { %v3259_v23 = vpop.permute.xlu0 %3258  ;;  %4062 = vmatpush.bf16.msrb.mxu0 %v3602_v18  ;;  %v3149_v60 = vpop.permute.xlu2 %3148  ;;  %v4183_v21 = vor.u32 %v4383_v9, %v4182_v42  ;;  %v9404_v18 = vpack.c.bf16 %v3458_v3, %v3457_v36  ;;  %v3363_v62 = vadd.f32 %v9172_v27, %v2719_v57  ;;  %v10644_v27 = vld [vmem:[#allocation101_spill] sm:$0xff]  ;;  %v4331_v28 = vor.u32 %v4416_v35, %v4328_v58  ;;  %v10652_v40 = vld [vmem:[#allocation58_spill] sm:$0xff]  ;;  %v10653_v57 = vld [vmem:[#allocation47_spill] sm:$0xff] }
 0x3fd   :  { %v3079_v50 = vpop.permute.xlu1 %3078  ;;  %v3386_v5 = vadd.f32 %v3149_v60, %v2742_v34  ;;  %v3408_v32 = vadd.f32 %v3259_v23, %v2764_v31  ;;  %v3456_v60 = vmax.f32 %v3364_v29, 0.0  ;;  %v2778_v13 = vmul.f32 %v10645_v49, %v10644_v27  ;;  %v10654_v42 = vld [vmem:[#allocation8_spill] sm:$0xff]  ;;  %v10655_v9 = vld [vmem:[#allocation43_spill] sm:$0xff] }
 0x3fe   :  { %v3372_v30 = vadd.f32 %v3079_v50, %v2728_v6  ;;  %v10640_v6 = vld [vmem:[#allocation7_spill] sm:$0xff]  ;;  %3874 = vmatmul.bf16.vlgmr.msra.gmra.mxu0 %v4183_v21  ;;  %v10642_v50 = vld [vmem:[#allocation12_spill] sm:$0xff]  ;;  %v3455_v17 = vmax.f32 %v3363_v62, 0.0  ;;  %v2723_v29 = vmul.f32 %v10653_v57, %v10652_v40  ;;  %v10668_v57 = vld [vmem:[#allocation46_spill] sm:$0xff] }
 0x3ff   :  { %v3478_v63 = vmax.f32 %v3386_v5, 0.0  ;;  %v3500_v46 = vmax.f32 %v3408_v32, 0.0  ;;  %v2725_v39 = vmul.f32 %v10641_v51, %v10640_v6  ;;  %v2726_v19 = vmul.f32 %v10643_v43, %v10642_v50  ;;  %v10656_v51 = vld [vmem:[#allocation95_spill] sm:$0xff]  ;;  %v4386_v43 = vld [vmem:[%s9871_s3 + $0x34] sm:$0xf] }
 0x400   :  { %v3464_v0 = vmax.f32 %v3372_v30, 0.0  ;;  %v9414_v16 = vpack.c.bf16 %v3456_v60, %v3455_v17  ;;  %v10658_v17 = vld [vmem:[#allocation62_spill] sm:$0xff] }
 0x401   :  { %v3369_v38 = vadd.f32 %v9359_v1, %v2725_v39  ;;  %v4184_v1 = vld [vmem:[%s9871_s3 + $0x18] sm:$0xf0]  ;;  %v10657_v39 = vld [vmem:[#allocation156_spill] sm:$0xff] }
 0x402   :  { %v3583_v14 = vpack.c.bf16 %v3464_v0, %v3463_v2  ;;  %v4187_v5 = vor.u32 %v4380_v11, %v4184_v1  ;;  %v10662_v11 = vld [vmem:[#allocation63_spill] sm:$0xff]  ;;  %v10663_v1 = vld [vmem:[#allocation105_spill] sm:$0xff] }
 0x403   :  { %v3461_v2 = vmax.f32 %v3369_v38, 0.0  ;;  %3953 = vmatmul.bf16.gmra.mxu3 %v4331_v28 }
 0x404   :  { %v3144_v15 = vpop.permute.xlu0 %3143  ;;  %3967 = vmatpush.bf16.msrb.mxu2 %v3583_v14  ;;  %v9391_v7 = vpop.permute.xlu2 %3053  ;;  %v10648_v14 = vld [vmem:[#allocation96_spill] sm:$0xff]  ;;  %3923 = vmatmul.bf16.vlgmr.msra.gmra.mxu1 %v4187_v5 }
 0x405   :  { %v3385_v61 = vadd.f32 %v3144_v15, %v2741_v59  ;;  %v3254_v48 = vpop.permute.xlu1 %3253  ;;  %v2777_v25 = vmul.f32 %v10649_v37, %v10648_v14  ;;  %v10651_v59 = vld [vmem:[#allocation144_spill] sm:$0xff]  ;;  %v4230_v14 = vld [vmem:[%s9871_s3 + $0x60] sm:$0xf]  ;;  %v4395_v37 = vld [vmem:[%s9871_s3 + $0x74] sm:$0xf0] }
 0x406   :  { %v3407_v52 = vadd.f32 %v3254_v48, %v2763_v20  ;;  %v2761_v54 = vmul.f32 %v10651_v59, %v10650_v53  ;;  %v4389_v48 = vld [vmem:[%s9871_s3 + $0x44] sm:$0xf0] }
 0x407   :  { %v3477_v26 = vmax.f32 %v3385_v61, 0.0  ;;  %v4206_v61 = vld [vmem:[%s9871_s3 + $0x30] sm:$0xf]  ;;  %v4190_v59 = vld [vmem:[%s9871_s3 + $0x8] sm:$0xf] }
 0x408   :  { %v3499_v33 = vmax.f32 %v3407_v52, 0.0  ;;  %v4207_v52 = vor.u32 %v4389_v48, %v4206_v61  ;;  %v10666_v61 = vld [vmem:[#allocation32_spill] sm:$0xff]  ;;  %v10667_v48 = vld [vmem:[#allocation135_spill] sm:$0xff] }
 0x409   :  { %v3590_v10 = vpack.c.bf16 %v3478_v63, %v3477_v26 }
 0x40a   :  { %v3601_v23 = vpack.c.bf16 %v3500_v46, %v3499_v33  ;;  %v2724_v46 = vmul.f32 %v10655_v9, %v10654_v42  ;;  %v3367_v33 = vadd.f32 %v9391_v7, %v2723_v29  ;;  %v10669_v29 = vld [vmem:[#allocation151_spill] sm:$0xff] }
 0x40b   :  { %4017 = vmatpush.bf16.msrb.mxu3 %v3590_v10 }
 0x40c   :  { %v3249_v30 = vpop.permute.xlu0 %3248  ;;  %4063 = vmatpush.bf16.msrb.mxu0 %v3601_v23  ;;  %v3329_v4 = vpop.permute.xlu2 %3328  ;;  %v2776_v23 = vmul.f32 %v10657_v39, %v10656_v51  ;;  %v3459_v60 = vmax.f32 %v3367_v33, 0.0  ;;  %v10672_v51 = vld [vmem:[#allocation44_spill] sm:$0xff]  ;;  %v10673_v39 = vld [vmem:[#allocation155_spill] sm:$0xff] }
 0x40d   :  { %v3069_v34 = vpop.permute.xlu1 %3068  ;;  %v3422_v44 = vadd.f32 %v3329_v4, %v2778_v13  ;;  %v3406_v55 = vadd.f32 %v3249_v30, %v2762_v12  ;;  %v4422_v30 = vld [vmem:[%s9871_s3 + $0x154] sm:$0xf]  ;;  %v4352_v4 = vld [vmem:[%s9871_s3 + $0x168] sm:$0xf0]  ;;  %v10660_v13 = vld [vmem:[#allocation97_spill] sm:$0xff] }
 0x40e   :  { %v3370_v47 = vadd.f32 %v3069_v34, %v2726_v19  ;;  %3879 = vmatmul.bf16.gmra.mxu0 %v4207_v52  ;;  %v4208_v19 = vld [vmem:[%s9871_s3 + $0x48] sm:$0xf0]  ;;  %v10659_v34 = vld [vmem:[#allocation129_spill] sm:$0xff]  ;;  %v4355_v49 = vor.u32 %v4422_v30, %v4352_v4 }
 0x40f   :  { %v3514_v45 = vmax.f32 %v3422_v44, 0.0  ;;  %v3498_v63 = vmax.f32 %v3406_v55, 0.0  ;;  %v4211_v7 = vor.u32 %v4386_v43, %v4208_v19  ;;  %v2739_v44 = vmul.f32 %v10663_v1, %v10662_v11  ;;  %v4390_v11 = vld [vmem:[%s9871_s3 + $0x4c] sm:$0xf0] }
 0x410   :  { %v3462_v0 = vmax.f32 %v3370_v47, 0.0  ;;  %v2740_v47 = vmul.f32 %v10659_v34, %v10658_v17  ;;  %v4231_v55 = vor.u32 %v4395_v37, %v4230_v14 }
 0x412   :  { %v3582_v31 = vpack.c.bf16 %v3462_v0, %v3461_v2  ;;  %v10661_v2 = vld [vmem:[#allocation149_spill] sm:$0xff] }
 0x413   :  { %v2775_v0 = vmul.f32 %v10661_v2, %v10660_v13  ;;  %3958 = vmatmul.bf16.gmra.mxu3 %v4355_v49  ;;  %v4401_v49 = vld [vmem:[%s9871_s3 + $0xa4] sm:$0xf0] }
 0x414   :  { %v3324_v20 = vpop.permute.xlu0 %3323  ;;  %3968 = vmatpush.bf16.msrb.mxu2 %v3582_v31  ;;  %v9434_v3 = vpop.permute.xlu2 %3233  ;;  %3928 = vmatmul.bf16.gmra.mxu1 %v4211_v7 }
 0x415   :  { %v3421_v32 = vadd.f32 %v3324_v20, %v2777_v25  ;;  %v3244_v15 = vpop.permute.xlu1 %3243 }
 0x416   :  { %v3405_v56 = vadd.f32 %v3244_v15, %v2761_v54  ;;  %v4384_v54 = vld [vmem:[%s9871_s3 + $0x1c] sm:$0xf0]  ;;  %v10665_v15 = vld [vmem:[#allocation137_spill] sm:$0xff] }
 0x417   :  { %v3513_v22 = vmax.f32 %v3421_v32, 0.0  ;;  %v10664_v32 = vld [vmem:[#allocation33_spill] sm:$0xff] }
 0x418   :  { %v3497_v36 = vmax.f32 %v3405_v56, 0.0 }
 0x419   :  { %v3608_v8 = vpack.c.bf16 %v3514_v45, %v3513_v22  ;;  %v2759_v45 = vmul.f32 %v10665_v15, %v10664_v32  ;;  %v4191_v22 = vor.u32 %v4384_v54, %v4190_v59 }
 0x41a   :  { %v3600_v26 = vpack.c.bf16 %v3498_v63, %v3497_v36 }
 0x41b   :  { %4113 = vmatpush.bf16.msrb.mxu1 %v3608_v8  ;;  %v3403_v63 = vadd.f32 %v9434_v3, %v2759_v45  ;;  %v4232_v3 = vld [vmem:[%s9871_s3 + $0x78] sm:$0xf0] }
 0x41c   :  { %v3139_v21 = vpop.permute.xlu0 %3138  ;;  %4064 = vmatpush.bf16.msrb.mxu0 %v3600_v26  ;;  %v3319_v62 = vpop.permute.xlu2 %3318  ;;  %v2774_v26 = vmul.f32 %v10669_v29, %v10668_v57  ;;  %v10686_v57 = vld [vmem:[#allocation64_spill] sm:$0xff]  ;;  %v10687_v29 = vld [vmem:[#allocation102_spill] sm:$0xff] }
 0x41d   :  { %v3059_v10 = vpop.permute.xlu1 %3058  ;;  %v3420_v38 = vadd.f32 %v3319_v62, %v2776_v23  ;;  %v3384_v5 = vadd.f32 %v3139_v21, %v2740_v47  ;;  %v3495_v42 = vmax.f32 %v3403_v63, 0.0  ;;  %v10670_v21 = vld [vmem:[#allocation18_spill] sm:$0xff]  ;;  %v10671_v62 = vld [vmem:[#allocation125_spill] sm:$0xff]  ;;  %v2773_v23 = vmul.f32 %v10673_v39, %v10672_v51 }
 0x41e   :  { %v3368_v6 = vadd.f32 %v3059_v10, %v2724_v46  ;;  %3884 = vmatmul.bf16.gmra.mxu0 %v4231_v55  ;;  %v4392_v46 = vld [vmem:[%s9871_s3 + $0x64] sm:$0xf]  ;;  %v2738_v10 = vmul.f32 %v10671_v62, %v10670_v21 }
 0x41f   :  { %v3512_v12 = vmax.f32 %v3420_v38, 0.0  ;;  %v3476_v25 = vmax.f32 %v3384_v5, 0.0  ;;  %v10676_v5 = vld [vmem:[#allocation29_spill] sm:$0xff]  ;;  %v10680_v55 = vld [vmem:[#allocation50_spill] sm:$0xff] }
 0x420   :  { %v3460_v50 = vmax.f32 %v3368_v6, 0.0 }
 0x422   :  { %v3581_v27 = vpack.c.bf16 %v3460_v50, %v3459_v60  ;;  %v10674_v60 = vld [vmem:[#allocation13_spill] sm:$0xff]  ;;  %v10675_v50 = vld [vmem:[#allocation128_spill] sm:$0xff] }
 0x423   :  { %v2737_v43 = vmul.f32 %v10675_v50, %v10674_v60  ;;  %v4192_v60 = vld [vmem:[%s9871_s3 + $0x20] sm:$0xf0] }
 0x424   :  { %v3314_v35 = vpop.permute.xlu0 %3313  ;;  %3969 = vmatpush.bf16.msrb.mxu2 %v3581_v27  ;;  %v9467_v58 = vpop.permute.xlu2 %3223  ;;  %v4254_v27 = vld [vmem:[%s9871_s3 + $0x90] sm:$0xf] }
 0x425   :  { %v3419_v24 = vadd.f32 %v3314_v35, %v2775_v0  ;;  %v3134_v41 = vpop.permute.xlu1 %3133  ;;  %v4214_v0 = vld [vmem:[%s9871_s3 + $0x38] sm:$0xf]  ;;  %v4255_v1 = vor.u32 %v4401_v49, %v4254_v27 }
 0x426   :  { %v3383_v31 = vadd.f32 %v3134_v41, %v2739_v44  ;;  %v10677_v35 = vld [vmem:[#allocation133_spill] sm:$0xff] }
 0x427   :  { %v3511_v28 = vmax.f32 %v3419_v24, 0.0  ;;  %v2757_v24 = vmul.f32 %v10677_v35, %v10676_v5 }
 0x428   :  { %v3475_v53 = vmax.f32 %v3383_v31, 0.0  ;;  %3970 = vmatpush.bf16.msrb.mxu2 %v9404_v18  ;;  %v2760_v18 = vmul.f32 %v10667_v48, %v10666_v61  ;;  %v10678_v31 = vld [vmem:[#allocation28_spill] sm:$0xff]  ;;  %v10682_v48 = vld [vmem:[#allocation14_spill] sm:$0xff] }
 0x429   :  { %v3607_v20 = vpack.c.bf16 %v3512_v12, %v3511_v28  ;;  %v4215_v12 = vor.u32 %v4390_v11, %v4214_v0  ;;  %v10679_v28 = vld [vmem:[#allocation141_spill] sm:$0xff]  ;;  %v3401_v37 = vadd.f32 %v9467_v58, %v2757_v24 }
 0x42a   :  { %v3589_v56 = vpack.c.bf16 %v3476_v25, %v3475_v53  ;;  %v2758_v14 = vmul.f32 %v10679_v28, %v10678_v31  ;;  %v10695_v31 = vld [vmem:[#allocation131_spill] sm:$0xff] }
 0x42b   :  { %4114 = vmatpush.bf16.msrb.mxu1 %v3607_v20  ;;  %v10681_v20 = vld [vmem:[#allocation146_spill] sm:$0xff]  ;;  %v3493_v15 = vmax.f32 %v3401_v37, 0.0  ;;  %v10696_v37 = vld [vmem:[#allocation23_spill] sm:$0xff] }
 0x42c   :  { %v3129_v36 = vpop.permute.xlu0 %3128  ;;  %3971 = vmatpush.bf16.msrb.mxu2 %v9414_v16  ;;  %4018 = vmatpush.bf16.msrb.mxu3 %v3589_v56  ;;  %v3309_v52 = vpop.permute.xlu2 %3308  ;;  %v4235_v16 = vor.u32 %v4392_v46, %v4232_v3  ;;  %v2772_v32 = vmul.f32 %v10681_v20, %v10680_v55  ;;  %v4398_v56 = vld [vmem:[%s9871_s3 + $0x94] sm:$0xf] }
 0x42d   :  { %v3239_v8 = vpop.permute.xlu1 %3238  ;;  %v3418_v33 = vadd.f32 %v3309_v52, %v2774_v26  ;;  %v3382_v19 = vadd.f32 %v3129_v36, %v2738_v10  ;;  %v10684_v52 = vld [vmem:[#allocation45_spill] sm:$0xff]  ;;  %v2735_v26 = vmul.f32 %v10687_v29, %v10686_v57  ;;  %v4238_v10 = vld [vmem:[%s9871_s3 + $0x68] sm:$0xf] }
 0x42e   :  { %v3404_v40 = vadd.f32 %v3239_v8, %v2760_v18  ;;  %3933 = vmatmul.bf16.gmra.mxu1 %v4235_v16  ;;  %3889 = vmatmul.bf16.gmra.mxu0 %v4255_v1  ;;  %v10683_v18 = vld [vmem:[#allocation100_spill] sm:$0xff]  ;;  %v10692_v1 = vld [vmem:[#allocation22_spill] sm:$0xff] }
 0x42f   :  { %3972 = vmatmul.bf16.vlgmr.msrb.gmra.mxu2 %v4191_v22  ;;  %v3510_v17 = vmax.f32 %v3418_v33, 0.0  ;;  %v3474_v13 = vmax.f32 %v3382_v19, 0.0  ;;  %v4256_v22 = vld [vmem:[%s9871_s3 + $0xa8] sm:$0xf0]  ;;  %v2736_v63 = vmul.f32 %v10683_v18, %v10682_v48  ;;  %v10685_v8 = vld [vmem:[#allocation148_spill] sm:$0xff] }
 0x430   :  { %v3496_v9 = vmax.f32 %v3404_v40, 0.0  ;;  %v4259_v61 = vor.u32 %v4398_v56, %v4256_v22  ;;  %v2771_v40 = vmul.f32 %v10685_v8, %v10684_v52  ;;  %v10689_v19 = vld [vmem:[#allocation139_spill] sm:$0xff]  ;;  %v10700_v8 = vld [vmem:[#allocation41_spill] sm:$0xff] }
 0x432   :  { %v3599_v6 = vpack.c.bf16 %v3496_v9, %v3495_v42 }
 0x434   :  { %v3304_v38 = vpop.permute.xlu0 %3303  ;;  %4065 = vmatpush.bf16.msrb.mxu0 %v3599_v6  ;;  %v3214_v7 = vpop.permute.xlu2 %3213  ;;  %v4396_v6 = vld [vmem:[%s9871_s3 + $0x7c] sm:$0xf0] }
 0x435   :  { %v3417_v30 = vadd.f32 %v3304_v38, %v2773_v23  ;;  %v3124_v4 = vpop.permute.xlu1 %3123  ;;  %v4381_v23 = vld [vmem:[%s9871_s3 + $0xc] sm:$0xf] }
 0x436   :  { %v3381_v34 = vadd.f32 %v3124_v4, %v2737_v43  ;;  %v10688_v43 = vld [vmem:[#allocation25_spill] sm:$0xff]  ;;  %v4239_v4 = vor.u32 %v4396_v6, %v4238_v10 }
 0x437   :  { %v3509_v47 = vmax.f32 %v3417_v30, 0.0  ;;  %v2755_v38 = vmul.f32 %v10689_v19, %v10688_v43 }
 0x438   :  { %v3473_v2 = vmax.f32 %v3381_v34, 0.0  ;;  %v10690_v34 = vld [vmem:[#allocation30_spill] sm:$0xff] }
 0x439   :  { %v3606_v44 = vpack.c.bf16 %v3510_v17, %v3509_v47  ;;  %v4195_v17 = vor.u32 %v4381_v23, %v4192_v60  ;;  %v10691_v47 = vld [vmem:[#allocation134_spill] sm:$0xff]  ;;  %v3399_v49 = vadd.f32 %v3214_v7, %v2755_v38  ;;  %v10706_v38 = vld [vmem:[#allocation37_spill] sm:$0xff] }
 0x43a   :  { %v3588_v41 = vpack.c.bf16 %v3474_v13, %v3473_v2  ;;  %v2756_v27 = vmul.f32 %v10691_v47, %v10690_v34 }
 0x43b   :  { %4115 = vmatpush.bf16.msrb.mxu1 %v3606_v44  ;;  %v10693_v44 = vld [vmem:[#allocation136_spill] sm:$0xff]  ;;  %v3491_v35 = vmax.f32 %v3399_v49, 0.0  ;;  %v4408_v49 = vld [vmem:[%s9871_s3 + $0xdc] sm:$0xf0] }
 0x43c   :  { %v3119_v25 = vpop.permute.xlu0 %3118  ;;  %4019 = vmatpush.bf16.msrb.mxu3 %v3588_v41  ;;  %v3299_v53 = vpop.permute.xlu2 %3298  ;;  %v2752_v5 = vmul.f32 %v10693_v44, %v10692_v1  ;;  %v4382_v1 = vld [vmem:[%s9871_s3 + $0x14] sm:$0xf]  ;;  %v4200_v44 = vld [vmem:[%s9871_s3 + $0x28] sm:$0xf0] }
 0x43d   :  { %v3229_v59 = vpop.permute.xlu1 %3228  ;;  %v3416_v58 = vadd.f32 %v3299_v53, %v2772_v32  ;;  %v3380_v42 = vadd.f32 %v3119_v25, %v2736_v63  ;;  %v10697_v25 = vld [vmem:[#allocation130_spill] sm:$0xff]  ;;  %v10698_v53 = vld [vmem:[#allocation27_spill] sm:$0xff]  ;;  %v4387_v63 = vld [vmem:[%s9871_s3 + $0x3c] sm:$0xf] }
 0x43e   :  { %v3402_v54 = vadd.f32 %v3229_v59, %v2758_v14  ;;  %3938 = vmatmul.bf16.gmra.mxu1 %v4259_v61  ;;  %v2751_v7 = vmul.f32 %v10697_v25, %v10696_v37  ;;  %v10699_v59 = vld [vmem:[#allocation132_spill] sm:$0xff]  ;;  %v4310_v25 = vld [vmem:[%s9871_s3 + $0xf8] sm:$0xf] }
 0x43f   :  { %3977 = vmatmul.bf16.gmra.mxu2 %v4215_v12  ;;  %v3508_v16 = vmax.f32 %v3416_v58, 0.0  ;;  %v3472_v51 = vmax.f32 %v3380_v42, 0.0  ;;  %v10694_v12 = vld [vmem:[#allocation26_spill] sm:$0xff]  ;;  %v4262_v58 = vld [vmem:[%s9871_s3 + $0x98] sm:$0xf] }
 0x440   :  { %v3494_v45 = vmax.f32 %v3402_v54, 0.0  ;;  %v2754_v28 = vmul.f32 %v10695_v31, %v10694_v12  ;;  %v2753_v54 = vmul.f32 %v10699_v59, %v10698_v53  ;;  %v4402_v61 = vld [vmem:[%s9871_s3 + $0xac] sm:$0xf0]  ;;  %v4203_v12 = vor.u32 %v4382_v1, %v4200_v44  ;;  %v4222_v31 = vld [vmem:[%s9871_s3 + $0x40] sm:$0xf] }
 0x441   :  { %v4414_v53 = vld [vmem:[%s9871_s3 + $0x10c] sm:$0xf0]  ;;  %v4399_v59 = vld [vmem:[%s9871_s3 + $0x9c] sm:$0xf] }
 0x442   :  { %v3598_v36 = vpack.c.bf16 %v3494_v45, %v3493_v15 }
 0x444   :  { %v3294_v9 = vpop.permute.xlu0 %3293  ;;  %4066 = vmatpush.bf16.msrb.mxu0 %v3598_v36  ;;  %v3284_v46 = vpop.permute.xlu2 %3283  ;;  %v4216_v36 = vld [vmem:[%s9871_s3 + $0x50] sm:$0xf0] }
 0x445   :  { %v3415_v3 = vadd.f32 %v3294_v9, %v2771_v40  ;;  %v3114_v33 = vpop.permute.xlu1 %3113  ;;  %v10701_v40 = vld [vmem:[#allocation143_spill] sm:$0xff]  ;;  %v4219_v42 = vor.u32 %v4387_v63, %v4216_v36  ;;  %v10702_v9 = vld [vmem:[#allocation40_spill] sm:$0xff] }
 0x446   :  { %v3379_v21 = vadd.f32 %v3114_v33, %v2735_v26  ;;  %v2769_v57 = vmul.f32 %v10701_v40, %v10700_v8  ;;  %v4263_v26 = vor.u32 %v4402_v61, %v4262_v58  ;;  %v4397_v58 = vld [vmem:[%s9871_s3 + $0x84] sm:$0xf0]  ;;  %v4420_v40 = vld [vmem:[%s9871_s3 + $0x13c] sm:$0xf0] }
 0x447   :  { %v3507_v62 = vmax.f32 %v3415_v3, 0.0  ;;  %v10703_v3 = vld [vmem:[#allocation153_spill] sm:$0xff] }
 0x448   :  { %v3471_v39 = vmax.f32 %v3379_v21, 0.0  ;;  %v2770_v33 = vmul.f32 %v10703_v3, %v10702_v9  ;;  %v4198_v21 = vld [vmem:[%s9871_s3 + $0x10] sm:$0xf]  ;;  %v4248_v9 = vld [vmem:[%s9871_s3 + $0x88] sm:$0xf0] }
 0x449   :  { %v3605_v50 = vpack.c.bf16 %v3508_v16, %v3507_v62  ;;  %v3413_v16 = vadd.f32 %v3284_v46, %v2769_v57  ;;  %v4385_v62 = vld [vmem:[%s9871_s3 + $0x24] sm:$0xf0]  ;;  %v10705_v46 = vld [vmem:[#allocation145_spill] sm:$0xff]  ;;  %v4405_v57 = vld [vmem:[%s9871_s3 + $0xcc] sm:$0xf] }
 0x44a   :  { %v3587_v30 = vpack.c.bf16 %v3472_v51, %v3471_v39  ;;  %v4199_v51 = vor.u32 %v4385_v62, %v4198_v21  ;;  %v4270_v21 = vld [vmem:[%s9871_s3 + $0xa0] sm:$0xf]  ;;  %v4403_v62 = vld [vmem:[%s9871_s3 + $0xb4] sm:$0xf0] }
 0x44b   :  { %4116 = vmatpush.bf16.msrb.mxu1 %v3605_v50  ;;  %v3505_v39 = vmax.f32 %v3413_v16, 0.0  ;;  %v10704_v50 = vld [vmem:[#allocation42_spill] sm:$0xff] }
 0x44c   :  { %v3209_v13 = vpop.permute.xlu0 %3208  ;;  %4020 = vmatpush.bf16.msrb.mxu3 %v3587_v30  ;;  %v3199_v11 = vpop.permute.xlu2 %3198  ;;  %v2768_v43 = vmul.f32 %v10705_v46, %v10704_v50  ;;  %v10707_v30 = vld [vmem:[#allocation150_spill] sm:$0xff]  ;;  %v4426_v46 = vld [vmem:[%s9871_s3 + $0x16c] sm:$0xf0] }
 0x44d   :  { %v3219_v2 = vpop.permute.xlu1 %3218  ;;  %v3396_v41 = vadd.f32 %v3199_v11, %v2752_v5  ;;  %v3398_v55 = vadd.f32 %v3209_v13, %v2754_v28  ;;  %v4240_v11 = vld [vmem:[%s9871_s3 + $0x80] sm:$0xf0]  ;;  %v4391_v28 = vld [vmem:[%s9871_s3 + $0x54] sm:$0xf0] }
 0x44e   :  { %v3400_v0 = vadd.f32 %v3219_v2, %v2756_v27  ;;  %v4286_v27 = vld [vmem:[%s9871_s3 + $0xc8] sm:$0xf]  ;;  %v3895_v5 = vpop.f32.mrf.mxu2 }
 0x44f   :  { %3982 = vmatmul.bf16.gmra.mxu2 %v4239_v4  ;;  %4021 = vmatmul.bf16.vlgmr.msrb.gmra.mxu3 %v4195_v17  ;;  %v3488_v45 = vmax.f32 %v3396_v41, 0.0  ;;  %v3490_v48 = vmax.f32 %v3398_v55, 0.0  ;;  %v2767_v4 = vmul.f32 %v10707_v30, %v10706_v38  ;;  %v4400_v30 = vld [vmem:[%s9871_s3 + $0xa4] sm:$0xf] }
 0x450   :  { %v3492_v24 = vmax.f32 %v3400_v0, 0.0  ;;  %v4393_v0 = vld [vmem:[%s9871_s3 + $0x6c] sm:$0xf] }
 0x451   :  { %v4243_v41 = vor.u32 %v4393_v0, %v4240_v11 }
 0x452   :  { %v3597_v14 = vpack.c.bf16 %v3492_v24, %v3491_v35  ;;  %v4287_v24 = vor.u32 %v4408_v49, %v4286_v27 }
 0x454   :  { %v3194_v20 = vpop.permute.xlu0 %3193  ;;  %4067 = vmatpush.bf16.msrb.mxu0 %v3597_v14  ;;  %v4223_v14 = vor.u32 %v4391_v28, %v4222_v31  ;;  %v4406_v28 = vld [vmem:[%s9871_s3 + $0xd4] sm:$0xf] }
 0x455   :  { %v3395_v32 = vadd.f32 %v3194_v20, %v2751_v7  ;;  %v3204_v15 = vpop.permute.xlu1 %3203  ;;  %v4388_v20 = vld [vmem:[%s9871_s3 + $0x44] sm:$0xf] }
 0x456   :  { %v3397_v56 = vadd.f32 %v3204_v15, %v2753_v54  ;;  %v3897_v37 = vpop.f32.mrf.mxu2  ;;  %v4264_v54 = vld [vmem:[%s9871_s3 + $0xb0] sm:$0xf0]  ;;  %v4311_v15 = vor.u32 %v4414_v53, %v4310_v25  ;;  %v4318_v53 = vld [vmem:[%s9871_s3 + $0x100] sm:$0xf] }
 0x457   :  { %v3487_v22 = vmax.f32 %v3395_v32, 0.0  ;;  %v4224_v32 = vld [vmem:[%s9871_s3 + $0x58] sm:$0xf0] }
 0x458   :  { %v3489_v18 = vmax.f32 %v3397_v56, 0.0  ;;  %v4227_v56 = vor.u32 %v4388_v20, %v4224_v32 }
 0x459   :  { %v3595_v52 = vpack.c.bf16 %v3488_v45, %v3487_v22  ;;  %v4267_v45 = vor.u32 %v4399_v59, %v4264_v54  ;;  %v4246_v22 = vld [vmem:[%s9871_s3 + $0x70] sm:$0xf]  ;;  %v4415_v59 = vld [vmem:[%s9871_s3 + $0x114] sm:$0xf0] }
 0x45a   :  { %v3596_v29 = vpack.c.bf16 %v3490_v48, %v3489_v18  ;;  %v4247_v48 = vor.u32 %v4397_v58, %v4246_v22  ;;  %v4319_v32 = vor.u32 %v4415_v59, %v4318_v53  ;;  %v4423_v22 = vld [vmem:[%s9871_s3 + $0x15c] sm:$0xf]  ;;  %v4360_v58 = vld [vmem:[%s9871_s3 + $0x170] sm:$0xf0] }
 0x45c   :  { %4068 = vmatpush.bf16.msrb.mxu0 %v3596_v29  ;;  %v3279_v60 = vpop.permute.xlu0 %3278  ;;  %v4288_v29 = vld [vmem:[%s9871_s3 + $0xe0] sm:$0xf0] }
 0x45d   :  { %v3289_v10 = vpop.permute.xlu1 %3288  ;;  %v3412_v17 = vadd.f32 %v3279_v60, %v2768_v43  ;;  %v4358_v60 = vld [vmem:[%s9871_s3 + $0x158] sm:$0xf]  ;;  %v4411_v43 = vld [vmem:[%s9871_s3 + $0xfc] sm:$0xf] }
 0x45e   :  { %v3414_v6 = vadd.f32 %v3289_v10, %v2770_v33  ;;  %v3900_v61 = vpop.f32.mrf.mxu2  ;;  %v4291_v33 = vor.u32 %v4405_v57, %v4288_v29  ;;  %v4271_v10 = vor.u32 %v4403_v62, %v4270_v21 }
 0x45f   :  { %3987 = vmatmul.bf16.gmra.mxu2 %v4263_v26  ;;  %4026 = vmatmul.bf16.gmra.mxu3 %v4219_v42  ;;  %v3504_v13 = vmax.f32 %v3412_v17, 0.0  ;;  %v4394_v42 = vld [vmem:[%s9871_s3 + $0x74] sm:$0xf] }
 0x460   :  { %v3506_v23 = vmax.f32 %v3414_v6, 0.0  ;;  %4069 = vmatpush.bf16.msrb.mxu0 %v3595_v52  ;;  %v4334_v52 = vld [vmem:[%s9871_s3 + $0x128] sm:$0xf]  ;;  %v4251_v16 = vor.u32 %v4394_v42, %v4248_v9 }
 0x461   :  { %v4335_v3 = vor.u32 %v4420_v40, %v4334_v52  ;;  %v4421_v40 = vld [vmem:[%s9871_s3 + $0x144] sm:$0xf0] }
 0x462   :  { %v3604_v19 = vpack.c.bf16 %v3506_v23, %v3505_v39 }
 0x463   :  { %4070 = vmatmul.bf16.vlgmr.msrb.gmra.mxu0 %v4199_v51 }
 0x464   :  { %4117 = vmatpush.bf16.msrb.mxu1 %v3604_v19  ;;  %v4312_v19 = vld [vmem:[%s9871_s3 + $0x110] sm:$0xf0] }
 0x465   :  { %v3274_v34 = vpop.permute.xlu1 %3273  ;;  %v4315_v27 = vor.u32 %v4411_v43, %v4312_v19  ;;  %v4424_v19 = vld [vmem:[%s9871_s3 + $0x164] sm:$0xf] }
 0x466   :  { %v3411_v47 = vadd.f32 %v3274_v34, %v2767_v4  ;;  %v3944_v7 = vpop.f32.mrf.mxu3  ;;  %v3902_v36 = vpop.f32.mrf.mxu2  ;;  %v4272_v4 = vld [vmem:[%s9871_s3 + $0xb8] sm:$0xf0] }
 0x467   :  { %v9620_v55 = vadd.f32 %v3944_v7, %v3895_v5  ;;  %v4275_v49 = vor.u32 %v4400_v30, %v4272_v4  ;;  %v4368_v30 = vld [vmem:[%s9871_s3 + $0x178] sm:$0xf0] }
 0x468   :  { %v3503_v2 = vmax.f32 %v3411_v47, 0.0  ;;  %v4359_v47 = vor.u32 %v4426_v46, %v4358_v60 }
 0x46a   :  { %v3603_v35 = vpack.c.bf16 %v3504_v13, %v3503_v2  ;;  %v4294_v13 = vld [vmem:[%s9871_s3 + $0xd0] sm:$0xf]  ;;  %v4409_v2 = vld [vmem:[%s9871_s3 + $0xe4] sm:$0xf0] }
 0x46b   :  { %v4295_v0 = vor.u32 %v4409_v2, %v4294_v13 }
 0x46c   :  { %4118 = vmatpush.bf16.msrb.mxu1 %v3603_v35 }
 0x46e   :  { %v3946_v18 = vpop.f32.mrf.mxu3  ;;  %v3905_v23 = vpop.f32.mrf.mxu2 }
 0x46f   :  { %3992 = vmatmul.bf16.gmra.mxu2 %v4287_v24  ;;  %4031 = vmatmul.bf16.gmra.mxu3 %v4243_v41  ;;  %v9635_v63 = vadd.f32 %v3946_v18, %v3897_v37  ;;  %v4417_v41 = vld [vmem:[%s9871_s3 + $0x12c] sm:$0xf]  ;;  %v4320_v18 = vld [vmem:[%s9871_s3 + $0x118] sm:$0xf0] }
 0x470   :  { %4372 = vmatmul.msk.bf16.vlgmr.msrb.gmra.mxu1 %vm3841_vm10, %v4203_v12  ;;  %v4336_v12 = vld [vmem:[%s9871_s3 + $0x140] sm:$0xf0] }
 0x471   :  { %v4339_v25 = vor.u32 %v4417_v41, %v4336_v12 }
 0x473   :  { %4075 = vmatmul.bf16.gmra.mxu0 %v4223_v14  ;;  %v4296_v14 = vld [vmem:[%s9871_s3 + $0xe8] sm:$0xf0] }
 0x474   :  { %v4299_v7 = vor.u32 %v4406_v28, %v4296_v14 }
 0x476   :  { %v3949_v8 = vpop.f32.mrf.mxu3  ;;  %v3907_v34 = vpop.f32.mrf.mxu2 }
 0x477   :  { %v9649_v26 = vadd.f32 %v3949_v8, %v3900_v61  ;;  %v4342_v8 = vld [vmem:[%s9871_s3 + $0x130] sm:$0xf] }
 0x478   :  { %v4343_v29 = vor.u32 %v4421_v40, %v4342_v8 }
 0x47b   :  { %v9664_v51 = vpop.f32.mrf.mxu0 }
 0x47e   :  { %v3951_v6 = vpop.f32.mrf.mxu3  ;;  %v3910_v35 = vpop.f32.mrf.mxu2 }
 0x47f   :  { %3997 = vmatmul.bf16.gmra.mxu2 %v4311_v15  ;;  %4036 = vmatmul.bf16.gmra.mxu3 %v4267_v45  ;;  %v9666_v39 = vadd.f32 %v3951_v6, %v3902_v36  ;;  %v4363_v36 = vor.u32 %v4423_v22, %v4360_v58  ;;  %v4427_v6 = vld [vmem:[%s9871_s3 + $0x174] sm:$0xf0] }
 0x480   :  { %4373 = vmatmul.msk.bf16.gmra.mxu1 %vm3841_vm10, %v4227_v56 }
 0x481   :  { %v9696_v11 = vpop.f32.mrf.mxu1 }
 0x483   :  { %4080 = vmatmul.bf16.gmra.mxu0 %v4247_v48  ;;  %v9688_v17 = vpop.f32.mrf.mxu0  ;;  %v4412_v48 = vld [vmem:[%s9871_s3 + $0x104] sm:$0xf] }
 0x484   :  { %v4323_v52 = vor.u32 %v4412_v48, %v4320_v18 }
 0x486   :  { %v3954_v50 = vpop.f32.mrf.mxu3  ;;  %v3912_v20 = vpop.f32.mrf.mxu2 }
 0x487   :  { %v9680_v38 = vadd.f32 %v3954_v50, %v3905_v23 }
 0x489   :  { %v9717_v37 = vpop.f32.mrf.mxu1 }
 0x48b   :  { %v9701_v5 = vpop.f32.mrf.mxu0 }
 0x48e   :  { %v3956_v1 = vpop.f32.mrf.mxu3 }
 0x48f   :  { %4002 = vmatmul.bf16.gmra.mxu2 %v4335_v3  ;;  %4041 = vmatmul.bf16.gmra.mxu3 %v4291_v33  ;;  %v9699_v44 = vadd.f32 %v3956_v1, %v3907_v34  ;;  %v4418_v33 = vld [vmem:[%s9871_s3 + $0x134] sm:$0xf]  ;;  %v3925_v1 = vadd.f32 %v9696_v11, %v9664_v51 }
 0x490   :  { %4374 = vmatmul.msk.bf16.gmra.mxu1 %vm3841_vm10, %v4251_v16  ;;  %v4344_v16 = vld [vmem:[%s9871_s3 + $0x148] sm:$0xf0] }
 0x491   :  { %v3929_v56 = vpop.f32.mrf.mxu1  ;;  %v4347_v21 = vor.u32 %v4418_v33, %v4344_v16 }
 0x492   :  { %v3930_v22 = vadd.f32 %v3929_v56, %v9701_v5 }
 0x493   :  { %4085 = vmatmul.bf16.gmra.mxu0 %v4271_v10  ;;  %v9725_v54 = vpop.f32.mrf.mxu0  ;;  %v4366_v10 = vld [vmem:[%s9871_s3 + $0x160] sm:$0xf] }
 0x494   :  { %v4367_v23 = vor.u32 %v4427_v6, %v4366_v10 }
 0x496   :  { %v3959_v24 = vpop.f32.mrf.mxu3 }
 0x497   :  { %v9709_v31 = vadd.f32 %v3959_v24, %v3910_v35 }
 0x499   :  { %v3931_v57 = vpop.f32.mrf.mxu1 }
 0x49a   :  { %v3932_v40 = vadd.f32 %v3931_v57, %v9725_v54 }
 0x49b   :  { %v9736_v61 = vpop.f32.mrf.mxu0 }
 0x49e   :  { %v3961_v15 = vpop.f32.mrf.mxu3 }
 0x49f   :  { %4007 = vmatmul.bf16.gmra.mxu2 %v4359_v47  ;;  %4046 = vmatmul.bf16.gmra.mxu3 %v4315_v27  ;;  %v9728_v45 = vadd.f32 %v3961_v15, %v3912_v20  ;;  %v4371_v27 = vor.u32 %v4424_v19, %v4368_v30 }
 0x4a0   :  { %4375 = vmatmul.msk.bf16.gmra.mxu1 %vm3841_vm10, %v4275_v49 }
 0x4a3   :  { %4090 = vmatmul.bf16.gmra.mxu0 %v4295_v0  ;;  %v9751_v42 = vpop.f32.mrf.mxu0 }
 0x4ab   :  { %v9753_v3 = vpop.f32.mrf.mxu1  ;;  %v9761_v62 = vpop.f32.mrf.mxu0 }
 0x4ac   :  { %v3935_v6 = vadd.f32 %v9753_v3, %v9736_v61 }
 0x4af   :  { %4051 = vmatmul.bf16.gmra.mxu3 %v4339_v25  ;;  %v3927_v25 = vadd.f32 %v9717_v37, %v9688_v17 }
 0x4b0   :  { %4376 = vmatmul.msk.bf16.gmra.mxu1 %vm3841_vm10, %v4299_v7 }
 0x4b2   :  { %v3973_v9 = vpop.f32.mrf.mxu2 }
 0x4b3   :  { %4095 = vmatmul.bf16.gmra.mxu0 %v4319_v32  ;;  %v3936_v50 = vpop.f32.mrf.mxu1  ;;  %v9770_v43 = vpop.f32.mrf.mxu0  ;;  %v3974_v35 = vadd.f32 %v3973_v9, %v3925_v1 }
 0x4ba   :  { %v3975_v60 = vpop.f32.mrf.mxu2 }
 0x4bb   :  { %v9778_v47 = vpop.f32.mrf.mxu1  ;;  %v3976_v59 = vadd.f32 %v3975_v60, %v3927_v25 }
 0x4bc   :  { %v3940_v1 = vadd.f32 %v9778_v47, %v9761_v62 }
 0x4bf   :  { %4056 = vmatmul.bf16.gmra.mxu3 %v4363_v36 }
 0x4c0   :  { %4377 = vmatmul.msk.bf16.gmra.mxu1 %vm3841_vm10, %v4323_v52 }
 0x4c2   :  { %v3978_v34 = vpop.f32.mrf.mxu2 }
 0x4c3   :  { %4100 = vmatmul.bf16.gmra.mxu0 %v4343_v29  ;;  %v9781_v0 = vpop.f32.mrf.mxu1  ;;  %v3979_v48 = vadd.f32 %v3978_v34, %v3930_v22 }
 0x4c4   :  { %v3942_v25 = vadd.f32 %v9781_v0, %v9770_v43 }
 0x4ca   :  { %v3980_v2 = vpop.f32.mrf.mxu2 }
 0x4cb   :  { %v3981_v9 = vadd.f32 %v3980_v2, %v3932_v40 }
 0x4d0   :  { %4378 = vmatmul.msk.bf16.gmra.mxu1 %vm3841_vm10, %v4347_v21 }
 0x4d2   :  { %v4022_v46 = vpop.f32.mrf.mxu3  ;;  %v3983_v53 = vpop.f32.mrf.mxu2 }
 0x4d3   :  { %4105 = vmatmul.bf16.gmra.mxu0 %v4367_v23  ;;  %v4023_v41 = vadd.f32 %v4022_v46, %v3974_v35  ;;  %v3984_v60 = vadd.f32 %v3983_v53, %v3935_v6 }
 0x4da   :  { %v4024_v4 = vpop.f32.mrf.mxu3  ;;  %v3985_v37 = vpop.f32.mrf.mxu2 }
 0x4db   :  { %v4025_v32 = vadd.f32 %v4024_v4, %v3976_v59  ;;  %v3937_v4 = vadd.f32 %v3936_v50, %v9751_v42 }
 0x4e0   :  { %4379 = vmatmul.msk.bf16.gmra.mxu1 %vm3841_vm10, %v4371_v27  ;;  %v4071_v49 = vpop.f32.mrf.mxu0 }
 0x4e1   :  { %v4072_v28 = vadd.f32 %v4071_v49, %v4023_v41  ;;  %v3986_v49 = vadd.f32 %v3985_v37, %v3937_v4 }
 0x4e2   :  { %v4027_v13 = vpop.f32.mrf.mxu3  ;;  %v3988_v33 = vpop.f32.mrf.mxu2 }
 0x4e3   :  { %v4028_v18 = vadd.f32 %v4027_v13, %v3979_v48  ;;  %v3989_v41 = vadd.f32 %v3988_v33, %v3940_v1 }
 0x4e8   :  { %v4073_v24 = vpop.f32.mrf.mxu0 }
 0x4e9   :  { %v4074_v11 = vadd.f32 %v4073_v24, %v4025_v32 }
 0x4ea   :  { %v4029_v12 = vpop.f32.mrf.mxu3  ;;  %v3990_v19 = vpop.f32.mrf.mxu2 }
 0x4eb   :  { %v4030_v56 = vadd.f32 %v4029_v12, %v3981_v9  ;;  %v3991_v53 = vadd.f32 %v3990_v19, %v3942_v25 }
 0x4ed   :  { %v4120_v14 = vpop.f32.mrf.mxu1 }
 0x4ee   :  { %v4121_v7 = vadd.f32 %v4120_v14, %v4072_v28 }
 0x4f0   :  { %4160 = vst.msk [vmem:[%s9872_s4] sm:$0xff] %vm110_vm0, %v4121_v7  ;;  %v4076_v20 = vpop.f32.mrf.mxu0 }
 0x4f1   :  { %v4077_v52 = vadd.f32 %v4076_v20, %v4028_v18 }
 0x4f2   :  { %v4032_v51 = vpop.f32.mrf.mxu3  ;;  %v3993_v24 = vpop.f32.mrf.mxu2 }
 0x4f3   :  { %v4033_v57 = vadd.f32 %v4032_v51, %v3984_v60 }
 0x4f5   :  { %v4122_v15 = vpop.f32.mrf.mxu1 }
 0x4f6   :  { %v4123_v58 = vadd.f32 %v4122_v15, %v4074_v11  ;;  %v3994_v15 = vadd.f32 %v3993_v24, %v9620_v55 }
 0x4f8   :  { %4161 = vst.msk [vmem:[%s9872_s4 + $0x8] sm:$0xff] %vm110_vm0, %v4123_v58  ;;  %v4078_v17 = vpop.f32.mrf.mxu0 }
 0x4f9   :  { %v4079_v16 = vadd.f32 %v4078_v17, %v4030_v56 }
 0x4fa   :  { %v4034_v36 = vpop.f32.mrf.mxu3  ;;  %v3995_v47 = vpop.f32.mrf.mxu2 }
 0x4fb   :  { %v4035_v3 = vadd.f32 %v4034_v36, %v3986_v49  ;;  %v3996_v18 = vadd.f32 %v3995_v47, %v9635_v63 }
 0x4fd   :  { %v4125_v8 = vpop.f32.mrf.mxu1 }
 0x4fe   :  { %v4126_v29 = vadd.f32 %v4125_v8, %v4077_v52 }
 0x500   :  { %4162 = vst.msk [vmem:[%s9872_s4 + $0x10] sm:$0xff] %vm110_vm0, %v4126_v29  ;;  %v4081_v5 = vpop.f32.mrf.mxu0 }
 0x501   :  { %v4082_v46 = vadd.f32 %v4081_v5, %v4033_v57 }
 0x502   :  { %v4037_v21 = vpop.f32.mrf.mxu3  ;;  %v3998_v22 = vpop.f32.mrf.mxu2 }
 0x503   :  { %v4038_v12 = vadd.f32 %v4037_v21, %v3989_v41  ;;  %v3999_v5 = vadd.f32 %v3998_v22, %v9649_v26 }
 0x505   :  { %v4127_v10 = vpop.f32.mrf.mxu1 }
 0x506   :  { %v4128_v23 = vadd.f32 %v4127_v10, %v4079_v16 }
 0x508   :  { %4163 = vst.msk [vmem:[%s9872_s4 + $0x18] sm:$0xff] %vm110_vm0, %v4128_v23  ;;  %v4083_v54 = vpop.f32.mrf.mxu0 }
 0x509   :  { %v4084_v13 = vadd.f32 %v4083_v54, %v4035_v3 }
 0x50a   :  { %v4039_v27 = vpop.f32.mrf.mxu3  ;;  %v4000_v8 = vpop.f32.mrf.mxu2 }
 0x50b   :  { %v4040_v59 = vadd.f32 %v4039_v27, %v3991_v53  ;;  %v4001_v6 = vadd.f32 %v4000_v8, %v9666_v39 }
 0x50d   :  { %v4130_v30 = vpop.f32.mrf.mxu1 }
 0x50e   :  { %v4131_v34 = vadd.f32 %v4130_v30, %v4082_v46 }
 0x510   :  { %4164 = vst.msk [vmem:[%s9872_s4 + $0x20] sm:$0xff] %vm110_vm0, %v4131_v34  ;;  %v4086_v61 = vpop.f32.mrf.mxu0 }
 0x511   :  { %v4087_v28 = vadd.f32 %v4086_v61, %v4038_v12 }
 0x512   :  { %v4042_v50 = vpop.f32.mrf.mxu3  ;;  %v4003_v10 = vpop.f32.mrf.mxu2 }
 0x513   :  { %v4043_v0 = vadd.f32 %v4042_v50, %v3994_v15  ;;  %v4004_v19 = vadd.f32 %v4003_v10, %v9680_v38 }
 0x515   :  { %v4132_v2 = vpop.f32.mrf.mxu1 }
 0x516   :  { %v4133_v35 = vadd.f32 %v4132_v2, %v4084_v13 }
 0x518   :  { %4165 = vst.msk [vmem:[%s9872_s4 + $0x28] sm:$0xff] %vm110_vm0, %v4133_v35  ;;  %v4088_v42 = vpop.f32.mrf.mxu0 }
 0x519   :  { %v4089_v32 = vadd.f32 %v4088_v42, %v4040_v59 }
 0x51a   :  { %v4044_v20 = vpop.f32.mrf.mxu3  ;;  %v4005_v30 = vpop.f32.mrf.mxu2 }
 0x51b   :  { %v4045_v36 = vadd.f32 %v4044_v20, %v3996_v18  ;;  %v4006_v3 = vadd.f32 %v4005_v30, %v9699_v44 }
 0x51d   :  { %v4135_v14 = vpop.f32.mrf.mxu1 }
 0x51e   :  { %v4136_v7 = vadd.f32 %v4135_v14, %v4087_v28 }
 0x520   :  { %4166 = vst.msk [vmem:[%s9872_s4 + $0x30] sm:$0xff] %vm110_vm0, %v4136_v7  ;;  %v4091_v62 = vpop.f32.mrf.mxu0 }
 0x521   :  { %v4092_v58 = vadd.f32 %v4091_v62, %v4043_v0 }
 0x522   :  { %v4047_v48 = vpop.f32.mrf.mxu3  ;;  %v4008_v13 = vpop.f32.mrf.mxu2 }
 0x523   :  { %v4048_v56 = vadd.f32 %v4047_v48, %v3999_v5  ;;  %v4009_v42 = vadd.f32 %v4008_v13, %v9709_v31 }
 0x525   :  { %v4137_v51 = vpop.f32.mrf.mxu1 }
 0x526   :  { %v4138_v11 = vadd.f32 %v4137_v51, %v4089_v32 }
 0x528   :  { %4167 = vst.msk [vmem:[%s9872_s4 + $0x38] sm:$0xff] %vm110_vm0, %v4138_v11  ;;  %v4093_v43 = vpop.f32.mrf.mxu0 }
 0x529   :  { %v4094_v52 = vadd.f32 %v4093_v43, %v4045_v36 }
 0x52a   :  { %v4049_v9 = vpop.f32.mrf.mxu3  ;;  %v4010_v12 = vpop.f32.mrf.mxu2 }
 0x52b   :  { %v4050_v26 = vadd.f32 %v4049_v9, %v4001_v6  ;;  %v4011_v7 = vadd.f32 %v4010_v12, %v9728_v45 }
 0x52d   :  { %v4140_v17 = vpop.f32.mrf.mxu1 }
 0x52e   :  { %v4141_v37 = vadd.f32 %v4140_v17, %v4092_v58 }
 0x530   :  { %4168 = vst.msk [vmem:[%s9872_s4 + $0x40] sm:$0xff] %vm110_vm0, %v4141_v37  ;;  %v4096_v55 = vpop.f32.mrf.mxu0 }
 0x531   :  { %v4097_v33 = vadd.f32 %v4096_v55, %v4048_v56 }
 0x532   :  { %v4052_v23 = vpop.f32.mrf.mxu3 }
 0x533   :  { %v4053_v39 = vadd.f32 %v4052_v23, %v4004_v19 }
 0x535   :  { %v4142_v40 = vpop.f32.mrf.mxu1 }
 0x536   :  { %v4143_v29 = vadd.f32 %v4142_v40, %v4094_v52 }
 0x538   :  { %4169 = vst.msk [vmem:[%s9872_s4 + $0x48] sm:$0xff] %vm110_vm0, %v4143_v29  ;;  %v4098_v63 = vpop.f32.mrf.mxu0 }
 0x539   :  { %v4099_v54 = vadd.f32 %v4098_v63, %v4050_v26 }
 0x53a   :  { %v4054_v4 = vpop.f32.mrf.mxu3 }
 0x53b   :  { %v4055_v38 = vadd.f32 %v4054_v4, %v4006_v3 }
 0x53d   :  { %v4145_v16 = vpop.f32.mrf.mxu1 }
 0x53e   :  { %v4146_v21 = vadd.f32 %v4145_v16, %v4097_v33 }
 0x540   :  { %4170 = vst.msk [vmem:[%s9872_s4 + $0x50] sm:$0xff] %vm110_vm0, %v4146_v21  ;;  %v4101_v60 = vpop.f32.mrf.mxu0 }
 0x541   :  { %v4102_v34 = vadd.f32 %v4101_v60, %v4053_v39 }
 0x542   :  { %v4057_v1 = vpop.f32.mrf.mxu3 }
 0x543   :  { %v4058_v44 = vadd.f32 %v4057_v1, %v4009_v42 }
 0x545   :  { %v4147_v57 = vpop.f32.mrf.mxu1 }
 0x546   :  { %v4148_v46 = vadd.f32 %v4147_v57, %v4099_v54 }
 0x548   :  { %4171 = vst.msk [vmem:[%s9872_s4 + $0x58] sm:$0xff] %vm110_vm0, %v4148_v46  ;;  %v4103_v27 = vpop.f32.mrf.mxu0 }
 0x549   :  { %v4104_v2 = vadd.f32 %v4103_v27, %v4055_v38 }
 0x54a   :  { %v4059_v25 = vpop.f32.mrf.mxu3 }
 0x54b   :  { %v4060_v31 = vadd.f32 %v4059_v25, %v4011_v7 }
 0x54d   :  { %v4150_v49 = vpop.f32.mrf.mxu1 }
 0x54e   :  { %v4151_v61 = vadd.f32 %v4150_v49, %v4102_v34 }
 0x550   :  { %4172 = vst.msk [vmem:[%s9872_s4 + $0x60] sm:$0xff] %vm110_vm0, %v4151_v61  ;;  %v4106_v41 = vpop.f32.mrf.mxu0 }
 0x551   :  { %v4107_v50 = vadd.f32 %v4106_v41, %v4058_v44 }
 0x555   :  { %v4152_v35 = vpop.f32.mrf.mxu1 }
 0x556   :  { %v4153_v24 = vadd.f32 %v4152_v35, %v4104_v2 }
 0x558   :  { %4173 = vst.msk [vmem:[%s9872_s4 + $0x68] sm:$0xff] %vm110_vm0, %v4153_v24  ;;  %v4108_v53 = vpop.f32.mrf.mxu0 }
 0x559   :  { %v4109_v62 = vadd.f32 %v4108_v53, %v4060_v31 }
 0x55d   :  { %v4155_v28 = vpop.f32.mrf.mxu1 }
 0x55e   :  { %v4156_v14 = vadd.f32 %v4155_v28, %v4107_v50 }
 0x560   :  { %4174 = vst.msk [vmem:[%s9872_s4 + $0x70] sm:$0xff] %vm110_vm0, %v4156_v14 }
 0x565   :  { %v4157_v47 = vpop.f32.mrf.mxu1 }
 0x566   :  { %v4158_v59 = vadd.f32 %v4157_v47, %v4109_v62 }
 0x568   :  { %4175 = vst.msk [vmem:[%s9872_s4 + $0x78] sm:$0xff] %vm110_vm0, %v4158_v59 }

</bundles_post_ra>
